<compile_context>
chip_gen: v5e
topology: v5e:2x2
jax: 0.10.0
libtpu: 0.0.40
codegen_flags: <defaults>
</compile_context>

<pallas_src>
import functools

import jax
import jax.numpy as jnp
from jax import lax
from jax.experimental import pallas as pl
from jax.experimental.pallas import tpu as pltpu


def autopad(k, p=None, d=1):
    if d > 1:
        k = d * (k - 1) + 1 if isinstance(k, int) else [d * (x - 1) + 1 for x in k]
    if p is None:
        p = k // 2 if isinstance(k, int) else [x // 2 for x in k]
    return p


LANE = 128  # lane width; Cout tile size


# ---------------------------------------------------------------------------
# Pallas kernel: direct conv (tap-sum) + folded BN + ReLU for one
# (image, cout-tile) block.
# ---------------------------------------------------------------------------
def _make_kernel(k, s, Ho, Wo, Cin, tn):
    def kernel(x_ref, w_ref, shift_ref, o_ref):
        # x_ref:     (1, Hp, Wp, Cin)  bf16  zero-padded input image
        # w_ref:     (k*k, Cin, tn)    bf16  BN-scale-folded conv weights
        # shift_ref: (1, tn)           f32   BN shift (beta - mean*scale)
        # o_ref:     (1, Ho, Wo, tn)   f32
        acc = jnp.zeros((Ho * Wo, tn), jnp.float32)
        for kh in range(k):
            for kw in range(k):
                if s == 1:
                    xt = x_ref[0, pl.ds(kh, Ho), pl.ds(kw, Wo), :]
                else:
                    xt = x_ref[0, pl.ds(kh, Ho, stride=s),
                               pl.ds(kw, Wo, stride=s), :]
                # Layout-preserving collapse: lane dim (Cin) unchanged.
                lhs = xt.reshape(Ho * Wo, Cin)
                acc = acc + jnp.dot(lhs, w_ref[kh * k + kw],
                                    preferred_element_type=jnp.float32)
        y = jnp.maximum(acc + shift_ref[...], 0.0)       # BN shift + ReLU (f32)
        o_ref[...] = y.reshape(1, Ho, Wo, tn).astype(o_ref.dtype)

    return kernel


# ---------------------------------------------------------------------------
# Wrapper: parameter folding + layout plumbing (plain JAX, single passes only).
# ---------------------------------------------------------------------------
def conv_bn_act(x_nchw, params, *, k, s, d=1, eps=1e-5):
    """ConvBnAct forward. x_nchw: (N, C_in, H, W) float32 -> (N, C_out, Ho, Wo)."""
    p = autopad(k, s, d)                                 # padding == s (as in ref)
    w = params["conv_weight"]                            # (Cout, Cin, k, k)
    gamma, beta = params["bn_weight"], params["bn_bias"]
    rmean, rvar = params["bn_running_mean"], params["bn_running_var"]

    Cout, Cin = w.shape[0], w.shape[1]
    N, _, H, W = x_nchw.shape
    Ho = (H + 2 * p - k) // s + 1
    Wo = (W + 2 * p - k) // s + 1

    # Fold BN (eval mode) into per-channel affine scale/shift; fold scale into
    # the conv weights so the kernel epilogue is a single add + max.
    scale = gamma / jnp.sqrt(rvar + eps)                 # (Cout,)
    shift = beta - rmean * scale                         # (Cout,)

    tn = LANE
    Cp = ((Cout + tn - 1) // tn) * tn                    # lane-dense Cout
    w_taps = jnp.transpose(w * scale[:, None, None, None], (2, 3, 1, 0))
    w_taps = w_taps.reshape(k * k, Cin, Cout)
    w_taps = jnp.pad(w_taps, ((0, 0), (0, 0), (0, Cp - Cout))).astype(jnp.bfloat16)
    shift_p = jnp.pad(shift, (0, Cp - Cout)).reshape(1, Cp).astype(jnp.float32)

    # NCHW -> NHWC, spatial zero-pad, bf16 for the MXU.  One pass over the
    # input; no k*k-amplified im2col matrix is written to HBM.
    x_nhwc = jnp.transpose(x_nchw, (0, 2, 3, 1))
    x_pad = jnp.pad(x_nhwc, ((0, 0), (p, p), (p, p), (0, 0))).astype(jnp.bfloat16)
    Hp, Wp = x_pad.shape[1], x_pad.shape[2]

    # TODO(synk): for very large H*W, add an output-row grid axis with a
    # halo'd manual DMA (pl.ANY + make_async_copy); current design keeps one
    # padded image per grid step, which bounds VMEM only for moderate images.

    kernel = _make_kernel(k, s, Ho, Wo, Cin, tn)
    flops = 2 * N * Ho * Wo * k * k * Cin * Cp
    bytes_accessed = (x_pad.size * 2 + w_taps.size * 2 + shift_p.size * 4
                      + N * Ho * Wo * Cp * 4)

    out = pl.pallas_call(
        kernel,
        out_shape=jax.ShapeDtypeStruct((N, Ho, Wo, Cp), jnp.float32),
        grid_spec=pltpu.PrefetchScalarGridSpec(
            num_scalar_prefetch=0,
            grid=(N, Cp // tn),
            in_specs=[
                pl.BlockSpec((1, Hp, Wp, Cin), lambda n, c: (n, 0, 0, 0)),
                pl.BlockSpec((k * k, Cin, tn), lambda n, c: (0, 0, c)),
                pl.BlockSpec((1, tn), lambda n, c: (0, c)),
            ],
            out_specs=pl.BlockSpec((1, Ho, Wo, tn), lambda n, c: (n, 0, 0, c)),
        ),
        compiler_params=pltpu.CompilerParams(
            dimension_semantics=("parallel", "parallel"),
            vmem_limit_bytes=48 * 1024 * 1024,
        ),
        cost_estimate=pl.CostEstimate(
            flops=flops, transcendentals=0, bytes_accessed=bytes_accessed),
    )(x_pad, w_taps, shift_p)

    out = out[..., :Cout]                                # drop lane padding
    return jnp.transpose(out, (0, 3, 1, 2))              # back to NCHW


# ---------------------------------------------------------------------------
# Reference (pure JAX, f32) for correctness check.
# ---------------------------------------------------------------------------
def conv_bn_act_ref(x_nchw, params, *, k, s, d=1, eps=1e-5):
    p = autopad(k, s, d)
    w = params["conv_weight"]
    gamma, beta = params["bn_weight"], params["bn_bias"]
    rmean, rvar = params["bn_running_mean"], params["bn_running_var"]
    y = lax.conv_general_dilated(
        x_nchw, w, window_strides=(s, s), padding=[(p, p), (p, p)],
        dimension_numbers=("NCHW", "OIHW", "NCHW"))
    scale = (gamma / jnp.sqrt(rvar + eps)).reshape(1, -1, 1, 1)
    shift = (beta - rmean * gamma / jnp.sqrt(rvar + eps)).reshape(1, -1, 1, 1)
    return jnp.maximum(y * scale + shift, 0.0)


if __name__ == "__main__":
    key = jax.random.PRNGKey(0)
    k_x, k_w, k_g, k_b, k_m, k_v = jax.random.split(key, 6)

    N, in_c, H, W = 2, 4, 16, 16
    out_c, ksz, stride = 8, 3, 1

    x = jax.random.normal(k_x, (N, in_c, H, W), dtype=jnp.float32)
    params = {
        "conv_weight": jax.random.normal(k_w, (out_c, in_c, ksz, ksz), jnp.float32) * 0.1,
        "bn_weight": jax.random.normal(k_g, (out_c,), jnp.float32) * 0.1 + 1.0,
        "bn_bias": jax.random.normal(k_b, (out_c,), jnp.float32) * 0.1,
        "bn_running_mean": jax.random.normal(k_m, (out_c,), jnp.float32) * 0.1,
        "bn_running_var": jnp.abs(jax.random.normal(k_v, (out_c,), jnp.float32)) * 0.1 + 1.0,
    }

    fwd = jax.jit(functools.partial(conv_bn_act, k=ksz, s=stride))
    y = fwd(x, params)
    jax.block_until_ready(y)

    y_ref = conv_bn_act_ref(x, params, k=ksz, s=stride)
    assert y.shape == (N, out_c, H, W), y.shape
    # bf16 MXU inputs (f32 accumulation) -> loosened tolerance vs f32 reference.
    assert jnp.allclose(y, y_ref, atol=2e-2, rtol=2e-2), "mismatch vs reference"

    print("KERNEL_OK")
</pallas_src>

<mosaic_0001>
module attributes {stable_mosaic.version = 11 : i64} {
  func.func @kernel(%arg0: i32, %arg1: i32, %arg2: memref<1x18x18x4xbf16, #tpu.memory_space<vmem>>, %arg3: memref<9x4x128xbf16, #tpu.memory_space<vmem>>, %arg4: memref<1x128xf32, #tpu.memory_space<vmem>>, %arg5: memref<1x16x16x128xf32, #tpu.memory_space<vmem>>) attributes {dimension_semantics = [#tpu.dimension_semantics<parallel>, #tpu.dimension_semantics<parallel>], iteration_bounds = array<i64: 2, 1>, scalar_prefetch = 0 : i64, scratch_operands = 0 : i64, tpu.core_type = #tpu.core_type<tc>, window_params = [{transform_indices = @transform_0, window_bounds = array<i64: 1, 18, 18, 4>}, {transform_indices = @transform_1, window_bounds = array<i64: 9, 4, 128>}, {transform_indices = @transform_2, window_bounds = array<i64: 1, 128>}, {transform_indices = @transform_3, window_bounds = array<i64: 1, 16, 16, 128>}]} {
    %cst = arith.constant 0.000000e+00 : f32
    %0 = vector.broadcast %cst : f32 to vector<256x128xf32>
    %c0 = arith.constant 0 : index
    %c0_0 = arith.constant 0 : index
    %c0_1 = arith.constant 0 : index
    %c0_2 = arith.constant 0 : index
    %1 = vector.load %arg2[%c0, %c0_0, %c0_1, %c0_2] : memref<1x18x18x4xbf16, #tpu.memory_space<vmem>>, vector<1x16x16x4xbf16>
    %2 = vector.shape_cast %1 : vector<1x16x16x4xbf16> to vector<16x16x4xbf16>
    %3 = vector.shape_cast %2 : vector<16x16x4xbf16> to vector<256x4xbf16>
    %c0_3 = arith.constant 0 : index
    %c0_4 = arith.constant 0 : index
    %c0_5 = arith.constant 0 : index
    %4 = vector.load %arg3[%c0_3, %c0_4, %c0_5] : memref<9x4x128xbf16, #tpu.memory_space<vmem>>, vector<1x4x128xbf16>
    %5 = vector.shape_cast %4 : vector<1x4x128xbf16> to vector<4x128xbf16>
    %cst_6 = arith.constant dense<0.000000e+00> : vector<256x128xf32>
    %6 = tpu.matmul %3, %5, %cst_6 {dimension_numbers = #tpu.dot_dimension_numbers<[1], [0], [0], [1], [0, 0, 1, 1], [], []>} : vector<256x4xbf16>, vector<4x128xbf16>, vector<256x128xf32> -> vector<256x128xf32>
    %7 = arith.addf %0, %6 : vector<256x128xf32>
    %c0_7 = arith.constant 0 : index
    %c0_8 = arith.constant 0 : index
    %c1 = arith.constant 1 : index
    %c0_9 = arith.constant 0 : index
    %8 = vector.load %arg2[%c0_7, %c0_8, %c1, %c0_9] : memref<1x18x18x4xbf16, #tpu.memory_space<vmem>>, vector<1x16x16x4xbf16>
    %9 = vector.shape_cast %8 : vector<1x16x16x4xbf16> to vector<16x16x4xbf16>
    %10 = vector.shape_cast %9 : vector<16x16x4xbf16> to vector<256x4xbf16>
    %c1_10 = arith.constant 1 : index
    %c0_11 = arith.constant 0 : index
    %c0_12 = arith.constant 0 : index
    %11 = vector.load %arg3[%c1_10, %c0_11, %c0_12] : memref<9x4x128xbf16, #tpu.memory_space<vmem>>, vector<1x4x128xbf16>
    %12 = vector.shape_cast %11 : vector<1x4x128xbf16> to vector<4x128xbf16>
    %cst_13 = arith.constant dense<0.000000e+00> : vector<256x128xf32>
    %13 = tpu.matmul %10, %12, %cst_13 {dimension_numbers = #tpu.dot_dimension_numbers<[1], [0], [0], [1], [0, 0, 1, 1], [], []>} : vector<256x4xbf16>, vector<4x128xbf16>, vector<256x128xf32> -> vector<256x128xf32>
    %14 = arith.addf %7, %13 : vector<256x128xf32>
    %c0_14 = arith.constant 0 : index
    %c0_15 = arith.constant 0 : index
    %c2 = arith.constant 2 : index
    %c0_16 = arith.constant 0 : index
    %15 = vector.load %arg2[%c0_14, %c0_15, %c2, %c0_16] : memref<1x18x18x4xbf16, #tpu.memory_space<vmem>>, vector<1x16x16x4xbf16>
    %16 = vector.shape_cast %15 : vector<1x16x16x4xbf16> to vector<16x16x4xbf16>
    %17 = vector.shape_cast %16 : vector<16x16x4xbf16> to vector<256x4xbf16>
    %c2_17 = arith.constant 2 : index
    %c0_18 = arith.constant 0 : index
    %c0_19 = arith.constant 0 : index
    %18 = vector.load %arg3[%c2_17, %c0_18, %c0_19] : memref<9x4x128xbf16, #tpu.memory_space<vmem>>, vector<1x4x128xbf16>
    %19 = vector.shape_cast %18 : vector<1x4x128xbf16> to vector<4x128xbf16>
    %cst_20 = arith.constant dense<0.000000e+00> : vector<256x128xf32>
    %20 = tpu.matmul %17, %19, %cst_20 {dimension_numbers = #tpu.dot_dimension_numbers<[1], [0], [0], [1], [0, 0, 1, 1], [], []>} : vector<256x4xbf16>, vector<4x128xbf16>, vector<256x128xf32> -> vector<256x128xf32>
    %21 = arith.addf %14, %20 : vector<256x128xf32>
    %c0_21 = arith.constant 0 : index
    %c1_22 = arith.constant 1 : index
    %c0_23 = arith.constant 0 : index
    %c0_24 = arith.constant 0 : index
    %22 = vector.load %arg2[%c0_21, %c1_22, %c0_23, %c0_24] : memref<1x18x18x4xbf16, #tpu.memory_space<vmem>>, vector<1x16x16x4xbf16>
    %23 = vector.shape_cast %22 : vector<1x16x16x4xbf16> to vector<16x16x4xbf16>
    %24 = vector.shape_cast %23 : vector<16x16x4xbf16> to vector<256x4xbf16>
    %c3 = arith.constant 3 : index
    %c0_25 = arith.constant 0 : index
    %c0_26 = arith.constant 0 : index
    %25 = vector.load %arg3[%c3, %c0_25, %c0_26] : memref<9x4x128xbf16, #tpu.memory_space<vmem>>, vector<1x4x128xbf16>
    %26 = vector.shape_cast %25 : vector<1x4x128xbf16> to vector<4x128xbf16>
    %cst_27 = arith.constant dense<0.000000e+00> : vector<256x128xf32>
    %27 = tpu.matmul %24, %26, %cst_27 {dimension_numbers = #tpu.dot_dimension_numbers<[1], [0], [0], [1], [0, 0, 1, 1], [], []>} : vector<256x4xbf16>, vector<4x128xbf16>, vector<256x128xf32> -> vector<256x128xf32>
    %28 = arith.addf %21, %27 : vector<256x128xf32>
    %c0_28 = arith.constant 0 : index
    %c1_29 = arith.constant 1 : index
    %c1_30 = arith.constant 1 : index
    %c0_31 = arith.constant 0 : index
    %29 = vector.load %arg2[%c0_28, %c1_29, %c1_30, %c0_31] : memref<1x18x18x4xbf16, #tpu.memory_space<vmem>>, vector<1x16x16x4xbf16>
    %30 = vector.shape_cast %29 : vector<1x16x16x4xbf16> to vector<16x16x4xbf16>
    %31 = vector.shape_cast %30 : vector<16x16x4xbf16> to vector<256x4xbf16>
    %c4 = arith.constant 4 : index
    %c0_32 = arith.constant 0 : index
    %c0_33 = arith.constant 0 : index
    %32 = vector.load %arg3[%c4, %c0_32, %c0_33] : memref<9x4x128xbf16, #tpu.memory_space<vmem>>, vector<1x4x128xbf16>
    %33 = vector.shape_cast %32 : vector<1x4x128xbf16> to vector<4x128xbf16>
    %cst_34 = arith.constant dense<0.000000e+00> : vector<256x128xf32>
    %34 = tpu.matmul %31, %33, %cst_34 {dimension_numbers = #tpu.dot_dimension_numbers<[1], [0], [0], [1], [0, 0, 1, 1], [], []>} : vector<256x4xbf16>, vector<4x128xbf16>, vector<256x128xf32> -> vector<256x128xf32>
    %35 = arith.addf %28, %34 : vector<256x128xf32>
    %c0_35 = arith.constant 0 : index
    %c1_36 = arith.constant 1 : index
    %c2_37 = arith.constant 2 : index
    %c0_38 = arith.constant 0 : index
    %36 = vector.load %arg2[%c0_35, %c1_36, %c2_37, %c0_38] : memref<1x18x18x4xbf16, #tpu.memory_space<vmem>>, vector<1x16x16x4xbf16>
    %37 = vector.shape_cast %36 : vector<1x16x16x4xbf16> to vector<16x16x4xbf16>
    %38 = vector.shape_cast %37 : vector<16x16x4xbf16> to vector<256x4xbf16>
    %c5 = arith.constant 5 : index
    %c0_39 = arith.constant 0 : index
    %c0_40 = arith.constant 0 : index
    %39 = vector.load %arg3[%c5, %c0_39, %c0_40] : memref<9x4x128xbf16, #tpu.memory_space<vmem>>, vector<1x4x128xbf16>
    %40 = vector.shape_cast %39 : vector<1x4x128xbf16> to vector<4x128xbf16>
    %cst_41 = arith.constant dense<0.000000e+00> : vector<256x128xf32>
    %41 = tpu.matmul %38, %40, %cst_41 {dimension_numbers = #tpu.dot_dimension_numbers<[1], [0], [0], [1], [0, 0, 1, 1], [], []>} : vector<256x4xbf16>, vector<4x128xbf16>, vector<256x128xf32> -> vector<256x128xf32>
    %42 = arith.addf %35, %41 : vector<256x128xf32>
    %c0_42 = arith.constant 0 : index
    %c2_43 = arith.constant 2 : index
    %c0_44 = arith.constant 0 : index
    %c0_45 = arith.constant 0 : index
    %43 = vector.load %arg2[%c0_42, %c2_43, %c0_44, %c0_45] : memref<1x18x18x4xbf16, #tpu.memory_space<vmem>>, vector<1x16x16x4xbf16>
    %44 = vector.shape_cast %43 : vector<1x16x16x4xbf16> to vector<16x16x4xbf16>
    %45 = vector.shape_cast %44 : vector<16x16x4xbf16> to vector<256x4xbf16>
    %c6 = arith.constant 6 : index
    %c0_46 = arith.constant 0 : index
    %c0_47 = arith.constant 0 : index
    %46 = vector.load %arg3[%c6, %c0_46, %c0_47] : memref<9x4x128xbf16, #tpu.memory_space<vmem>>, vector<1x4x128xbf16>
    %47 = vector.shape_cast %46 : vector<1x4x128xbf16> to vector<4x128xbf16>
    %cst_48 = arith.constant dense<0.000000e+00> : vector<256x128xf32>
    %48 = tpu.matmul %45, %47, %cst_48 {dimension_numbers = #tpu.dot_dimension_numbers<[1], [0], [0], [1], [0, 0, 1, 1], [], []>} : vector<256x4xbf16>, vector<4x128xbf16>, vector<256x128xf32> -> vector<256x128xf32>
    %49 = arith.addf %42, %48 : vector<256x128xf32>
    %c0_49 = arith.constant 0 : index
    %c2_50 = arith.constant 2 : index
    %c1_51 = arith.constant 1 : index
    %c0_52 = arith.constant 0 : index
    %50 = vector.load %arg2[%c0_49, %c2_50, %c1_51, %c0_52] : memref<1x18x18x4xbf16, #tpu.memory_space<vmem>>, vector<1x16x16x4xbf16>
    %51 = vector.shape_cast %50 : vector<1x16x16x4xbf16> to vector<16x16x4xbf16>
    %52 = vector.shape_cast %51 : vector<16x16x4xbf16> to vector<256x4xbf16>
    %c7 = arith.constant 7 : index
    %c0_53 = arith.constant 0 : index
    %c0_54 = arith.constant 0 : index
    %53 = vector.load %arg3[%c7, %c0_53, %c0_54] : memref<9x4x128xbf16, #tpu.memory_space<vmem>>, vector<1x4x128xbf16>
    %54 = vector.shape_cast %53 : vector<1x4x128xbf16> to vector<4x128xbf16>
    %cst_55 = arith.constant dense<0.000000e+00> : vector<256x128xf32>
    %55 = tpu.matmul %52, %54, %cst_55 {dimension_numbers = #tpu.dot_dimension_numbers<[1], [0], [0], [1], [0, 0, 1, 1], [], []>} : vector<256x4xbf16>, vector<4x128xbf16>, vector<256x128xf32> -> vector<256x128xf32>
    %56 = arith.addf %49, %55 : vector<256x128xf32>
    %c0_56 = arith.constant 0 : index
    %c2_57 = arith.constant 2 : index
    %c2_58 = arith.constant 2 : index
    %c0_59 = arith.constant 0 : index
    %57 = vector.load %arg2[%c0_56, %c2_57, %c2_58, %c0_59] : memref<1x18x18x4xbf16, #tpu.memory_space<vmem>>, vector<1x16x16x4xbf16>
    %58 = vector.shape_cast %57 : vector<1x16x16x4xbf16> to vector<16x16x4xbf16>
    %59 = vector.shape_cast %58 : vector<16x16x4xbf16> to vector<256x4xbf16>
    %c8 = arith.constant 8 : index
    %c0_60 = arith.constant 0 : index
    %c0_61 = arith.constant 0 : index
    %60 = vector.load %arg3[%c8, %c0_60, %c0_61] : memref<9x4x128xbf16, #tpu.memory_space<vmem>>, vector<1x4x128xbf16>
    %61 = vector.shape_cast %60 : vector<1x4x128xbf16> to vector<4x128xbf16>
    %cst_62 = arith.constant dense<0.000000e+00> : vector<256x128xf32>
    %62 = tpu.matmul %59, %61, %cst_62 {dimension_numbers = #tpu.dot_dimension_numbers<[1], [0], [0], [1], [0, 0, 1, 1], [], []>} : vector<256x4xbf16>, vector<4x128xbf16>, vector<256x128xf32> -> vector<256x128xf32>
    %63 = arith.addf %56, %62 : vector<256x128xf32>
    %c0_63 = arith.constant 0 : index
    %c0_64 = arith.constant 0 : index
    %64 = vector.load %arg4[%c0_63, %c0_64] : memref<1x128xf32, #tpu.memory_space<vmem>>, vector<1x128xf32>
    %65 = vector.broadcast %64 : vector<1x128xf32> to vector<256x128xf32>
    %66 = arith.addf %63, %65 : vector<256x128xf32>
    %cst_65 = arith.constant 0.000000e+00 : f32
    %67 = vector.broadcast %cst_65 : f32 to vector<256x128xf32>
    %68 = arith.maximumf %66, %67 : vector<256x128xf32>
    %69 = vector.shape_cast %68 : vector<256x128xf32> to vector<1x16x16x128xf32>
    %c0_66 = arith.constant 0 : index
    %c0_67 = arith.constant 0 : index
    %c0_68 = arith.constant 0 : index
    %c0_69 = arith.constant 0 : index
    %70 = vector.load %arg5[%c0_66, %c0_67, %c0_68, %c0_69] : memref<1x16x16x128xf32, #tpu.memory_space<vmem>>, vector<1x16x16x128xf32>
    tpu.vector_store %arg5[%c0_66, %c0_67, %c0_68, %c0_69], %69 {strides = array<i32>} : memref<1x16x16x128xf32, #tpu.memory_space<vmem>>, vector<1x16x16x128xf32>,
    return
  }
  func.func @transform_0(%arg0: i32, %arg1: i32) -> (i32, i32, i32, i32) {
    %c0_i32 = arith.constant 0 : i32
    %c0_i32_0 = arith.constant 0 : i32
    %c0_i32_1 = arith.constant 0 : i32
    %c0_i32_2 = arith.constant 0 : i32
    return %arg0, %c0_i32, %c0_i32_0, %c0_i32_1 : i32, i32, i32, i32
  }
  func.func @transform_1(%arg0: i32, %arg1: i32) -> (i32, i32, i32) {
    %c0_i32 = arith.constant 0 : i32
    %c0_i32_0 = arith.constant 0 : i32
    %c0_i32_1 = arith.constant 0 : i32
    return %c0_i32, %c0_i32_0, %arg1 : i32, i32, i32
  }
  func.func @transform_2(%arg0: i32, %arg1: i32) -> (i32, i32) {
    %c0_i32 = arith.constant 0 : i32
    %c0_i32_0 = arith.constant 0 : i32
    return %c0_i32, %arg1 : i32, i32
  }
  func.func @transform_3(%arg0: i32, %arg1: i32) -> (i32, i32, i32, i32) {
    %c0_i32 = arith.constant 0 : i32
    %c0_i32_0 = arith.constant 0 : i32
    %c0_i32_1 = arith.constant 0 : i32
    return %arg0, %c0_i32, %c0_i32_0, %arg1 : i32, i32, i32, i32
  }
}

</mosaic_0001>

<bundles_post_ra>
// kernel: conv_bn_act.1
= control target key start
LH: loop header
LB: loop body
LE: loop exit
PB: predicated region body
PF: predicated region fallthrough
CT: control target
= control target key end

     0   :  { %s5108_s12 = smov 0   ;;  %s5110_s13 = smov 0   ;;  %s6525_s0 = inlined_call_operand.vmem [shape: bf16[2,18,18,4], index: 0, kind: input, shape index: {}]   ;;  %s6526_s1 = inlined_call_operand.vmem [shape: bf16[9,4,128], index: 1, kind: input, shape index: {}]   ;;  %s6527_s2 = inlined_call_operand.vmem [shape: f32[1,128], index: 2, kind: input, shape index: {}]   ;;  %s6528_s3 = inlined_call_operand.vmem [shape: f32[2,16,16,128], index: 3, kind: output, shape index: {}]  }
   0x1   :  { %s5112_s14 = smov 0  }
   0x2 LB: > { %s25_s15 = sadd.s32 1, %s5082_s13  ;;  %p4345_p0 = scmp.ge.s32.totalorder %s5086_s14, 1  ;;  %s5086_s14 = sphi %s5112_s14, %s13_s14   ;;  %s5082_s13 = sphi %s5110_s13, %s6540_s13   ;;  %s5078_s12 = sphi %s5108_s12, %s6539_s12  }
   0x3   : > { %p27_p1 = scmp.ge.s32.totalorder %s25_s15, 2  ;;  %p168_p2 = scmp.lt.s32.totalorder %s5086_s14, 3 }
   0x5   : > { %s6542_s15 = smov (%p27_p1, %s25_s15), 0  ;;  %p169_p3 = pnand %p4345_p0, %p168_p2 }
   0x7   : > { %172 = sbr.rel (%p169_p3) target bundleno = 759 (0x2f7), region = 32 }
   0xc   : > { %v4349_v0 = vld [vmem:[%s6526_s1 + $0x2] sm:$0x3]  ;;  %vm758_vm0 = vcmask 1041408   ;;  %p202_p4 = scmp.lt.s32.totalorder %s5078_s12, 1  ;;  %v4462_v2 = vld [vmem:[%s6526_s1 + $0x4] sm:$0x3] }
   0xd   : > { %v760_v1 = vsel %vm758_vm0, %v4349_v0, 0  ;;  %v1333_v3 = vsel %vm758_vm0, %v4462_v2, 0  ;;  %v4511_v4 = vld [vmem:[%s6526_s1 + $0x6] sm:$0x3]  ;;  %v255_v5 = vld [vmem:[%s6526_s1] sm:$0x3] }
   0xe   : > { %4984 = vmatpush.bf16.msra.mxu1 %v760_v1  ;;  %4985 = vmatpush.bf16.msra.mxu2 %v760_v1  ;;  %s6544_s12 = smov (!%p202_p4, %s5078_s12), 1  ;;  %v4640_v6 = vld [vmem:[%s6526_s1 + $0x8] sm:$0x3]  ;;  %v1620_v7 = vsel %vm758_vm0, %v4511_v4, 0  ;;  %v980_v8 = vsel %vm758_vm0, %v255_v5, 0  ;;  %vm709_vm4 = vcmask 31744  }
   0xf   : > { %4986 = vmatpush.bf16.msra.mxu3 %v760_v1  ;;  %769 = vmatpush.bf16.msra.mxu0 %v760_v1  ;;  %s4987_s26 = smul.u32 216, %s6544_s12  ;;  %v2274_v9 = vsel %vm758_vm0, %v4640_v6, 0  ;;  %vm272_vm1 = vsmask.f32 3328  ;;  %vm273_vm2 = vsmask.f32 7440 }
  0x10   : > { %vm5164_vm3 = vmor %vm272_vm1, %vm273_vm2  ;;  %vm1119_vm5 = vcmask 1042432   ;;  %vm1120_vm6 = vcmask 1046532   ;;  %s4935_s17 = sshll.u32 %s6544_s12, 8 }
  0x11   : > { %s5152_s29 = scalar_lea.vmem %s6525_s0, %s4987_s26  ;;  %vm5338_vm7 = vmor %vm1119_vm5, %vm1120_vm6  ;;  %s6214_s19 = scalar_lea.vmem %s6528_s3, %s4935_s17 }
  0x12   : > { %1342 = vmatpush.bf16.msrb.mxu2 %v1333_v3  ;;  %989 = vmatpush.bf16.msrb.mxu1 %v980_v8  ;;  %v231_v10 = vld [vmem:[%s5152_s29 + $0x30] sm:$0xf]  ;;  %v232_v11 = vld [vmem:[%s5152_s29 + $0x34] sm:$0xf]  ;;  %v260_v12 = vld [vmem:[%s5152_s29 + $0x38] sm:$0x1] }
  0x13   : > { %1629 = vmatpush.bf16.msrb.mxu3 %v1620_v7  ;;  %2283 = vmatpush.bf16.msrb.mxu0 %v2274_v9  ;;  %v372_v13 = vshrl.u32 %v231_v10, 16  ;;  %v375_v14 = vshll.u32 %v231_v10, 16  ;;  %v381_v15 = vshll.u32 %v232_v11, 16  ;;  %v385_v16 = vshrl.u32 %v232_v11, 16  ;;  %v239_v17 = vld [vmem:[%s5152_s29 + $0x60] sm:$0xf] }
  0x14   : > { %v391_v18 = vshll.u32 %v260_v12, 16  ;;  %v240_v19 = vld [vmem:[%s5152_s29 + $0x64] sm:$0xf]  ;;  %v264_v20 = vld [vmem:[%s5152_s29 + $0x68] sm:$0x1]  ;;  %v468_v21 = vshrl.u32 %v239_v17, 16 }
  0x15   : > { %v374_v22 = vrot.slane %v372_v13, 4  ;;  %v377_v23 = vrot.slane %v375_v14, 5  ;;  %v383_v24 = vrot.slane %v381_v15, 5  ;;  %v387_v25 = vrot.slane %v385_v16, 4  ;;  %v247_v26 = vld [vmem:[%s5152_s29 + $0x90] sm:$0xf] }
  0x16   : > { %v393_v27 = vrot.slane %v391_v18, 5  ;;  %v470_v28 = vrot.slane %v468_v21, 4  ;;  %v471_v29 = vshll.u32 %v239_v17, 16  ;;  %v477_v30 = vshll.u32 %v240_v19, 16  ;;  %v248_v35 = vld [vmem:[%s5152_s29 + $0x94] sm:$0xf] }
  0x17   : > { %v378_v31 = vor.u32 %v377_v23, %v374_v22  ;;  %v388_v32 = vor.u32 %v387_v25, %v383_v24  ;;  %v481_v33 = vshrl.u32 %v240_v19, 16  ;;  %v487_v34 = vshll.u32 %v264_v20, 16  ;;  %v268_v45 = vld [vmem:[%s5152_s29 + $0x98] sm:$0x1]  ;;  %v223_v61 = vld [vmem:[%s5152_s29] sm:$0xf] }
  0x18   : > { %v473_v37 = vrot.slane %v471_v29, 5  ;;  %v479_v38 = vrot.slane %v477_v30, 5  ;;  %v564_v39 = vshrl.u32 %v247_v26, 16  ;;  %v567_v47 = vshll.u32 %v247_v26, 16  ;;  %v5177_v1 = vld [vmem:[%s5152_s29 + $0x4] sm:$0xf] }
  0x19   : > { %v379_v40 = vrot.slane %v378_v31, 4  ;;  %v389_v41 = vrot.slane %v388_v32, 4  ;;  %v483_v42 = vrot.slane %v481_v33, 4  ;;  %v489_v43 = vrot.slane %v487_v34, 5  ;;  %v5180_v2 = vld [vmem:[%s5152_s29 + $0x8] sm:$0x1] }
  0x1a   : > { %v474_v44 = vor.u32 %v473_v37, %v470_v28  ;;  %v566_v46 = vrot.slane %v564_v39, 4  ;;  %v573_v48 = vshll.u32 %v248_v35, 16  ;;  %v577_v52 = vshrl.u32 %v248_v35, 16  ;;  %v233_v19 = vld [vmem:[%s5152_s29 + $0x3c] sm:$0xf] }
  0x1b   : > { %v384_v49 = vsel %vm5164_vm3, %v379_v40, %v383_v24  ;;  %v394_v50 = vsel %vm5164_vm3, %v389_v41, %v393_v27  ;;  %v484_v51 = vor.u32 %v483_v42, %v479_v38  ;;  %v569_v56 = vrot.slane %v567_v47, 5  ;;  %v5192_v20 = vld [vmem:[%s5152_s29 + $0x40] sm:$0xf]  ;;  %v5197_v25 = vld [vmem:[%s5152_s29 + $0x44] sm:$0x1] }
  0x1c   : > { %v669_v53 = vunpack.c.l.b16 %v384_v49  ;;  %v670_v54 = vunpack.c.l.b16 %v394_v50  ;;  %v475_v55 = vrot.slane %v474_v44, 4  ;;  %v575_v58 = vrot.slane %v573_v48, 5  ;;  %v241_v33 = vld [vmem:[%s5152_s29 + $0x6c] sm:$0xf]  ;;  %v265_v47 = vld [vmem:[%s5152_s29 + $0x74] sm:$0x1] }
  0x1d   : > { %v485_v57 = vrot.slane %v484_v51, 4  ;;  %v579_v59 = vrot.slane %v577_v52, 4  ;;  %v583_v60 = vshll.u32 %v268_v45, 16  ;;  %v570_v0 = vor.u32 %v569_v56, %v566_v46 }
  0x1e   : > { %v697_v62 = vpack.c.b16 %v670_v54, %v669_v53  ;;  %v480_v63 = vsel %vm5164_vm3, %v475_v55, %v479_v38  ;;  %v276_v9 = vshrl.u32 %v223_v61, 16  ;;  %v279_v10 = vshll.u32 %v223_v61, 16  ;;  %v249_v61 = vld [vmem:[%s5152_s29 + $0x9c] sm:$0xf] }
  0x1f   : > { %v490_v3 = vsel %vm5164_vm3, %v485_v57, %v489_v43  ;;  %v677_v4 = vunpack.c.l.b16 %v480_v63  ;;  %v580_v5 = vor.u32 %v579_v59, %v575_v58  ;;  %v585_v6 = vrot.slane %v583_v60, 5  ;;  %v242_v43 = vld [vmem:[%s5152_s29 + $0x70] sm:$0xf] }
  0x20   : > { %4354 = vmatmul.msk.bf16.vlgmr.msra.gmra.mxu1 %vm709_vm4, %v697_v62  ;;  %v678_v7 = vunpack.c.l.b16 %v490_v3  ;;  %v571_v8 = vrot.slane %v570_v0, 4  ;;  %v285_v12 = vshll.u32 %v5177_v1, 16  ;;  %v289_v13 = vshrl.u32 %v5177_v1, 16  ;;  %v250_v3 = vld [vmem:[%s5152_s29 + $0xa0] sm:$0xf] }
  0x21   : > { %v581_v11 = vrot.slane %v580_v5, 4  ;;  %v295_v14 = vshll.u32 %v5180_v2, 16  ;;  %v278_v17 = vrot.slane %v276_v9, 4  ;;  %v281_v18 = vrot.slane %v279_v10, 5 }
  0x22   : > { %v701_v15 = vpack.c.b16 %v678_v7, %v677_v4  ;;  %v576_v16 = vsel %vm5164_vm3, %v571_v8, %v575_v58  ;;  %v287_v23 = vrot.slane %v285_v12, 5  ;;  %v291_v24 = vrot.slane %v289_v13, 4  ;;  %v269_v8 = vld [vmem:[%s5152_s29 + $0xa4] sm:$0x1] }
  0x23   : > { %v586_v21 = vsel %vm5164_vm3, %v581_v11, %v585_v6  ;;  %v685_v22 = vunpack.c.l.b16 %v576_v16  ;;  %v282_v27 = vor.u32 %v281_v18, %v278_v17  ;;  %v297_v28 = vrot.slane %v295_v14, 5 }
  0x24   : > { %4358 = vmatmul.msk.bf16.vlgmr.msra.gmra.mxu2 %vm709_vm4, %v701_v15  ;;  %v686_v26 = vunpack.c.l.b16 %v586_v21  ;;  %v292_v29 = vor.u32 %v291_v24, %v287_v23  ;;  %v396_v30 = vshrl.u32 %v233_v19, 16  ;;  %v399_v31 = vshll.u32 %v233_v19, 16 }
  0x25   : > { %v405_v32 = vshll.u32 %v5192_v20, 16  ;;  %v283_v35 = vrot.slane %v282_v27, 4  ;;  %v409_v37 = vshrl.u32 %v5192_v20, 16  ;;  %v415_v38 = vshll.u32 %v5197_v25, 16 }
  0x26   : > { %v705_v34 = vpack.c.b16 %v686_v26, %v685_v22  ;;  %v293_v39 = vrot.slane %v292_v29, 4  ;;  %v398_v40 = vrot.slane %v396_v30, 4  ;;  %v401_v41 = vrot.slane %v399_v31, 5  ;;  %v225_v22 = vld [vmem:[%s5152_s29 + $0xc] sm:$0xf] }
  0x27   : > { %v407_v42 = vrot.slane %v405_v32, 5  ;;  %v288_v44 = vsel %vm5164_vm3, %v283_v35, %v287_v23  ;;  %v411_v45 = vrot.slane %v409_v37, 4  ;;  %v417_v46 = vrot.slane %v415_v38, 5  ;;  %v5226_v32 = vld [vmem:[%s5152_s29 + $0x14] sm:$0x1] }
  0x28   : > { %4362 = vmatmul.msk.bf16.vlgmr.msra.gmra.mxu3 %vm709_vm4, %v705_v34  ;;  %v492_v48 = vshrl.u32 %v241_v33, 16  ;;  %v298_v49 = vsel %vm5164_vm3, %v293_v39, %v297_v28  ;;  %v661_v50 = vunpack.c.l.b16 %v288_v44  ;;  %v402_v51 = vor.u32 %v401_v41, %v398_v40  ;;  %v5223_v28 = vld [vmem:[%s5152_s29 + $0x10] sm:$0xf] }
  0x29   : > { %v495_v52 = vshll.u32 %v241_v33, 16  ;;  %v662_v53 = vunpack.c.l.b16 %v298_v49  ;;  %v412_v54 = vor.u32 %v411_v45, %v407_v42  ;;  %v501_v56 = vshll.u32 %v242_v43, 16 }
  0x2a   : > { %v494_v55 = vrot.slane %v492_v48, 4  ;;  %v403_v57 = vrot.slane %v402_v51, 4  ;;  %v505_v59 = vshrl.u32 %v242_v43, 16  ;;  %v511_v60 = vshll.u32 %v265_v47, 16  ;;  %v5236_v47 = vld [vmem:[%s5152_s29 + $0x4c] sm:$0xf] }
  0x2b   : > { %v497_v58 = vrot.slane %v495_v52, 5  ;;  %v693_v62 = vpack.c.b16 %v662_v53, %v661_v50  ;;  %v413_v63 = vrot.slane %v412_v54, 4  ;;  %v503_v0 = vrot.slane %v501_v56, 5  ;;  %v5241_v56 = vld [vmem:[%s5152_s29 + $0x50] sm:$0x1] }
  0x2c   : > { %v408_v4 = vsel %vm5164_vm3, %v403_v57, %v407_v42  ;;  %v507_v6 = vrot.slane %v505_v59, 4  ;;  %v513_v7 = vrot.slane %v511_v60, 5  ;;  %v588_v11 = vshrl.u32 %v249_v61, 16  ;;  %v235_v42 = vld [vmem:[%s5152_s29 + $0x48] sm:$0xf] }
  0x2d   : > { %v498_v5 = vor.u32 %v497_v58, %v494_v55  ;;  %4350 = vmatmul.msk.bf16.vlgmr.msra.gmra.mxu0 %vm709_vm4, %v693_v62  ;;  %v418_v9 = vsel %vm5164_vm3, %v413_v63, %v417_v46  ;;  %v671_v10 = vunpack.c.l.b16 %v408_v4  ;;  %v591_v12 = vshll.u32 %v249_v61, 16 }
  0x2e   : > { %v672_v13 = vunpack.c.l.b16 %v418_v9  ;;  %v508_v15 = vor.u32 %v507_v6, %v503_v0  ;;  %v597_v16 = vshll.u32 %v250_v3, 16  ;;  %v590_v17 = vrot.slane %v588_v11, 4 }
  0x2f   : > { %v499_v14 = vrot.slane %v498_v5, 4  ;;  %v593_v18 = vrot.slane %v591_v12, 5  ;;  %v601_v19 = vshrl.u32 %v250_v3, 16  ;;  %v607_v21 = vshll.u32 %v269_v8, 16  ;;  %v243_v3 = vld [vmem:[%s5152_s29 + $0x78] sm:$0xf] }
  0x30   : > { %v698_v23 = vpack.c.b16 %v672_v13, %v671_v10  ;;  %v509_v26 = vrot.slane %v508_v15, 4  ;;  %v599_v27 = vrot.slane %v597_v16, 5  ;;  %v300_v35 = vshrl.u32 %v225_v22, 16  ;;  %v244_v8 = vld [vmem:[%s5152_s29 + $0x7c] sm:$0xf] }
  0x31   : > { %v504_v24 = vsel %vm5164_vm3, %v499_v14, %v503_v0  ;;  %v594_v30 = vor.u32 %v593_v18, %v590_v17  ;;  %v603_v31 = vrot.slane %v601_v19, 4  ;;  %v609_v34 = vrot.slane %v607_v21, 5  ;;  %v266_v16 = vld [vmem:[%s5152_s29 + $0x80] sm:$0x1] }
  0x32   : > { %v679_v29 = vunpack.c.l.b16 %v504_v24  ;;  %4355 = vmatmul.msk.bf16.gmra.mxu1 %vm709_vm4, %v698_v23  ;;  %v514_v33 = vsel %vm5164_vm3, %v509_v26, %v513_v7  ;;  %v303_v37 = vshll.u32 %v225_v22, 16  ;;  %v309_v41 = vshll.u32 %v5223_v28, 16 }
  0x33   : > { %v680_v38 = vunpack.c.l.b16 %v514_v33  ;;  %v595_v39 = vrot.slane %v594_v30, 4  ;;  %v604_v40 = vor.u32 %v603_v31, %v599_v27  ;;  %v302_v43 = vrot.slane %v300_v35, 4 }
  0x34   : > { %v305_v44 = vrot.slane %v303_v37, 5  ;;  %v313_v45 = vshrl.u32 %v5223_v28, 16  ;;  %v319_v46 = vshll.u32 %v5226_v32, 16  ;;  %v311_v51 = vrot.slane %v309_v41, 5 }
  0x35   : > { %v702_v48 = vpack.c.b16 %v680_v38, %v679_v29  ;;  %v600_v49 = vsel %vm5164_vm3, %v595_v39, %v599_v27  ;;  %v605_v50 = vrot.slane %v604_v40, 4  ;;  %v420_v58 = vshrl.u32 %v235_v42, 16  ;;  %v252_v39 = vld [vmem:[%s5152_s29 + $0xac] sm:$0xf]  ;;  %v270_v40 = vld [vmem:[%s5152_s29 + $0xb0] sm:$0x1] }
  0x36   : > { %v687_v52 = vunpack.c.l.b16 %v600_v49  ;;  %v306_v53 = vor.u32 %v305_v44, %v302_v43  ;;  %v315_v54 = vrot.slane %v313_v45, 4  ;;  %v321_v55 = vrot.slane %v319_v46, 5 }
  0x37   : > { %4359 = vmatmul.msk.bf16.gmra.mxu2 %vm709_vm4, %v702_v48  ;;  %v610_v57 = vsel %vm5164_vm3, %v605_v50, %v609_v34  ;;  %v423_v59 = vshll.u32 %v235_v42, 16  ;;  %v429_v60 = vshll.u32 %v5236_v47, 16  ;;  %v433_v0 = vshrl.u32 %v5236_v47, 16  ;;  %v251_v34 = vld [vmem:[%s5152_s29 + $0xa8] sm:$0xf] }
  0x38   : > { %v688_v61 = vunpack.c.l.b16 %v610_v57  ;;  %v307_v62 = vrot.slane %v306_v53, 4  ;;  %v316_v63 = vor.u32 %v315_v54, %v311_v51  ;;  %v422_v4 = vrot.slane %v420_v58, 4 }
  0x39   : > { %v425_v5 = vrot.slane %v423_v59, 5  ;;  %v431_v6 = vrot.slane %v429_v60, 5  ;;  %v439_v7 = vshll.u32 %v5241_v56, 16  ;;  %v435_v12 = vrot.slane %v433_v0, 4  ;;  %v227_v59 = vld [vmem:[%s5152_s29 + $0x18] sm:$0xf] }
  0x3a   : > { %v706_v9 = vpack.c.b16 %v688_v61, %v687_v52  ;;  %v312_v10 = vsel %vm5164_vm3, %v307_v62, %v311_v51  ;;  %v317_v11 = vrot.slane %v316_v63, 4  ;;  %v516_v17 = vshrl.u32 %v243_v3, 16  ;;  %v5269_v63 = vld [vmem:[%s5152_s29 + $0x1c] sm:$0xf]  ;;  %v5272_v0 = vld [vmem:[%s5152_s29 + $0x20] sm:$0x1] }
  0x3b   : > { %v663_v13 = vunpack.c.l.b16 %v312_v10  ;;  %v426_v14 = vor.u32 %v425_v5, %v422_v4  ;;  %v441_v15 = vrot.slane %v439_v7, 5  ;;  %v436_v19 = vor.u32 %v435_v12, %v431_v6 }
  0x3c   : > { %4363 = vmatmul.msk.bf16.gmra.mxu3 %vm709_vm4, %v706_v9  ;;  %v322_v18 = vsel %vm5164_vm3, %v317_v11, %v321_v55  ;;  %v519_v21 = vshll.u32 %v243_v3, 16  ;;  %v525_v22 = vshll.u32 %v244_v8, 16  ;;  %v518_v26 = vrot.slane %v516_v17, 4 }
  0x3d   : > { %v664_v23 = vunpack.c.l.b16 %v322_v18  ;;  %v427_v24 = vrot.slane %v426_v14, 4  ;;  %v529_v27 = vshrl.u32 %v244_v8, 16  ;;  %v437_v29 = vrot.slane %v436_v19, 4 }
  0x3e   : > { %v521_v30 = vrot.slane %v519_v21, 5  ;;  %v527_v31 = vrot.slane %v525_v22, 5  ;;  %v535_v33 = vshll.u32 %v266_v16, 16  ;;  %v612_v48 = vshrl.u32 %v251_v34, 16  ;;  %v5282_v21 = vld [vmem:[%s5152_s29 + $0x58] sm:$0xf] }
  0x3f   : > { %v694_v35 = vpack.c.b16 %v664_v23, %v663_v13  ;;  %v432_v37 = vsel %vm5164_vm3, %v427_v24, %v431_v6  ;;  %v531_v38 = vrot.slane %v529_v27, 4  ;;  %v442_v41 = vsel %vm5164_vm3, %v437_v29, %v441_v15  ;;  %v237_v15 = vld [vmem:[%s5152_s29 + $0x54] sm:$0xf]  ;;  %v5287_v27 = vld [vmem:[%s5152_s29 + $0x5c] sm:$0x1] }
  0x40   : > { %v673_v42 = vunpack.c.l.b16 %v432_v37  ;;  %v522_v43 = vor.u32 %v521_v30, %v518_v26  ;;  %v537_v44 = vrot.slane %v535_v33, 5  ;;  %v674_v45 = vunpack.c.l.b16 %v442_v41 }
  0x41   : > { %4351 = vmatmul.msk.bf16.gmra.mxu0 %vm709_vm4, %v694_v35  ;;  %v532_v46 = vor.u32 %v531_v38, %v527_v31  ;;  %v615_v49 = vshll.u32 %v251_v34, 16  ;;  %v621_v51 = vshll.u32 %v252_v39, 16  ;;  %v625_v52 = vshrl.u32 %v252_v39, 16  ;;  %v245_v39 = vld [vmem:[%s5152_s29 + $0x84] sm:$0xf] }
  0x42   : > { %v523_v50 = vrot.slane %v522_v43, 4  ;;  %v631_v53 = vshll.u32 %v270_v40, 16  ;;  %v699_v54 = vpack.c.b16 %v674_v45, %v673_v42  ;;  %v614_v57 = vrot.slane %v612_v48, 4 }
  0x43   : > { %v533_v55 = vrot.slane %v532_v46, 4  ;;  %v617_v58 = vrot.slane %v615_v49, 5  ;;  %v623_v61 = vrot.slane %v621_v51, 5  ;;  %v627_v62 = vrot.slane %v625_v52, 4  ;;  %v246_v49 = vld [vmem:[%s5152_s29 + $0x88] sm:$0xf] }
  0x44   : > { %v528_v60 = vsel %vm5164_vm3, %v523_v50, %v527_v31  ;;  %4356 = vmatmul.msk.bf16.gmra.mxu1 %vm709_vm4, %v699_v54  ;;  %v633_v6 = vrot.slane %v631_v53, 5  ;;  %v324_v9 = vshrl.u32 %v227_v59, 16  ;;  %v327_v10 = vshll.u32 %v227_v59, 16  ;;  %v267_v53 = vld [vmem:[%s5152_s29 + $0x8c] sm:$0x1] }
  0x45   : > { %v538_v3 = vsel %vm5164_vm3, %v533_v55, %v537_v44  ;;  %v681_v4 = vunpack.c.l.b16 %v528_v60  ;;  %v618_v5 = vor.u32 %v617_v58, %v614_v57  ;;  %v628_v8 = vor.u32 %v627_v62, %v623_v61 }
  0x46   : > { %v682_v7 = vunpack.c.l.b16 %v538_v3  ;;  %v333_v12 = vshll.u32 %v5269_v63, 16  ;;  %v337_v13 = vshrl.u32 %v5269_v63, 16  ;;  %v343_v14 = vshll.u32 %v5272_v0, 16 }
  0x47   : > { %v619_v11 = vrot.slane %v618_v5, 4  ;;  %v629_v17 = vrot.slane %v628_v8, 4  ;;  %v326_v18 = vrot.slane %v324_v9, 4  ;;  %v329_v19 = vrot.slane %v327_v10, 5  ;;  %v253_v8 = vld [vmem:[%s5152_s29 + $0xb4] sm:$0xf] }
  0x48   : > { %v703_v16 = vpack.c.b16 %v682_v7, %v681_v4  ;;  %v335_v23 = vrot.slane %v333_v12, 5  ;;  %v339_v24 = vrot.slane %v337_v13, 4  ;;  %v345_v26 = vrot.slane %v343_v14, 5  ;;  %v254_v12 = vld [vmem:[%s5152_s29 + $0xb8] sm:$0xf] }
  0x49   : > { %v624_v22 = vsel %vm5164_vm3, %v619_v11, %v623_v61  ;;  %v634_v29 = vsel %vm5164_vm3, %v629_v17, %v633_v6  ;;  %v330_v31 = vor.u32 %v329_v19, %v326_v18  ;;  %v444_v33 = vshrl.u32 %v237_v15, 16  ;;  %v271_v17 = vld [vmem:[%s5152_s29 + $0xbc] sm:$0x1] }
  0x4a   : > { %4360 = vmatmul.msk.bf16.gmra.mxu2 %vm709_vm4, %v703_v16  ;;  %v689_v30 = vunpack.c.l.b16 %v624_v22  ;;  %v690_v34 = vunpack.c.l.b16 %v634_v29  ;;  %v340_v35 = vor.u32 %v339_v24, %v335_v23  ;;  %v447_v37 = vshll.u32 %v237_v15, 16 }
  0x4b   : > { %v453_v38 = vshll.u32 %v5282_v21, 16  ;;  %v331_v40 = vrot.slane %v330_v31, 4  ;;  %v446_v41 = vrot.slane %v444_v33, 4  ;;  %v457_v42 = vshrl.u32 %v5282_v21, 16 }
  0x4c   : > { %v463_v43 = vshll.u32 %v5287_v27, 16  ;;  %v707_v44 = vpack.c.b16 %v690_v34, %v689_v30  ;;  %v341_v45 = vrot.slane %v340_v35, 4  ;;  %v449_v46 = vrot.slane %v447_v37, 5  ;;  %v229_v37 = vld [vmem:[%s5152_s29 + $0x24] sm:$0xf] }
  0x4d   : > { %v455_v48 = vrot.slane %v453_v38, 5  ;;  %v336_v50 = vsel %vm5164_vm3, %v331_v40, %v335_v23  ;;  %v459_v51 = vrot.slane %v457_v42, 4  ;;  %v540_v54 = vshrl.u32 %v245_v39, 16  ;;  %v5315_v42 = vld [vmem:[%s5152_s29 + $0x28] sm:$0xf] }
  0x4e   : > { %v465_v52 = vrot.slane %v463_v43, 5  ;;  %4364 = vmatmul.msk.bf16.gmra.mxu3 %vm709_vm4, %v707_v44  ;;  %v346_v55 = vsel %vm5164_vm3, %v341_v45, %v345_v26  ;;  %v665_v57 = vunpack.c.l.b16 %v336_v50  ;;  %v450_v58 = vor.u32 %v449_v46, %v446_v41 }
  0x4f   : > { %v543_v59 = vshll.u32 %v245_v39, 16  ;;  %v666_v60 = vunpack.c.l.b16 %v346_v55  ;;  %v460_v61 = vor.u32 %v459_v51, %v455_v48  ;;  %v542_v62 = vrot.slane %v540_v54, 4 }
  0x50   : > { %v549_v3 = vshll.u32 %v246_v49, 16  ;;  %v451_v4 = vrot.slane %v450_v58, 4  ;;  %v553_v6 = vshrl.u32 %v246_v49, 16  ;;  %v559_v7 = vshll.u32 %v267_v53, 16 }
  0x51   : > { %v545_v5 = vrot.slane %v543_v59, 5  ;;  %v695_v9 = vpack.c.b16 %v666_v60, %v665_v57  ;;  %v461_v10 = vrot.slane %v460_v61, 4  ;;  %v636_v22 = vshrl.u32 %v253_v8, 16  ;;  %v1071_v61 = vld [vmem:[%s5152_s29] sm:$0xe] }
  0x52   : > { %v551_v11 = vrot.slane %v549_v3, 5  ;;  %v456_v13 = vsel %vm5164_vm3, %v451_v4, %v455_v48  ;;  %v555_v15 = vrot.slane %v553_v6, 4  ;;  %v561_v16 = vrot.slane %v559_v7, 5  ;;  %v5319_v48 = vld [vmem:[%s5152_s29 + $0x2c] sm:$0x1] }
  0x53   : > { %v546_v14 = vor.u32 %v545_v5, %v542_v62  ;;  %4352 = vmatmul.msk.bf16.gmra.mxu0 %vm709_vm4, %v695_v9  ;;  %v466_v18 = vsel %vm5164_vm3, %v461_v10, %v465_v52  ;;  %v675_v19 = vunpack.c.l.b16 %v456_v13  ;;  %v639_v23 = vshll.u32 %v253_v8, 16  ;;  %v4592_v6 = vld [vmem:[%s5152_s29 + $0xc] sm:$0xf] }
  0x54   : > { %v676_v24 = vunpack.c.l.b16 %v466_v18  ;;  %v556_v29 = vor.u32 %v555_v15, %v551_v11  ;;  %v645_v30 = vshll.u32 %v254_v12, 16  ;;  %v638_v31 = vrot.slane %v636_v22, 4 }
  0x55   : > { %v547_v26 = vrot.slane %v546_v14, 4  ;;  %v641_v33 = vrot.slane %v639_v23, 5  ;;  %v649_v34 = vshrl.u32 %v254_v12, 16  ;;  %v655_v35 = vshll.u32 %v271_v17, 16  ;;  %v4593_v12 = vld [vmem:[%s5152_s29 + $0x10] sm:$0xf] }
  0x56   : > { %v700_v38 = vpack.c.b16 %v676_v24, %v675_v19  ;;  %v557_v40 = vrot.slane %v556_v29, 4  ;;  %v647_v41 = vrot.slane %v645_v30, 5  ;;  %v1127_v43 = vrot.slane %v5180_v2, 5 }
  0x57   : > { %v552_v39 = vsel %vm5164_vm3, %v547_v26, %v551_v11  ;;  %v642_v45 = vor.u32 %v641_v33, %v638_v31  ;;  %v651_v46 = vrot.slane %v649_v34, 4  ;;  %v657_v50 = vrot.slane %v655_v35, 5  ;;  %v4738_v11 = vld [vmem:[%s6526_s1 + $0xc] sm:$0x3] }
  0x58   : > { %v683_v44 = vunpack.c.l.b16 %v552_v39  ;;  %4357 = vmatmul.msk.bf16.gmra.mxu1 %vm709_vm4, %v700_v38  ;;  %v562_v49 = vsel %vm5164_vm3, %v557_v40, %v561_v16  ;;  %v348_v51 = vshrl.u32 %v229_v37, 16  ;;  %v351_v52 = vshll.u32 %v229_v37, 16  ;;  %v4594_v38 = vld [vmem:[%s5152_s29 + $0x14] sm:$0x1] }
  0x59   : > { %v684_v53 = vunpack.c.l.b16 %v562_v49  ;;  %v643_v54 = vrot.slane %v642_v45, 4  ;;  %v652_v55 = vor.u32 %v651_v46, %v647_v41  ;;  %v357_v2 = vshll.u32 %v5315_v42, 16  ;;  %v4867_v45 = vld [vmem:[%s6526_s1 + $0xe] sm:$0x3] }
  0x5a   : > { %v350_v57 = vrot.slane %v348_v51, 4  ;;  %v353_v58 = vrot.slane %v351_v52, 5  ;;  %v361_v59 = vshrl.u32 %v5315_v42, 16  ;;  %v367_v60 = vshll.u32 %v5319_v48, 16  ;;  %v4936_v51 = vld [vmem:[%s5152_s29] sm:$0xff] }
  0x5b   : > { %v704_v62 = vpack.c.b16 %v684_v53, %v683_v44  ;;  %v648_v3 = vsel %vm5164_vm3, %v643_v54, %v647_v41  ;;  %v653_v4 = vrot.slane %v652_v55, 4  ;;  %v359_v5 = vrot.slane %v357_v2, 5  ;;  %v4916_v2 = vld [vmem:[%s6526_s1 + $0x10] sm:$0x3] }
  0x5c   : > { %v691_v7 = vunpack.c.l.b16 %v648_v3  ;;  %v354_v8 = vor.u32 %v353_v58, %v350_v57  ;;  %v363_v9 = vrot.slane %v361_v59, 4  ;;  %v369_v10 = vrot.slane %v367_v60, 5 }
  0x5d   : > { %4361 = vmatmul.msk.bf16.gmra.mxu2 %vm709_vm4, %v704_v62  ;;  %v658_v13 = vsel %vm5164_vm3, %v653_v4, %v657_v50  ;;  %v4446_v14 = vrot.slane %v1071_v61, 9  ;;  %v1124_v19 = vrot.slane %v5177_v1, 5  ;;  %v2959_v22 = vsel %vm758_vm0, %v4738_v11, 0  ;;  %v4689_v50 = vld [vmem:[%s6526_s1 + $0xa] sm:$0x3] }
  0x5e   : > { %v692_v15 = vunpack.c.l.b16 %v658_v13  ;;  %v355_v16 = vrot.slane %v354_v8, 4  ;;  %v364_v17 = vor.u32 %v363_v9, %v359_v5  ;;  %v1792_v23 = vshrl.u32 %v4592_v6, 16  ;;  %2968 = vmatpush.bf16.msra.mxu2 %v2959_v22  ;;  %v1072_v8 = vld [vmem:[%s5152_s29 + $0xc] sm:$0xe] }
  0x5f   : > { %v1795_v24 = vshll.u32 %v4592_v6, 16  ;;  %v1801_v26 = vshll.u32 %v4593_v12, 16  ;;  %v1125_v33 = vsel %vm5338_vm7, %v4446_v14, %v1124_v19  ;;  %v1126_v35 = vrot.slane %v1124_v19, 4  ;;  %v4596_v6 = vld [vmem:[%s5152_s29 + $0x1c] sm:$0xf] }
  0x60   : > { %v708_v29 = vpack.c.b16 %v692_v15, %v691_v7  ;;  %v360_v30 = vsel %vm5164_vm3, %v355_v16, %v359_v5  ;;  %v365_v31 = vrot.slane %v364_v17, 4  ;;  %v1236_v37 = vunpack.c.l.b16 %v1125_v33  ;;  %v4595_v5 = vld [vmem:[%s5152_s29 + $0x18] sm:$0xf]  ;;  %v4952_v15 = vld [vmem:[%s5152_s29 + $0xc] sm:$0xff] }
  0x61   : > { %v667_v34 = vunpack.c.l.b16 %v360_v30  ;;  %v1794_v1 = vrot.slane %v1792_v23, 4  ;;  %v1797_v40 = vrot.slane %v1795_v24, 5  ;;  %v1803_v41 = vrot.slane %v1801_v26, 5  ;;  %v4597_v30 = vld [vmem:[%s5152_s29 + $0x20] sm:$0x1] }
  0x62   : > { %4365 = vmatmul.msk.bf16.gmra.mxu3 %vm709_vm4, %v708_v29  ;;  %v370_v39 = vsel %vm5164_vm3, %v365_v31, %v369_v10  ;;  %v1805_v44 = vshrl.u32 %v4593_v12, 16  ;;  %v1128_v49 = vsel %vm5338_vm7, %v1126_v35, %v1127_v43  ;;  %v1811_v55 = vshll.u32 %v4594_v38, 16  ;;  %v4937_v35 = vld [vmem:[%s5152_s29 + $0xc] sm:$0xff] }
  0x63   : > { %v668_v46 = vunpack.c.l.b16 %v370_v39  ;;  %v1237_v52 = vunpack.c.l.b16 %v1128_v49  ;;  %v1798_v53 = vor.u32 %v1797_v40, %v1794_v1  ;;  %v3613_v58 = vsel %vm758_vm0, %v4867_v45, 0 }
  0x64   : > { %v1807_v54 = vrot.slane %v1805_v44, 4  ;;  %3622 = vmatpush.bf16.msra.mxu3 %v3613_v58  ;;  %v2672_v60 = vsel %vm758_vm0, %v4689_v50, 0  ;;  %v4011_v61 = vsel %vm758_vm0, %v4916_v2, 0  ;;  %v1813_v4 = vrot.slane %v1811_v55, 5  ;;  %v1073_v50 = vld [vmem:[%s5152_s29 + $0x18] sm:$0xe] }
  0x65   : > { %v696_v57 = vpack.c.b16 %v668_v46, %v667_v34  ;;  %v1268_v43 = vpack.c.b16 %v1237_v52, %v1236_v37  ;;  %2681 = vmatpush.bf16.msra.mxu1 %v2672_v60  ;;  %v1799_v62 = vrot.slane %v1798_v53, 4  ;;  %4020 = vmatpush.bf16.msra.mxu0 %v4011_v61  ;;  %v1131_v7 = vrot.slane %v5223_v28, 5  ;;  %v4599_v46 = vld [vmem:[%s5152_s29 + $0x28] sm:$0xf] }
  0x66   : > { %v1808_v59 = vor.u32 %v1807_v54, %v1803_v41  ;;  %v1816_v9 = vshrl.u32 %v4595_v5, 16  ;;  %v1819_v10 = vshll.u32 %v4595_v5, 16  ;;  %v1825_v13 = vshll.u32 %v4596_v6, 16 }
  0x67   : > { %4353 = vmatmul.msk.bf16.gmra.mxu0 %vm709_vm4, %v696_v57  ;;  %v1804_v11 = vsel %vm5164_vm3, %v1799_v62, %v1803_v41  ;;  %v1829_v14 = vshrl.u32 %v4596_v6, 16  ;;  %v4447_v16 = vrot.slane %v1072_v8, 9  ;;  %v1133_v17 = vrot.slane %v1131_v7, 4  ;;  %v4598_v41 = vld [vmem:[%s5152_s29 + $0x24] sm:$0xf] }
  0x68   : > { %4430 = vmatmul.msk.bf16.vlgmr.msrb.gmra.mxu1 %vm709_vm4, %v4936_v51  ;;  %v1809_v3 = vrot.slane %v1808_v59, 4  ;;  %v1134_v28 = vrot.slane %v5226_v32, 5  ;;  %v2177_v19 = vunpack.c.l.b16 %v1804_v11  ;;  %v1818_v23 = vrot.slane %v1816_v9, 4  ;;  %v4600_v6 = vld [vmem:[%s5152_s29 + $0x2c] sm:$0x1] }
  0x69   : > { %v1821_v24 = vrot.slane %v1819_v10, 5  ;;  %v1827_v26 = vrot.slane %v1825_v13, 5  ;;  %v1831_v29 = vrot.slane %v1829_v14, 4  ;;  %v1132_v31 = vsel %vm5338_vm7, %v4447_v16, %v1131_v7 }
  0x6a   : > { %v1814_v12 = vsel %vm5164_vm3, %v1809_v3, %v1813_v4  ;;  %v1135_v33 = vsel %vm5338_vm7, %v1133_v17, %v1134_v28  ;;  %v1835_v38 = vshll.u32 %v4597_v30, 16  ;;  %v1238_v1 = vunpack.c.l.b16 %v1132_v31 }
  0x6b   : > { %v2178_v22 = vunpack.c.l.b16 %v1814_v12  ;;  %v1822_v32 = vor.u32 %v1821_v24, %v1818_v23  ;;  %v1832_v37 = vor.u32 %v1831_v29, %v1827_v26  ;;  %v1239_v39 = vunpack.c.l.b16 %v1135_v33  ;;  %v4938_v12 = vld [vmem:[%s5152_s29 + $0x18] sm:$0xff]  ;;  %v1074_v29 = vld [vmem:[%s5152_s29 + $0x24] sm:$0xe] }
  0x6c   : > { %v1837_v45 = vrot.slane %v1835_v38, 5  ;;  %v1138_v51 = vrot.slane %v5269_v63, 5  ;;  %v1840_v52 = vshrl.u32 %v4598_v41, 16  ;;  %v1843_v54 = vshll.u32 %v4598_v41, 16 }
  0x6d   : > { %4463 = vmatmul.msk.bf16.vlgmr.msrb.gmra.mxu2 %vm709_vm4, %v1268_v43  ;;  %v2209_v34 = vpack.c.b16 %v2178_v22, %v2177_v19  ;;  %v1823_v40 = vrot.slane %v1822_v32, 4  ;;  %v1833_v44 = vrot.slane %v1832_v37, 4  ;;  %v1269_v49 = vpack.c.b16 %v1239_v39, %v1238_v1  ;;  %v4953_v43 = vld [vmem:[%s5152_s29 + $0x18] sm:$0xff]  ;;  %v4601_v19 = vld [vmem:[%s5152_s29 + $0x30] sm:$0xf]  ;;  %v4954_v32 = vld [vmem:[%s5152_s29 + $0x24] sm:$0xff] }
  0x6e   : > { %v1849_v55 = vshll.u32 %v4599_v46, 16  ;;  %v1853_v2 = vshrl.u32 %v4599_v46, 16  ;;  %v4448_v58 = vrot.slane %v1073_v50, 9  ;;  %v1140_v60 = vrot.slane %v1138_v51, 4  ;;  %v4602_v22 = vld [vmem:[%s5152_s29 + $0x34] sm:$0xf] }
  0x6f   : > { %v1828_v53 = vsel %vm5164_vm3, %v1823_v40, %v1827_v26  ;;  %v1838_v57 = vsel %vm5164_vm3, %v1833_v44, %v1837_v45  ;;  %v1141_v63 = vrot.slane %v5272_v0, 5  ;;  %v1842_v61 = vrot.slane %v1840_v52, 4  ;;  %v4603_v45 = vld [vmem:[%s5152_s29 + $0x38] sm:$0x1] }
  0x70   : > { %v2179_v59 = vunpack.c.l.b16 %v1828_v53  ;;  %v2180_v62 = vunpack.c.l.b16 %v1838_v57  ;;  %v1845_v3 = vrot.slane %v1843_v54, 5  ;;  %v1851_v4 = vrot.slane %v1849_v55, 5  ;;  %v4605_v57 = vld [vmem:[%s5152_s29 + $0x40] sm:$0xf] }
  0x71   : > { %v1855_v5 = vrot.slane %v1853_v2, 4  ;;  %v1139_v7 = vsel %vm5338_vm7, %v4448_v58, %v1138_v51  ;;  %v1142_v8 = vsel %vm5338_vm7, %v1140_v60, %v1141_v63  ;;  %v1859_v0 = vshll.u32 %v4600_v6, 16  ;;  %v4604_v2 = vld [vmem:[%s5152_s29 + $0x3c] sm:$0xf]  ;;  %v5013_v63 = vld [vmem:[%s5152_s29 + $0x34] sm:$0xf] }
  0x72   : > { %4576 = vmatmul.msk.bf16.vlgmr.msrb.gmra.mxu3 %vm709_vm4, %v4952_v15  ;;  %v2210_v9 = vpack.c.b16 %v2180_v62, %v2179_v59  ;;  %v1846_v10 = vor.u32 %v1845_v3, %v1842_v61  ;;  %v1240_v13 = vunpack.c.l.b16 %v1139_v7  ;;  %v1241_v14 = vunpack.c.l.b16 %v1142_v8  ;;  %v1075_v62 = vld [vmem:[%s5152_s29 + $0x30] sm:$0xe] }
  0x73   : > { %v1856_v11 = vor.u32 %v1855_v5, %v1851_v4  ;;  %v1861_v17 = vrot.slane %v1859_v0, 5  ;;  %v1145_v23 = vrot.slane %v5315_v42, 5  ;;  %v1864_v30 = vshrl.u32 %v4601_v19, 16  ;;  %v5014_v0 = vld [vmem:[%s5152_s29 + $0x38] sm:$0x1] }
  0x74   : > { %v1847_v15 = vrot.slane %v1846_v10, 4  ;;  %v1270_v28 = vpack.c.b16 %v1241_v14, %v1240_v13  ;;  %v1867_v31 = vshll.u32 %v4601_v19, 16  ;;  %v1873_v33 = vshll.u32 %v4602_v22, 16  ;;  %v4955_v13 = vld [vmem:[%s5152_s29 + $0x30] sm:$0xff] }
  0x75   : > { %v1857_v16 = vrot.slane %v1856_v11, 4  ;;  %v1147_v37 = vrot.slane %v1145_v23, 4  ;;  %v1148_v42 = vrot.slane %v5319_v48, 5  ;;  %v1866_v39 = vrot.slane %v1864_v30, 4  ;;  %v4939_v48 = vld [vmem:[%s5152_s29 + $0x24] sm:$0xff] }
  0x76   : > { %v1852_v24 = vsel %vm5164_vm3, %v1847_v15, %v1851_v4  ;;  %v1869_v40 = vrot.slane %v1867_v31, 5  ;;  %v1875_v41 = vrot.slane %v1873_v33, 5  ;;  %v1883_v53 = vshll.u32 %v4603_v45, 16  ;;  %v4940_v33 = vld [vmem:[%s5152_s29 + $0x30] sm:$0xff] }
  0x77   : > { %4641 = vmatmul.msk.bf16.vlgmr.msrb.gmra.mxu0 %vm709_vm4, %v2209_v34  ;;  %v1862_v26 = vsel %vm5164_vm3, %v1857_v16, %v1861_v17  ;;  %v1877_v34 = vshrl.u32 %v4602_v22, 16  ;;  %v2181_v38 = vunpack.c.l.b16 %v1852_v24  ;;  %v1152_v61 = vrot.slane %v5013_v63, 5  ;;  %v4606_v22 = vld [vmem:[%s5152_s29 + $0x44] sm:$0x1] }
  0x78   : > { %4431 = vmatmul.msk.bf16.gmra.mxu1 %vm709_vm4, %v4937_v35  ;;  %v4449_v35 = vrot.slane %v1074_v29, 9  ;;  %v2182_v1 = vunpack.c.l.b16 %v1862_v26  ;;  %v1870_v51 = vor.u32 %v1869_v40, %v1866_v39  ;;  %v1885_v59 = vrot.slane %v1883_v53, 5  ;;  %v4607_v39 = vld [vmem:[%s5152_s29 + $0x48] sm:$0xf]  ;;  %v4608_v40 = vld [vmem:[%s5152_s29 + $0x4c] sm:$0xf] }
  0x79   : > { %v1879_v44 = vrot.slane %v1877_v34, 4  ;;  %v1888_v3 = vshrl.u32 %v4604_v2, 16  ;;  %v1891_v4 = vshll.u32 %v4604_v2, 16  ;;  %v1897_v5 = vshll.u32 %v4605_v57, 16  ;;  %v4956_v2 = vld [vmem:[%s5152_s29 + $0x3c] sm:$0xff] }
  0x7a   : > { %v1146_v46 = vsel %vm5338_vm7, %v4449_v35, %v1145_v23  ;;  %v2211_v50 = vpack.c.b16 %v2182_v1, %v2181_v38  ;;  %v1871_v58 = vrot.slane %v1870_v51, 4  ;;  %v1901_v6 = vshrl.u32 %v4605_v57, 16 }
  0x7b   : > { %v1880_v52 = vor.u32 %v1879_v44, %v1875_v41  ;;  %v1242_v54 = vunpack.c.l.b16 %v1146_v46  ;;  %v4450_v10 = vrot.slane %v1075_v62, 9  ;;  %v1154_v11 = vrot.slane %v1152_v61, 4 }
  0x7c   : > { %v1876_v8 = vsel %vm5164_vm3, %v1871_v58, %v1875_v41  ;;  %v1890_v14 = vrot.slane %v1888_v3, 4  ;;  %v1893_v15 = vrot.slane %v1891_v4, 5  ;;  %v1899_v16 = vrot.slane %v1897_v5, 5  ;;  %v4609_v4 = vld [vmem:[%s5152_s29 + $0x50] sm:$0x1] }
  0x7d   : > { %4464 = vmatmul.msk.bf16.gmra.mxu2 %vm709_vm4, %v1269_v49  ;;  %v1149_v49 = vsel %vm5338_vm7, %v1147_v37, %v1148_v42  ;;  %v1903_v17 = vrot.slane %v1901_v6, 4  ;;  %v1153_v23 = vsel %vm5338_vm7, %v4450_v10, %v1152_v61  ;;  %v1907_v30 = vshll.u32 %v4606_v22, 16 }
  0x7e   : > { %v1243_v55 = vunpack.c.l.b16 %v1149_v49  ;;  %v1894_v26 = vor.u32 %v1893_v15, %v1890_v14  ;;  %v1912_v51 = vshrl.u32 %v4607_v39, 16  ;;  %v1921_v53 = vshll.u32 %v4608_v40, 16 }
  0x7f   : > { %v1904_v29 = vor.u32 %v1903_v17, %v1899_v16  ;;  %v1909_v1 = vrot.slane %v1907_v30, 5 }
  0x80   : > { %v1271_v60 = vpack.c.b16 %v1243_v55, %v1242_v54  ;;  %v1895_v42 = vrot.slane %v1894_v26, 4  ;;  %v1925_v54 = vshrl.u32 %v4608_v40, 16  ;;  %v1923_v62 = vrot.slane %v1921_v53, 5 }
  0x81   : > { %v1905_v38 = vrot.slane %v1904_v29, 4  ;;  %v1166_v26 = vrot.slane %v5236_v47, 5 }
  0x82   : > { %4577 = vmatmul.msk.bf16.gmra.mxu3 %vm709_vm4, %v4953_v43  ;;  %v1881_v43 = vrot.slane %v1880_v52, 4  ;;  %v1900_v45 = vsel %vm5164_vm3, %v1895_v42, %v1899_v16  ;;  %v1915_v52 = vshll.u32 %v4607_v39, 16  ;;  %v1927_v3 = vrot.slane %v1925_v54, 4  ;;  %v4612_v54 = vld [vmem:[%s5152_s29 + $0x5c] sm:$0x1] }
  0x83   : > { %v1910_v46 = vsel %vm5164_vm3, %v1905_v38, %v1909_v1  ;;  %v2185_v55 = vunpack.c.l.b16 %v1900_v45  ;;  %v4957_v1 = vld [vmem:[%s5152_s29 + $0x48] sm:$0xff]  ;;  %v1168_v40 = vrot.slane %v1166_v26, 4 }
  0x84   : > { %v2186_v57 = vunpack.c.l.b16 %v1910_v46  ;;  %v1917_v61 = vrot.slane %v1915_v52, 5  ;;  %v1928_v10 = vor.u32 %v1927_v3, %v1923_v62 }
  0x86   : > { %v1929_v16 = vrot.slane %v1928_v10, 4 }
  0x87   : > { %4642 = vmatmul.msk.bf16.gmra.mxu0 %vm709_vm4, %v2210_v9  ;;  %v1886_v9 = vsel %vm5164_vm3, %v1881_v43, %v1885_v59 }
  0x88   : > { %4432 = vmatmul.msk.bf16.gmra.mxu1 %vm709_vm4, %v4938_v12  ;;  %v1155_v12 = vrot.slane %v5014_v0, 5  ;;  %v2184_v19 = vunpack.c.l.b16 %v1886_v9 }
  0x8a   : > { %v1156_v24 = vsel %vm5338_vm7, %v1154_v11, %v1155_v12  ;;  %v1931_v11 = vshll.u32 %v4609_v4, 16  ;;  %v4941_v12 = vld [vmem:[%s5152_s29 + $0x3c] sm:$0xff] }
  0x8b   : > { %v1245_v35 = vunpack.c.l.b16 %v1156_v24  ;;  %v4611_v24 = vld [vmem:[%s5152_s29 + $0x58] sm:$0xf]  ;;  %v4613_v4 = vld [vmem:[%s5152_s29 + $0x60] sm:$0xf] }
  0x8c   : > { %v1933_v17 = vrot.slane %v1931_v11, 5  ;;  %v1949_v42 = vshrl.u32 %v4611_v24, 16 }
  0x8d   : > { %4465 = vmatmul.msk.bf16.gmra.mxu2 %vm709_vm4, %v1270_v28  ;;  %v2183_v28 = vunpack.c.l.b16 %v1876_v8  ;;  %v2213_v8 = vpack.c.b16 %v2186_v57, %v2185_v55 }
  0x8e   : > { %v1934_v30 = vsel %vm5164_vm3, %v1929_v16, %v1933_v17  ;;  %v1951_v52 = vrot.slane %v1949_v42, 4 }
  0x8f   : > { %v2212_v31 = vpack.c.b16 %v2184_v19, %v2183_v28  ;;  %v2188_v46 = vunpack.c.l.b16 %v1934_v30 }
  0x92   : > { %4578 = vmatmul.msk.bf16.gmra.mxu3 %vm709_vm4, %v4954_v32  ;;  %v1244_v32 = vunpack.c.l.b16 %v1153_v23  ;;  %v4610_v23 = vld [vmem:[%s5152_s29 + $0x54] sm:$0xf] }
  0x94   : > { %v1272_v44 = vpack.c.b16 %v1245_v35, %v1244_v32  ;;  %v1939_v32 = vshll.u32 %v4610_v23, 16  ;;  %v1945_v35 = vshll.u32 %v4611_v24, 16 }
  0x97   : > { %4643 = vmatmul.msk.bf16.gmra.mxu0 %vm709_vm4, %v2211_v50  ;;  %v1159_v50 = vrot.slane %v5192_v20, 5  ;;  %v1914_v20 = vrot.slane %v1912_v51, 4  ;;  %v1947_v51 = vrot.slane %v1945_v35, 5  ;;  %v1176_v35 = vrot.slane %v5287_v27, 5 }
  0x98   : > { %4433 = vmatmul.msk.bf16.gmra.mxu1 %vm709_vm4, %v4939_v48  ;;  %v1076_v48 = vld [vmem:[%s5152_s29 + $0x3c] sm:$0xe] }
  0x99   : > { %v4451_v43 = vrot.slane %v1076_v48, 9  ;;  %v1161_v59 = vrot.slane %v1159_v50, 4  ;;  %v1941_v48 = vrot.slane %v1939_v32, 5 }
  0x9b   : > { %v1160_v5 = vsel %vm5338_vm7, %v4451_v43, %v1159_v50  ;;  %v4942_v43 = vld [vmem:[%s5152_s29 + $0x48] sm:$0xff] }
  0x9d   : > { %v5433_v7 = vpop.f32.mrf.mxu1  ;;  %4466 = vmatmul.msk.bf16.gmra.mxu2 %vm709_vm4, %v1271_v60  ;;  %v1162_v60 = vrot.slane %v5197_v25, 5  ;;  %v1918_v25 = vor.u32 %v1917_v61, %v1914_v20  ;;  %v1955_v20 = vshll.u32 %v4612_v54, 16  ;;  %v4943_v54 = vld [vmem:[%s5152_s29 + $0x54] sm:$0xff] }
  0x9f   : > { %v1163_v6 = vsel %vm5338_vm7, %v1161_v59, %v1162_v60  ;;  %v1919_v15 = vrot.slane %v1918_v25, 4  ;;  %v1952_v60 = vor.u32 %v1951_v52, %v1947_v51  ;;  %v1957_v10 = vrot.slane %v1955_v20, 5 }
  0xa0   : > { %v1247_v14 = vunpack.c.l.b16 %v1163_v6 }
  0xa1   : > { %v1924_v29 = vsel %vm5164_vm3, %v1919_v15, %v1923_v62  ;;  %v1953_v25 = vrot.slane %v1952_v60, 4  ;;  %v1173_v15 = vrot.slane %v5282_v21, 5 }
  0xa2   : > { %4579 = vmatmul.msk.bf16.gmra.mxu3 %vm709_vm4, %v4955_v13  ;;  %v1246_v13 = vunpack.c.l.b16 %v1160_v5  ;;  %v2187_v45 = vunpack.c.l.b16 %v1924_v29  ;;  %v4614_v5 = vld [vmem:[%s5152_s29 + $0x64] sm:$0xf] }
  0xa3   : > { %v1973_v16 = vshrl.u32 %v4614_v5, 16  ;;  %v1958_v24 = vsel %vm5164_vm3, %v1953_v25, %v1957_v10  ;;  %v1175_v32 = vrot.slane %v1173_v15, 4  ;;  %v5015_v10 = vld [vmem:[%s5152_s29 + $0x64] sm:$0xf] }
  0xa4   : > { %v1273_v19 = vpack.c.b16 %v1247_v14, %v1246_v13  ;;  %v2214_v57 = vpack.c.b16 %v2188_v46, %v2187_v45  ;;  %v1963_v13 = vshll.u32 %v4613_v4, 16  ;;  %v1969_v14 = vshll.u32 %v4614_v5, 16 }
  0xa5   : > { %v5449_v34 = vpop.f32.mrf.mxu1  ;;  %v1975_v42 = vrot.slane %v1973_v16, 4 }
  0xa6   : > { %v1965_v30 = vrot.slane %v1963_v13, 5  ;;  %v1079_v13 = vld [vmem:[%s5152_s29 + $0x60] sm:$0xe] }
  0xa7   : > { %v5451_v37 = vpop.f32.mrf.mxu2  ;;  %4644 = vmatmul.msk.bf16.gmra.mxu0 %vm709_vm4, %v2212_v31  ;;  %v1077_v31 = vld [vmem:[%s5152_s29 + $0x48] sm:$0xe] }
  0xa8   : > { %4434 = vmatmul.msk.bf16.gmra.mxu1 %vm709_vm4, %v4940_v33  ;;  %v1936_v33 = vshrl.u32 %v4610_v23, 16  ;;  %v4452_v47 = vrot.slane %v1077_v31, 9  ;;  %v1971_v31 = vrot.slane %v1969_v14, 5 }
  0xaa   : > { %v5457_v41 = vpop.f32.mrf.mxu0  ;;  %v1938_v50 = vrot.slane %v1936_v33, 4  ;;  %v4958_v33 = vld [vmem:[%s5152_s29 + $0x54] sm:$0xff]  ;;  %v1976_v27 = vor.u32 %v1975_v42, %v1971_v31 }
  0xab   : > { %v5463_v49 = vpop.f32.mrf.mxu3 }
  0xac   : > { %v1942_v59 = vor.u32 %v1941_v48, %v1938_v50  ;;  %v1177_v48 = vsel %vm5338_vm7, %v1175_v32, %v1176_v35  ;;  %v1977_v60 = vrot.slane %v1976_v27, 4 }
  0xad   : > { %4467 = vmatmul.msk.bf16.gmra.mxu2 %vm709_vm4, %v1272_v44  ;;  %v1169_v44 = vrot.slane %v5241_v56, 5 }
  0xaf   : > { %v5469_v58 = vpop.f32.mrf.mxu1  ;;  %v5472_v63 = vpop.f32.mrf.mxu2  ;;  %v1170_v56 = vsel %vm5338_vm7, %v1168_v40, %v1169_v44  ;;  %v4615_v40 = vld [vmem:[%s5152_s29 + $0x68] sm:$0x1] }
  0xb0   : > { %v1249_v62 = vunpack.c.l.b16 %v1170_v56 }
  0xb2   : > { %4580 = vmatmul.msk.bf16.gmra.mxu3 %vm709_vm4, %v4956_v2  ;;  %v5480_v9 = vpop.f32.mrf.mxu0  ;;  %v1167_v2 = vsel %vm5338_vm7, %v4452_v47, %v1166_v26  ;;  %v2190_v47 = vunpack.c.l.b16 %v1958_v24 }
  0xb3   : > { %v5482_v0 = vpop.f32.mrf.mxu3  ;;  %v1248_v61 = vunpack.c.l.b16 %v1167_v2 }
  0xb5   : > { %v1274_v11 = vpack.c.b16 %v1249_v62, %v1248_v61  ;;  %v4616_v61 = vld [vmem:[%s5152_s29 + $0x6c] sm:$0xf]  ;;  %v4617_v62 = vld [vmem:[%s5152_s29 + $0x70] sm:$0xf] }
  0xb6   : > { %v1984_v14 = vshrl.u32 %v4616_v61, 16  ;;  %v1993_v16 = vshll.u32 %v4617_v62, 16 }
  0xb7   : > { %4645 = vmatmul.msk.bf16.gmra.mxu0 %vm709_vm4, %v2213_v8  ;;  %v5486_v28 = vpop.f32.mrf.mxu1  ;;  %v1943_v8 = vrot.slane %v1942_v59, 4 }
  0xb8   : > { %4435 = vmatmul.msk.bf16.gmra.mxu1 %vm709_vm4, %v4941_v12  ;;  %v1960_v12 = vshrl.u32 %v4613_v4, 16  ;;  %v1986_v35 = vrot.slane %v1984_v14, 4  ;;  %v4620_v14 = vld [vmem:[%s5152_s29 + $0x7c] sm:$0xf] }
  0xb9   : > { %v1948_v23 = vsel %vm5164_vm3, %v1943_v8, %v1947_v51  ;;  %v1979_v51 = vshll.u32 %v4615_v40, 16 }
  0xba   : > { %v5489_v22 = vpop.f32.mrf.mxu2  ;;  %v1962_v29 = vrot.slane %v1960_v12, 4 }
  0xbb   : > { %v1981_v20 = vrot.slane %v1979_v51, 5 }
  0xbc   : > { %v1966_v46 = vor.u32 %v1965_v30, %v1962_v29  ;;  %v4959_v30 = vld [vmem:[%s5152_s29 + $0x60] sm:$0xff] }
  0xbd   : > { %4468 = vmatmul.msk.bf16.gmra.mxu2 %vm709_vm4, %v1273_v19  ;;  %v1078_v19 = vld [vmem:[%s5152_s29 + $0x54] sm:$0xe]  ;;  %v1982_v25 = vsel %vm5164_vm3, %v1977_v60, %v1981_v20 }
  0xbe   : > { %v5499_v38 = vpop.f32.mrf.mxu0  ;;  %v4453_v21 = vrot.slane %v1078_v19, 9  ;;  %v1967_v59 = vrot.slane %v1966_v46, 4  ;;  %v1997_v19 = vshrl.u32 %v4617_v62, 16  ;;  %v4618_v46 = vld [vmem:[%s5152_s29 + $0x74] sm:$0x1] }
  0xbf   : > { %v5503_v39 = vpop.f32.mrf.mxu3 }
  0xc0   : > { %v1174_v50 = vsel %vm5338_vm7, %v4453_v21, %v1173_v15  ;;  %v1972_v8 = vsel %vm5164_vm3, %v1967_v59, %v1971_v31  ;;  %v1987_v15 = vshll.u32 %v4616_v61, 16  ;;  %v4454_v21 = vrot.slane %v1079_v13, 9  ;;  %v4619_v13 = vld [vmem:[%s5152_s29 + $0x78] sm:$0xf] }
  0xc1   : > { %v5506_v53 = vpop.f32.mrf.mxu1  ;;  %v1250_v56 = vunpack.c.l.b16 %v1174_v50  ;;  %v2191_v31 = vunpack.c.l.b16 %v1972_v8 }
  0xc2   : > { %4581 = vmatmul.msk.bf16.gmra.mxu3 %vm709_vm4, %v4957_v1  ;;  %v5510_v55 = vpop.f32.mrf.mxu2  ;;  %v2189_v1 = vunpack.c.l.b16 %v1948_v23  ;;  %v5016_v23 = vld [vmem:[%s5152_s29 + $0x68] sm:$0x1]  ;;  %v1989_v42 = vrot.slane %v1987_v15, 5  ;;  %v5017_v15 = vld [vmem:[%s5152_s29 + $0x70] sm:$0xf] }
  0xc3   : > { %v1183_v24 = vrot.slane %v5016_v23, 5  ;;  %v1080_v23 = vld [vmem:[%s5152_s29 + $0x6c] sm:$0xe] }
  0xc4   : > { %v2215_v52 = vpack.c.b16 %v2190_v47, %v2189_v1  ;;  %v1995_v1 = vrot.slane %v1993_v16, 5  ;;  %v1999_v47 = vrot.slane %v1997_v19, 4  ;;  %v1990_v51 = vor.u32 %v1989_v42, %v1986_v35  ;;  %v5018_v42 = vld [vmem:[%s5152_s29 + $0x74] sm:$0x1] }
  0xc5   : > { %v1187_v16 = vrot.slane %v5017_v15, 5 }
  0xc6   : > { %v5517_v3 = vpop.f32.mrf.mxu0 }
  0xc7   : > { %4646 = vmatmul.msk.bf16.gmra.mxu0 %vm709_vm4, %v2214_v57  ;;  %v5522_v6 = vpop.f32.mrf.mxu3  ;;  %v1251_v57 = vunpack.c.l.b16 %v1177_v48 }
  0xc8   : > { %4436 = vmatmul.msk.bf16.gmra.mxu1 %vm709_vm4, %v4942_v43 }
  0xc9   : > { %v5526_v17 = vpop.f32.mrf.mxu1  ;;  %v1275_v4 = vpack.c.b16 %v1251_v57, %v1250_v56  ;;  %v4944_v57 = vld [vmem:[%s5152_s29 + $0x60] sm:$0xff] }
  0xcd   : > { %v5533_v26 = vpop.f32.mrf.mxu2  ;;  %4469 = vmatmul.msk.bf16.gmra.mxu2 %vm709_vm4, %v1274_v11  ;;  %v1180_v11 = vrot.slane %v5015_v10, 5 }
  0xcf   : > { %v1182_v32 = vrot.slane %v1180_v11, 4  ;;  %v1181_v50 = vsel %vm5338_vm7, %v4454_v21, %v1180_v11  ;;  %v2021_v21 = vshrl.u32 %v4620_v14, 16 }
  0xd0   : > { %v5539_v44 = vpop.f32.mrf.mxu0  ;;  %v1252_v20 = vunpack.c.l.b16 %v1181_v50  ;;  %v4455_v50 = vrot.slane %v1080_v23, 9 }
  0xd1   : > { %v5541_v45 = vpop.f32.mrf.mxu3  ;;  %v1184_v48 = vsel %vm5338_vm7, %v1182_v32, %v1183_v24 }
  0xd2   : > { %4582 = vmatmul.msk.bf16.gmra.mxu3 %vm709_vm4, %v4958_v33  ;;  %v2192_v33 = vunpack.c.l.b16 %v1982_v25  ;;  %v1253_v61 = vunpack.c.l.b16 %v1184_v48  ;;  %v1189_v48 = vrot.slane %v1187_v16, 4 }
  0xd4   : > { %v2216_v27 = vpack.c.b16 %v2192_v33, %v2191_v31  ;;  %v1276_v11 = vpack.c.b16 %v1253_v61, %v1252_v20  ;;  %v2011_v31 = vshll.u32 %v4619_v13, 16  ;;  %v2017_v33 = vshll.u32 %v4620_v14, 16 }
  0xd5   : > { %v5549_v2 = vpop.f32.mrf.mxu1  ;;  %v5551_v43 = vpop.f32.mrf.mxu2  ;;  %v2023_v20 = vrot.slane %v2021_v21, 4 }
  0xd7   : > { %4647 = vmatmul.msk.bf16.gmra.mxu0 %vm709_vm4, %v2215_v52  ;;  %v2000_v52 = vor.u32 %v1999_v47, %v1995_v1  ;;  %v1190_v47 = vrot.slane %v5018_v42, 5 }
  0xd8   : > { %4437 = vmatmul.msk.bf16.gmra.mxu1 %vm709_vm4, %v4943_v54  ;;  %v5557_v5 = vpop.f32.mrf.mxu0  ;;  %v2003_v54 = vshll.u32 %v4618_v46, 16  ;;  %v4960_v46 = vld [vmem:[%s5152_s29 + $0x6c] sm:$0xff] }
  0xd9   : > { %v5564_v12 = vpop.f32.mrf.mxu3  ;;  %v2001_v8 = vrot.slane %v2000_v52, 4 }
  0xda   : > { %v2005_v25 = vrot.slane %v2003_v54, 5 }
  0xdd   : > { %4470 = vmatmul.msk.bf16.gmra.mxu2 %vm709_vm4, %v1275_v4  ;;  %v5569_v29 = vpop.f32.mrf.mxu1  ;;  %v1991_v4 = vrot.slane %v1990_v51, 4 }
  0xdf   : > { %v1996_v19 = vsel %vm5164_vm3, %v1991_v4, %v1995_v1  ;;  %v4621_v4 = vld [vmem:[%s5152_s29 + $0x80] sm:$0x1] }
  0xe0   : > { %v5572_v40 = vpop.f32.mrf.mxu2 }
  0xe2   : > { %4583 = vmatmul.msk.bf16.gmra.mxu3 %vm709_vm4, %v4959_v30  ;;  %v2008_v30 = vshrl.u32 %v4619_v13, 16  ;;  %v4945_v13 = vld [vmem:[%s5152_s29 + $0x6c] sm:$0xff] }
  0xe4   : > { %v5580_v56 = vpop.f32.mrf.mxu0  ;;  %v2010_v54 = vrot.slane %v2008_v30, 4 }
  0xe5   : > { %v5583_v59 = vpop.f32.mrf.mxu3  ;;  %v991_v60 = vpop.f32.mrf.mxu1 }
  0xe6   : > { %v992_v62 = vadd.f32 %v991_v60, %v5457_v41  ;;  %v2006_v41 = vsel %vm5164_vm3, %v2001_v8, %v2005_v25  ;;  %v2019_v60 = vrot.slane %v2017_v33, 5  ;;  %v1188_v8 = vsel %vm5338_vm7, %v4455_v50, %v1187_v16 }
  0xe7   : > { %4648 = vmatmul.msk.bf16.gmra.mxu0 %vm709_vm4, %v2216_v27  ;;  %v2193_v27 = vunpack.c.l.b16 %v1996_v19  ;;  %v2194_v51 = vunpack.c.l.b16 %v2006_v41  ;;  %v2027_v19 = vshll.u32 %v4621_v4, 16 }
  0xe8   : > { %v5587_v10 = vpop.f32.mrf.mxu2  ;;  %4438 = vmatmul.msk.bf16.gmra.mxu1 %vm709_vm4, %v4944_v57  ;;  %v2013_v57 = vrot.slane %v2011_v31, 5  ;;  %v2024_v15 = vor.u32 %v2023_v20, %v2019_v60 }
  0xe9   : > { %v2217_v25 = vpack.c.b16 %v2194_v51, %v2193_v27  ;;  %v2029_v42 = vrot.slane %v2027_v19, 5  ;;  %v4623_v27 = vld [vmem:[%s5152_s29 + $0x88] sm:$0xf]  ;;  %v5019_v51 = vld [vmem:[%s5152_s29 + $0x7c] sm:$0xf] }
  0xea   : > { %v2014_v14 = vor.u32 %v2013_v57, %v2010_v54  ;;  %v1081_v54 = vld [vmem:[%s5152_s29 + $0x78] sm:$0xe] }
  0xec   : > { %v5598_v24 = vpop.f32.mrf.mxu0  ;;  %v2015_v21 = vrot.slane %v2014_v14, 4 }
  0xed   : > { %v5600_v32 = vpop.f32.mrf.mxu3  ;;  %4471 = vmatmul.msk.bf16.gmra.mxu2 %vm709_vm4, %v1276_v11  ;;  %v993_v35 = vpop.f32.mrf.mxu1 }
  0xee   : > { %v994_v1 = vadd.f32 %v993_v35, %v5480_v9  ;;  %v1191_v9 = vsel %vm5338_vm7, %v1189_v48, %v1190_v47  ;;  %v2025_v35 = vrot.slane %v2024_v15, 4  ;;  %v4622_v47 = vld [vmem:[%s5152_s29 + $0x84] sm:$0xf]  ;;  %v4961_v15 = vld [vmem:[%s5152_s29 + $0x78] sm:$0xff] }
  0xef   : > { %v1255_v30 = vunpack.c.l.b16 %v1191_v9  ;;  %v2035_v57 = vshll.u32 %v4622_v47, 16  ;;  %v2045_v9 = vshrl.u32 %v4623_v27, 16 }
  0xf0   : > { %v1344_v52 = vpop.f32.mrf.mxu2  ;;  %v2030_v4 = vsel %vm5164_vm3, %v2025_v35, %v2029_v42 }
  0xf1   : > { %v1424_v61 = vadd.f32 %v1344_v52, %v992_v62  ;;  %v1254_v62 = vunpack.c.l.b16 %v1188_v8  ;;  %v1194_v52 = vrot.slane %v5019_v51, 5  ;;  %v2041_v8 = vshll.u32 %v4623_v27, 16 }
  0xf2   : > { %4584 = vmatmul.msk.bf16.gmra.mxu3 %vm709_vm4, %v4960_v46  ;;  %v2047_v35 = vrot.slane %v2045_v9, 4 }
  0xf3   : > { %v1277_v48 = vpack.c.b16 %v1255_v30, %v1254_v62 }
  0xf4   : > { %v2285_v11 = vpop.f32.mrf.mxu0 }
  0xf5   : > { %v1631_v41 = vpop.f32.mrf.mxu3  ;;  %v996_v23 = vpop.f32.mrf.mxu1 }
  0xf6   : > { %v1711_v31 = vadd.f32 %v1631_v41, %v1424_v61  ;;  %v997_v16 = vadd.f32 %v996_v23, %v5499_v38  ;;  %v2032_v38 = vshrl.u32 %v4622_v47, 16  ;;  %v2020_v61 = vsel %vm5164_vm3, %v2015_v21, %v2019_v60 }
  0xf7   : > { %4649 = vmatmul.msk.bf16.gmra.mxu0 %vm709_vm4, %v2217_v25  ;;  %v5020_v25 = vld [vmem:[%s5152_s29 + $0x80] sm:$0x1]  ;;  %v4456_v41 = vrot.slane %v1081_v54, 9  ;;  %v1196_v23 = vrot.slane %v1194_v52, 4  ;;  %v2195_v62 = vunpack.c.l.b16 %v2020_v61  ;;  %v2196_v60 = vunpack.c.l.b16 %v2030_v4 }
  0xf8   : > { %v1346_v33 = vpop.f32.mrf.mxu2  ;;  %4439 = vmatmul.msk.bf16.gmra.mxu1 %vm709_vm4, %v4945_v13  ;;  %v5617_v46 = vadd.f32 %v2285_v11, %v1711_v31  ;;  %v1197_v11 = vrot.slane %v5020_v25, 5  ;;  %v2034_v30 = vrot.slane %v2032_v38, 4  ;;  %v2037_v31 = vrot.slane %v2035_v57, 5  ;;  %v4946_v38 = vld [vmem:[%s5152_s29 + $0x78] sm:$0xff] }
  0xf9   : > { %v1425_v50 = vadd.f32 %v1346_v33, %v994_v1  ;;  %v2043_v21 = vrot.slane %v2041_v8, 5  ;;  %v2218_v27 = vpack.c.b16 %v2196_v60, %v2195_v62  ;;  %v4626_v62 = vld [vmem:[%s5152_s29 + $0x94] sm:$0xf]  ;;  %v5021_v60 = vld [vmem:[%s5152_s29 + $0x88] sm:$0xf] }
  0xfa   : > { %v2038_v51 = vor.u32 %v2037_v31, %v2034_v30  ;;  %v1201_v30 = vrot.slane %v5021_v60, 5  ;;  %v1082_v31 = vld [vmem:[%s5152_s29 + $0x84] sm:$0xe] }
  0xfb   : > { %v2048_v57 = vor.u32 %v2047_v35, %v2043_v21 }
  0xfc   : > { %v2287_v20 = vpop.f32.mrf.mxu0  ;;  %v2039_v25 = vrot.slane %v2038_v51, 4 }
  0xfd   : > { %v1633_v1 = vpop.f32.mrf.mxu3  ;;  %4472 = vmatmul.msk.bf16.gmra.mxu2 %vm709_vm4, %v1277_v48  ;;  %v998_v13 = vpop.f32.mrf.mxu1  ;;  %v4624_v48 = vld [vmem:[%s5152_s29 + $0x8c] sm:$0x1] }
  0xfe   : > { %v1712_v14 = vadd.f32 %v1633_v1, %v1425_v50  ;;  %v999_v19 = vadd.f32 %v998_v13, %v5517_v3  ;;  %v1195_v50 = vsel %vm5338_vm7, %v4456_v41, %v1194_v52  ;;  %v1198_v3 = vsel %vm5338_vm7, %v1196_v23, %v1197_v11 }
  0xff   : > { %v2051_v61 = vshll.u32 %v4624_v48, 16  ;;  %v1257_v8 = vunpack.c.l.b16 %v1198_v3  ;;  %v2049_v1 = vrot.slane %v2048_v57, 4  ;;  %v2069_v3 = vshrl.u32 %v4626_v62, 16  ;;  %v4962_v57 = vld [vmem:[%s5152_s29 + $0x84] sm:$0xff] }
 0x100   : > { %v1349_v33 = vpop.f32.mrf.mxu2  ;;  %v5630_v42 = vadd.f32 %v2287_v20, %v1712_v14  ;;  %v4625_v14 = vld [vmem:[%s5152_s29 + $0x90] sm:$0xf] }
 0x101   : > { %v1426_v47 = vadd.f32 %v1349_v33, %v997_v16  ;;  %v1256_v16 = vunpack.c.l.b16 %v1195_v50  ;;  %v2053_v13 = vrot.slane %v2051_v61, 5  ;;  %v2056_v33 = vshrl.u32 %v4625_v14, 16 }
 0x102   : > { %4585 = vmatmul.msk.bf16.gmra.mxu3 %vm709_vm4, %v4961_v15  ;;  %v2059_v48 = vshll.u32 %v4625_v14, 16  ;;  %v2065_v50 = vshll.u32 %v4626_v62, 16  ;;  %v4457_v61 = vrot.slane %v1082_v31, 9 }
 0x103   : > { %v1278_v23 = vpack.c.b16 %v1257_v8, %v1256_v16  ;;  %v2058_v8 = vrot.slane %v2056_v33, 4 }
 0x104   : > { %v2290_v54 = vpop.f32.mrf.mxu0 }
 0x105   : > { %v1636_v4 = vpop.f32.mrf.mxu3  ;;  %v1001_v20 = vpop.f32.mrf.mxu1 }
 0x106   : > { %v1713_v9 = vadd.f32 %v1636_v4, %v1426_v47  ;;  %v1002_v52 = vadd.f32 %v1001_v20, %v5539_v44  ;;  %v2044_v44 = vsel %vm5164_vm3, %v2039_v25, %v2043_v21  ;;  %v2054_v47 = vsel %vm5164_vm3, %v2049_v1, %v2053_v13 }
 0x107   : > { %4650 = vmatmul.msk.bf16.gmra.mxu0 %vm709_vm4, %v2218_v27  ;;  %v5022_v27 = vld [vmem:[%s5152_s29 + $0x8c] sm:$0x1]  ;;  %v1203_v4 = vrot.slane %v1201_v30, 4  ;;  %v2197_v20 = vunpack.c.l.b16 %v2044_v44  ;;  %v2198_v16 = vunpack.c.l.b16 %v2054_v47  ;;  %v2061_v25 = vrot.slane %v2059_v48, 5  ;;  %v4947_v44 = vld [vmem:[%s5152_s29 + $0x84] sm:$0xff] }
 0x108   : > { %v1351_v11 = vpop.f32.mrf.mxu2  ;;  %4440 = vmatmul.msk.bf16.gmra.mxu1 %vm709_vm4, %v4946_v38  ;;  %v5643_v15 = vadd.f32 %v2290_v54, %v1713_v9  ;;  %v1204_v51 = vrot.slane %v5022_v27, 5  ;;  %v2071_v1 = vrot.slane %v2069_v3, 4 }
 0x109   : > { %v1427_v41 = vadd.f32 %v1351_v11, %v999_v19  ;;  %v2067_v11 = vrot.slane %v2065_v50, 5  ;;  %v2219_v62 = vpack.c.b16 %v2198_v16, %v2197_v20  ;;  %v2062_v31 = vor.u32 %v2061_v25, %v2058_v8  ;;  %v4629_v20 = vld [vmem:[%s5152_s29 + $0xa0] sm:$0xf]  ;;  %v5023_v16 = vld [vmem:[%s5152_s29 + $0x94] sm:$0xf] }
 0x10a   : > { %v1208_v8 = vrot.slane %v5023_v16, 5 }
 0x10b   : > { %v2072_v33 = vor.u32 %v2071_v1, %v2067_v11 }
 0x10c   : > { %v2292_v35 = vpop.f32.mrf.mxu0 }
 0x10d   : > { %v1638_v19 = vpop.f32.mrf.mxu3  ;;  %4473 = vmatmul.msk.bf16.gmra.mxu2 %vm709_vm4, %v1278_v23  ;;  %v1003_v54 = vpop.f32.mrf.mxu1  ;;  %v4627_v23 = vld [vmem:[%s5152_s29 + $0x98] sm:$0x1] }
 0x10e   : > { %v1714_v38 = vadd.f32 %v1638_v19, %v1427_v41  ;;  %v1004_v21 = vadd.f32 %v1003_v54, %v5557_v5  ;;  %v1202_v41 = vsel %vm5338_vm7, %v4457_v61, %v1201_v30  ;;  %v1205_v5 = vsel %vm5338_vm7, %v1203_v4, %v1204_v51 }
 0x10f   : > { %v2075_v47 = vshll.u32 %v4627_v23, 16  ;;  %v1259_v50 = vunpack.c.l.b16 %v1205_v5  ;;  %v2063_v51 = vrot.slane %v2062_v31, 4  ;;  %v2073_v19 = vrot.slane %v2072_v33, 4  ;;  %v4963_v33 = vld [vmem:[%s5152_s29 + $0x90] sm:$0xff] }
 0x110   : > { %v1354_v9 = vpop.f32.mrf.mxu2  ;;  %v5656_v13 = vadd.f32 %v2292_v35, %v1714_v38  ;;  %v4628_v38 = vld [vmem:[%s5152_s29 + $0x9c] sm:$0xf]  ;;  %v2093_v5 = vshrl.u32 %v4629_v20, 16 }
 0x111   : > { %v1428_v14 = vadd.f32 %v1354_v9, %v1002_v52  ;;  %v1258_v52 = vunpack.c.l.b16 %v1202_v41  ;;  %v2077_v54 = vrot.slane %v2075_v47, 5  ;;  %v1083_v9 = vld [vmem:[%s5152_s29 + $0x90] sm:$0xe]  ;;  %v2083_v25 = vshll.u32 %v4628_v38, 16 }
 0x112   : > { %4586 = vmatmul.msk.bf16.gmra.mxu3 %vm709_vm4, %v4962_v57  ;;  %v2089_v41 = vshll.u32 %v4629_v20, 16 }
 0x113   : > { %v1279_v4 = vpack.c.b16 %v1259_v50, %v1258_v52  ;;  %v2078_v23 = vsel %vm5164_vm3, %v2073_v19, %v2077_v54  ;;  %v2095_v19 = vrot.slane %v2093_v5, 4 }
 0x114   : > { %v2295_v60 = vpop.f32.mrf.mxu0 }
 0x115   : > { %v1641_v48 = vpop.f32.mrf.mxu3  ;;  %v1006_v35 = vpop.f32.mrf.mxu1 }
 0x116   : > { %v1715_v3 = vadd.f32 %v1641_v48, %v1428_v14  ;;  %v1007_v30 = vadd.f32 %v1006_v35, %v5580_v56  ;;  %v2080_v56 = vshrl.u32 %v4628_v38, 16  ;;  %v2068_v14 = vsel %vm5164_vm3, %v2063_v51, %v2067_v11 }
 0x117   : > { %4651 = vmatmul.msk.bf16.gmra.mxu0 %vm709_vm4, %v2219_v62  ;;  %v5024_v62 = vld [vmem:[%s5152_s29 + $0x98] sm:$0x1]  ;;  %v4458_v48 = vrot.slane %v1083_v9, 9  ;;  %v1210_v35 = vrot.slane %v1208_v8, 4  ;;  %v2199_v52 = vunpack.c.l.b16 %v2068_v14  ;;  %v2200_v11 = vunpack.c.l.b16 %v2078_v23 }
 0x118   : > { %v1356_v27 = vpop.f32.mrf.mxu2  ;;  %4441 = vmatmul.msk.bf16.gmra.mxu1 %vm709_vm4, %v4947_v44  ;;  %v5669_v57 = vadd.f32 %v2295_v60, %v1715_v3  ;;  %v1211_v60 = vrot.slane %v5024_v62, 5  ;;  %v2082_v50 = vrot.slane %v2080_v56, 4  ;;  %v2085_v3 = vrot.slane %v2083_v25, 5  ;;  %v4948_v56 = vld [vmem:[%s5152_s29 + $0x90] sm:$0xff] }
 0x119   : > { %v1429_v61 = vadd.f32 %v1356_v27, %v1004_v21  ;;  %v2091_v51 = vrot.slane %v2089_v41, 5  ;;  %v2220_v20 = vpack.c.b16 %v2200_v11, %v2199_v52  ;;  %v4632_v11 = vld [vmem:[%s5152_s29 + $0xac] sm:$0xf] }
 0x11a   : > { %v2086_v16 = vor.u32 %v2085_v3, %v2082_v50  ;;  %v1084_v50 = vld [vmem:[%s5152_s29 + $0x9c] sm:$0xe] }
 0x11b   : > { %v2096_v25 = vor.u32 %v2095_v19, %v2091_v51 }
 0x11c   : > { %v2297_v1 = vpop.f32.mrf.mxu0 }
 0x11d   : > { %v1643_v21 = vpop.f32.mrf.mxu3  ;;  %4474 = vmatmul.msk.bf16.gmra.mxu2 %vm709_vm4, %v1279_v4  ;;  %v1008_v44 = vpop.f32.mrf.mxu1  ;;  %v4630_v4 = vld [vmem:[%s5152_s29 + $0xa4] sm:$0x1] }
 0x11e   : > { %v1716_v31 = vadd.f32 %v1643_v21, %v1429_v61  ;;  %v1009_v47 = vadd.f32 %v1008_v44, %v5598_v24  ;;  %v1209_v61 = vsel %vm5338_vm7, %v4458_v48, %v1208_v8  ;;  %v1212_v24 = vsel %vm5338_vm7, %v1210_v35, %v1211_v60  ;;  %v4631_v44 = vld [vmem:[%s5152_s29 + $0xa8] sm:$0xf]  ;;  %v5025_v35 = vld [vmem:[%s5152_s29 + $0xa0] sm:$0xf] }
 0x11f   : > { %v2099_v14 = vshll.u32 %v4630_v4, 16  ;;  %v1261_v41 = vunpack.c.l.b16 %v1212_v24  ;;  %v2087_v8 = vrot.slane %v2086_v16, 4  ;;  %v2097_v60 = vrot.slane %v2096_v25, 4 }
 0x120   : > { %v1359_v27 = vpop.f32.mrf.mxu2  ;;  %v5682_v54 = vadd.f32 %v2297_v1, %v1716_v31  ;;  %v1215_v52 = vrot.slane %v5025_v35, 5  ;;  %v2107_v19 = vshll.u32 %v4631_v44, 16  ;;  %v2117_v24 = vshrl.u32 %v4632_v11, 16 }
 0x121   : > { %v1430_v38 = vadd.f32 %v1359_v27, %v1007_v30  ;;  %v1260_v30 = vunpack.c.l.b16 %v1209_v61  ;;  %v2101_v21 = vrot.slane %v2099_v14, 5  ;;  %v2092_v3 = vsel %vm5164_vm3, %v2087_v8, %v2091_v51 }
 0x122   : > { %4587 = vmatmul.msk.bf16.gmra.mxu3 %vm709_vm4, %v4963_v33  ;;  %v2104_v27 = vshrl.u32 %v4631_v44, 16  ;;  %v2113_v61 = vshll.u32 %v4632_v11, 16  ;;  %v1217_v25 = vrot.slane %v1215_v52, 4  ;;  %v2201_v51 = vunpack.c.l.b16 %v2092_v3  ;;  %v4633_v11 = vld [vmem:[%s5152_s29 + $0xb0] sm:$0x1]  ;;  %v4949_v3 = vld [vmem:[%s5152_s29 + $0x9c] sm:$0xff] }
 0x123   : > { %v1280_v48 = vpack.c.b16 %v1261_v41, %v1260_v30  ;;  %v2102_v4 = vsel %vm5164_vm3, %v2097_v60, %v2101_v21  ;;  %v2109_v8 = vrot.slane %v2107_v19, 5  ;;  %v2119_v21 = vrot.slane %v2117_v24, 4 }
 0x124   : > { %v2300_v9 = vpop.f32.mrf.mxu0  ;;  %v2202_v41 = vunpack.c.l.b16 %v2102_v4  ;;  %v2115_v60 = vrot.slane %v2113_v61, 5  ;;  %v2123_v4 = vshll.u32 %v4633_v11, 16 }
 0x125   : > { %v1646_v1 = vpop.f32.mrf.mxu3  ;;  %v1011_v23 = vpop.f32.mrf.mxu1 }
 0x126   : > { %v1717_v5 = vadd.f32 %v1646_v1, %v1430_v38  ;;  %v4964_v1 = vld [vmem:[%s5152_s29 + $0x9c] sm:$0xff]  ;;  %v1012_v30 = vadd.f32 %v1011_v23, %v5433_v7  ;;  %v2221_v7 = vpack.c.b16 %v2202_v41, %v2201_v51  ;;  %v2125_v51 = vrot.slane %v2123_v4, 5 }
 0x127   : > { %4652 = vmatmul.msk.bf16.gmra.mxu0 %vm709_vm4, %v2220_v20  ;;  %v5026_v20 = vld [vmem:[%s5152_s29 + $0xa4] sm:$0x1] }
 0x128   : > { %v1361_v62 = vpop.f32.mrf.mxu2  ;;  %4442 = vmatmul.msk.bf16.gmra.mxu1 %vm709_vm4, %v4948_v56  ;;  %v5694_v31 = vadd.f32 %v2300_v9, %v1717_v5  ;;  %v1218_v16 = vrot.slane %v5026_v20, 5  ;;  %v4459_v56 = vrot.slane %v1084_v50, 9  ;;  %v2106_v5 = vrot.slane %v2104_v27, 4 }
 0x129   : > { %v1431_v33 = vadd.f32 %v1361_v62, %v1009_v47 }
 0x12a   : > { %v2110_v23 = vor.u32 %v2109_v8, %v2106_v5 }
 0x12c   : > { %v2302_v38 = vpop.f32.mrf.mxu0 }
 0x12d   : > { %v1648_v47 = vpop.f32.mrf.mxu3  ;;  %4475 = vmatmul.msk.bf16.gmra.mxu2 %vm709_vm4, %v1280_v48  ;;  %v1013_v9 = vpop.f32.mrf.mxu1  ;;  %v1216_v48 = vsel %vm5338_vm7, %v4459_v56, %v1215_v52  ;;  %v4634_v52 = vld [vmem:[%s5152_s29 + $0xb4] sm:$0xf]  ;;  %v2111_v56 = vrot.slane %v2110_v23, 4 }
 0x12e   : > { %v1718_v14 = vadd.f32 %v1648_v47, %v1431_v33  ;;  %v1219_v33 = vsel %vm5338_vm7, %v1217_v25, %v1218_v16  ;;  %v1262_v27 = vunpack.c.l.b16 %v1216_v48  ;;  %v4635_v47 = vld [vmem:[%s5152_s29 + $0xb8] sm:$0xf]  ;;  %v1014_v16 = vadd.f32 %v1013_v9, %v5449_v34 }
 0x12f   : > { %v1263_v19 = vunpack.c.l.b16 %v1219_v33  ;;  %v2128_v5 = vshrl.u32 %v4634_v52, 16  ;;  %v2131_v8 = vshll.u32 %v4634_v52, 16  ;;  %v2141_v48 = vshrl.u32 %v4635_v47, 16  ;;  %v1085_v33 = vld [vmem:[%s5152_s29 + $0xa8] sm:$0xe] }
 0x130   : > { %v1364_v62 = vpop.f32.mrf.mxu2  ;;  %v5707_v44 = vadd.f32 %v2302_v38, %v1718_v14  ;;  %v2120_v38 = vor.u32 %v2119_v21, %v2115_v60  ;;  %v5027_v21 = vld [vmem:[%s5152_s29 + $0xac] sm:$0xf]  ;;  %v2116_v9 = vsel %vm5164_vm3, %v2111_v56, %v2115_v60 }
 0x131   : > { %v1432_v35 = vadd.f32 %v1364_v62, %v1012_v30  ;;  %v1281_v14 = vpack.c.b16 %v1263_v19, %v1262_v27  ;;  %v2137_v62 = vshll.u32 %v4635_v47, 16  ;;  %v2130_v27 = vrot.slane %v2128_v5, 4 }
 0x132   : > { %4588 = vmatmul.msk.bf16.gmra.mxu3 %vm709_vm4, %v4964_v1  ;;  %v2121_v1 = vrot.slane %v2120_v38, 4  ;;  %v2133_v19 = vrot.slane %v2131_v8, 5  ;;  %v2143_v47 = vrot.slane %v2141_v48, 4  ;;  %v4950_v48 = vld [vmem:[%s5152_s29 + $0xa8] sm:$0xff] }
 0x133   : > { %v2139_v38 = vrot.slane %v2137_v62, 5 }
 0x134   : > { %v2305_v50 = vpop.f32.mrf.mxu0  ;;  %v2126_v11 = vsel %vm5164_vm3, %v2121_v1, %v2125_v51 }
 0x135   : > { %v1651_v61 = vpop.f32.mrf.mxu3  ;;  %v1016_v24 = vpop.f32.mrf.mxu1  ;;  %v2204_v56 = vunpack.c.l.b16 %v2126_v11  ;;  %v2144_v8 = vor.u32 %v2143_v47, %v2139_v38 }
 0x136   : > { %v1719_v20 = vadd.f32 %v1651_v61, %v1432_v35  ;;  %v1222_v35 = vrot.slane %v5027_v21, 5  ;;  %v4965_v61 = vld [vmem:[%s5152_s29 + $0xa8] sm:$0xff]  ;;  %v1017_v60 = vadd.f32 %v1016_v24, %v5469_v58 }
 0x137   : > { %4653 = vmatmul.msk.bf16.gmra.mxu0 %vm709_vm4, %v2221_v7  ;;  %v5028_v7 = vld [vmem:[%s5152_s29 + $0xb0] sm:$0x1] }
 0x138   : > { %v1366_v25 = vpop.f32.mrf.mxu2  ;;  %4443 = vmatmul.msk.bf16.gmra.mxu1 %vm709_vm4, %v4949_v3  ;;  %v5721_v30 = vadd.f32 %v2305_v50, %v1719_v20  ;;  %v1225_v23 = vrot.slane %v5028_v7, 5  ;;  %v4460_v20 = vrot.slane %v1085_v33, 9  ;;  %v1224_v52 = vrot.slane %v1222_v35, 4 }
 0x139   : > { %v1433_v41 = vadd.f32 %v1366_v25, %v1014_v16  ;;  %v2203_v16 = vunpack.c.l.b16 %v2116_v9  ;;  %v4636_v25 = vld [vmem:[%s5152_s29 + $0xbc] sm:$0x1] }
 0x13a   : > { %v1226_v5 = vsel %vm5338_vm7, %v1224_v52, %v1225_v23  ;;  %v2147_v58 = vshll.u32 %v4636_v25, 16  ;;  %v4638_v52 = vld [vmem:[%s5152_s29 + $0xc4] sm:$0xf] }
 0x13b   : > { %v2222_v24 = vpack.c.b16 %v2204_v56, %v2203_v16  ;;  %v1265_v11 = vunpack.c.l.b16 %v1226_v5  ;;  %v1086_v16 = vld [vmem:[%s5152_s29 + $0xb4] sm:$0xe]  ;;  %v5030_v56 = vld [vmem:[%s5152_s29 + $0xb8] sm:$0xf]  ;;  %v2165_v5 = vshrl.u32 %v4638_v52, 16 }
 0x13c   : > { %v2307_v34 = vpop.f32.mrf.mxu0  ;;  %v1229_v25 = vrot.slane %v5030_v56, 5 }
 0x13d   : > { %v1653_v50 = vpop.f32.mrf.mxu3  ;;  %4476 = vmatmul.msk.bf16.gmra.mxu2 %vm709_vm4, %v1281_v14  ;;  %v1018_v3 = vpop.f32.mrf.mxu1  ;;  %v2134_v14 = vor.u32 %v2133_v19, %v2130_v27  ;;  %v2149_v27 = vrot.slane %v2147_v58, 5  ;;  %v4637_v19 = vld [vmem:[%s5152_s29 + $0xc0] sm:$0xf]  ;;  %v5031_v58 = vld [vmem:[%s5152_s29 + $0x14] sm:$0x1] }
 0x13e   : > { %v1720_v4 = vadd.f32 %v1653_v50, %v1433_v41  ;;  %v1223_v41 = vsel %vm5338_vm7, %v4460_v20, %v1222_v35  ;;  %v2145_v35 = vrot.slane %v2144_v8, 4  ;;  %v1019_v23 = vadd.f32 %v1018_v3, %v5486_v28 }
 0x13f   : > { %v1264_v9 = vunpack.c.l.b16 %v1223_v41  ;;  %v2135_v50 = vrot.slane %v2134_v14, 4  ;;  %v2152_v3 = vshrl.u32 %v4637_v19, 16  ;;  %v2155_v14 = vshll.u32 %v4637_v19, 16  ;;  %v4966_v19 = vld [vmem:[%s5152_s29 + $0xb4] sm:$0xff] }
 0x140   : > { %v1369_v1 = vpop.f32.mrf.mxu2  ;;  %v5734_v51 = vadd.f32 %v2307_v34, %v1720_v4  ;;  %v5029_v4 = vld [vmem:[%s5152_s29 + $0x10] sm:$0xf]  ;;  %v2150_v28 = vsel %vm5164_vm3, %v2145_v35, %v2149_v27  ;;  %v2161_v41 = vshll.u32 %v4638_v52, 16  ;;  %v1231_v35 = vrot.slane %v1229_v25, 4  ;;  %v4657_v27 = vld [vmem:[%s5152_s29 + $0xc] sm:$0xe] }
 0x141   : > { %v1434_v21 = vadd.f32 %v1369_v1, %v1017_v60  ;;  %v1282_v60 = vpack.c.b16 %v1265_v11, %v1264_v9  ;;  %v5032_v9 = vld [vmem:[%s5152_s29 + $0xbc] sm:$0x1]  ;;  %v4673_v52 = vrot.slane %v4657_v27, 9 }
 0x142   : > { %4589 = vmatmul.msk.bf16.gmra.mxu3 %vm709_vm4, %v4965_v61  ;;  %v2463_v61 = vrot.slane %v5029_v4, 5  ;;  %v2154_v4 = vrot.slane %v2152_v3, 4 }
 0x144   : > { %v2310_v62 = vpop.f32.mrf.mxu0  ;;  %v2465_v8 = vrot.slane %v2463_v61, 4 }
 0x145   : > { %v1656_v33 = vpop.f32.mrf.mxu3  ;;  %v1021_v34 = vpop.f32.mrf.mxu1 }
 0x146   : > { %v1721_v7 = vadd.f32 %v1656_v33, %v1434_v21  ;;  %v2140_v21 = vsel %vm5164_vm3, %v2135_v50, %v2139_v38  ;;  %v4461_v33 = vrot.slane %v1086_v16, 9  ;;  %v1022_v56 = vadd.f32 %v1021_v34, %v5506_v53 }
 0x147   : > { %4654 = vmatmul.msk.bf16.gmra.mxu0 %vm709_vm4, %v2222_v24  ;;  %v2466_v24 = vrot.slane %v5031_v58, 5  ;;  %v2205_v38 = vunpack.c.l.b16 %v2140_v21  ;;  %v2163_v16 = vrot.slane %v2161_v41, 5  ;;  %v2167_v58 = vrot.slane %v2165_v5, 4  ;;  %v4639_v21 = vld [vmem:[%s5152_s29 + $0xc8] sm:$0x1] }
 0x148   : > { %v1371_v20 = vpop.f32.mrf.mxu2  ;;  %4444 = vmatmul.msk.bf16.gmra.mxu1 %vm709_vm4, %v4950_v48  ;;  %v5750_v1 = vadd.f32 %v2310_v62, %v1721_v7  ;;  %v1232_v62 = vrot.slane %v5032_v9, 5  ;;  %v2206_v7 = vunpack.c.l.b16 %v2150_v28  ;;  %v2464_v28 = vsel %vm5338_vm7, %v4673_v52, %v2463_v61  ;;  %v4819_v41 = vld [vmem:[%s5152_s29 + $0x18] sm:$0xf] }
 0x149   : > { %v1435_v47 = vadd.f32 %v1371_v20, %v1019_v23  ;;  %v2157_v20 = vrot.slane %v2155_v14, 5  ;;  %v2575_v53 = vunpack.c.l.b16 %v2464_v28  ;;  %v2171_v27 = vshll.u32 %v4639_v21, 16 }
 0x14a   : > { %v1233_v14 = vsel %vm5338_vm7, %v1231_v35, %v1232_v62  ;;  %v2223_v5 = vpack.c.b16 %v2206_v7, %v2205_v38  ;;  %v3131_v62 = vshrl.u32 %v4819_v41, 16  ;;  %v3134_v35 = vshll.u32 %v4819_v41, 16 }
 0x14c   : > { %v2312_v48 = vpop.f32.mrf.mxu0  ;;  %v3133_v21 = vrot.slane %v3131_v62, 4 }
 0x14d   : > { %v1658_v11 = vpop.f32.mrf.mxu3  ;;  %4477 = vmatmul.msk.bf16.gmra.mxu2 %vm709_vm4, %v1282_v60  ;;  %v1023_v50 = vpop.f32.mrf.mxu1  ;;  %v1230_v60 = vsel %vm5338_vm7, %v4461_v33, %v1229_v25  ;;  %v5774_v25 = vld [vmem:[%s5152_s29 + $0x1c] sm:$0xf]  ;;  %v2168_v33 = vor.u32 %v2167_v58, %v2163_v16 }
 0x14e   : > { %v1722_v23 = vadd.f32 %v1658_v11, %v1435_v47  ;;  %v2467_v47 = vsel %vm5338_vm7, %v2465_v8, %v2466_v24  ;;  %v2158_v11 = vor.u32 %v2157_v20, %v2154_v4  ;;  %v4951_v24 = vld [vmem:[%s5152_s29 + $0xb4] sm:$0xff]  ;;  %v3144_v38 = vshrl.u32 %v5774_v25, 16 }
 0x14f   : > { %v2576_v34 = vunpack.c.l.b16 %v2467_v47  ;;  %v1024_v4 = vadd.f32 %v1023_v50, %v5526_v17 }
 0x150   : > { %v1374_v9 = vpop.f32.mrf.mxu2  ;;  %v5778_v52 = vadd.f32 %v2312_v48, %v1722_v23  ;;  %v2159_v48 = vrot.slane %v2158_v11, 4  ;;  %v2169_v23 = vrot.slane %v2168_v33, 4  ;;  %v3146_v41 = vrot.slane %v3144_v38, 4 }
 0x151   : > { %v1436_v3 = vadd.f32 %v1374_v9, %v1022_v56  ;;  %v5776_v61 = vpack.c.b16 %v2576_v34, %v2575_v53  ;;  %v1266_v56 = vunpack.c.l.b16 %v1230_v60  ;;  %v1267_v9 = vunpack.c.l.b16 %v1233_v14 }
 0x152   : > { %4590 = vmatmul.msk.bf16.gmra.mxu3 %vm709_vm4, %v4966_v19  ;;  %6533 = vst [vmem:[#allocation2_spill] sm:$0xff] %v5778_v52  ;;  %v3140_v19 = vshll.u32 %v5774_v25, 16  ;;  %v2173_v60 = vrot.slane %v2171_v27, 5  ;;  %v3136_v14 = vrot.slane %v3134_v35, 5  ;;  %v2164_v17 = vsel %vm5164_vm3, %v2159_v48, %v2163_v16  ;;  %v4884_v48 = vld [vmem:[%s5152_s29 + $0x18] sm:$0xe] }
 0x153   : > { %v1283_v58 = vpack.c.b16 %v1267_v9, %v1266_v56  ;;  %v4967_v9 = vld [vmem:[%s5152_s29 + $0xc0] sm:$0xff]  ;;  %v2207_v16 = vunpack.c.l.b16 %v2164_v17 }
 0x154   : > { %v2315_v8 = vpop.f32.mrf.mxu0  ;;  %v3142_v34 = vrot.slane %v3140_v19, 5  ;;  %v2174_v50 = vsel %vm5164_vm3, %v2169_v23, %v2173_v60  ;;  %v3137_v27 = vor.u32 %v3136_v14, %v3133_v21  ;;  %v4822_v23 = vld [vmem:[%s5152_s29 + $0x24] sm:$0xf]  ;;  %v5804_v60 = vld [vmem:[%s5152_s29 + $0x28] sm:$0xf] }
 0x155   : > { %v1661_v28 = vpop.f32.mrf.mxu3  ;;  %v1026_v47 = vpop.f32.mrf.mxu1  ;;  %v2208_v35 = vunpack.c.l.b16 %v2174_v50 }
 0x156   : > { %v1723_v7 = vadd.f32 %v1661_v28, %v1436_v3  ;;  %v5789_v3 = vld [vmem:[%s5152_s29 + $0x20] sm:$0x1]  ;;  %v1027_v62 = vadd.f32 %v1026_v47, %v5549_v2  ;;  %v3138_v38 = vrot.slane %v3137_v27, 4  ;;  %v5033_v47 = vld [vmem:[%s5152_s29 + $0x1c] sm:$0xf] }
 0x157   : > { %4655 = vmatmul.msk.bf16.gmra.mxu0 %vm709_vm4, %v2223_v5  ;;  %v2470_v14 = vrot.slane %v5033_v47, 5  ;;  %v4658_v27 = vld [vmem:[%s5152_s29 + $0x18] sm:$0xe] }
 0x158   : > { %v1376_v20 = vpop.f32.mrf.mxu2  ;;  %4445 = vmatmul.msk.bf16.gmra.mxu1 %vm709_vm4, %v4951_v24  ;;  %v5786_v52 = vadd.f32 %v2315_v8, %v1723_v7  ;;  %v3147_v24 = vor.u32 %v3146_v41, %v3142_v34  ;;  %v3150_v8 = vshll.u32 %v5789_v3, 16  ;;  %v3143_v17 = vsel %vm5164_vm3, %v3138_v38, %v3142_v34 }
 0x159   : > { %v1437_v53 = vadd.f32 %v1376_v20, %v1024_v4  ;;  %v2224_v20 = vpack.c.b16 %v2208_v35, %v2207_v16  ;;  %v3805_v34 = vrot.slane %v5789_v3, 5  ;;  %v5034_v16 = vld [vmem:[%s5152_s29 + $0x20] sm:$0x1]  ;;  %v4674_v38 = vrot.slane %v4658_v27, 9 }
 0x15a   : > { %v3148_v7 = vrot.slane %v3147_v24, 4  ;;  %v3152_v4 = vrot.slane %v3150_v8, 5  ;;  %v3155_v24 = vshrl.u32 %v4822_v23, 16  ;;  %v3158_v8 = vshll.u32 %v4822_v23, 16 }
 0x15b   : > { %v2473_v35 = vrot.slane %v5034_v16, 5  ;;  %v2471_v27 = vsel %vm5338_vm7, %v4674_v38, %v2470_v14  ;;  %v4825_v38 = vld [vmem:[%s5152_s29 + $0x30] sm:$0xf] }
 0x15c   : > { %v2317_v5 = vpop.f32.mrf.mxu0  ;;  %v3153_v50 = vsel %vm5164_vm3, %v3148_v7, %v3152_v4  ;;  %v2472_v7 = vrot.slane %v2470_v14, 4  ;;  %v3160_v3 = vrot.slane %v3158_v8, 5 }
 0x15d   : > { %v1663_v11 = vpop.f32.mrf.mxu3  ;;  %4478 = vmatmul.msk.bf16.gmra.mxu2 %vm709_vm4, %v1283_v58  ;;  %v1028_v33 = vpop.f32.mrf.mxu1  ;;  %v3802_v58 = vrot.slane %v5774_v25, 5  ;;  %v3517_v23 = vunpack.c.l.b16 %v3153_v50 }
 0x15e   : > { %v1724_v56 = vadd.f32 %v1663_v11, %v1437_v53  ;;  %v4900_v11 = vrot.slane %v4884_v48, 9  ;;  %v4968_v48 = vld [vmem:[%s5152_s29 + $0x18] sm:$0xff]  ;;  %v2474_v50 = vsel %vm5338_vm7, %v2472_v7, %v2473_v35  ;;  %v5844_v7 = vld [vmem:[%s5152_s29 + $0x34] sm:$0xf] }
 0x160   : > { %v1379_v28 = vpop.f32.mrf.mxu2  ;;  %v5806_v21 = vadd.f32 %v2317_v5, %v1724_v56  ;;  %v3164_v5 = vshll.u32 %v5804_v60, 16  ;;  %v3168_v56 = vshrl.u32 %v5804_v60, 16 }
 0x161   : > { %v1438_v19 = vadd.f32 %v1379_v28, %v1027_v62  ;;  %v3804_v62 = vrot.slane %v3802_v58, 4 }
 0x162   : > { %4591 = vmatmul.msk.bf16.gmra.mxu3 %vm709_vm4, %v4967_v9  ;;  %v1029_v9 = vadd.f32 %v1028_v33, %v5569_v29  ;;  %v3157_v33 = vrot.slane %v3155_v24, 4  ;;  %v5827_v47 = vrot.slane %v3164_v5, 5 }
 0x164   : > { %v2320_v2 = vpop.f32.mrf.mxu0  ;;  %v3161_v5 = vor.u32 %v3160_v3, %v3157_v33  ;;  %v4885_v33 = vld [vmem:[%s5152_s29 + $0x24] sm:$0xe] }
 0x165   : > { %v1666_v53 = vpop.f32.mrf.mxu3  ;;  %v1031_v41 = vpop.f32.mrf.mxu1 }
 0x166   : > { %v1725_v25 = vadd.f32 %v1666_v53, %v1438_v19  ;;  %v3516_v19 = vunpack.c.l.b16 %v3143_v17  ;;  %v3170_v53 = vrot.slane %v3168_v56, 4  ;;  %v1032_v14 = vadd.f32 %v1031_v41, %v5451_v37 }
 0x167   : > { %4656 = vmatmul.msk.bf16.gmra.mxu0 %vm709_vm4, %v2224_v20  ;;  %v3803_v20 = vsel %vm5338_vm7, %v4900_v11, %v3802_v58  ;;  %v3809_v37 = vrot.slane %v5804_v60, 5 }
 0x168   : > { %v1381_v28 = vpop.f32.mrf.mxu2  ;;  %4690 = vmatmul.msk.bf16.vlgmr.msra.gmra.mxu1 %vm709_vm4, %v5776_v61  ;;  %v5825_v29 = vadd.f32 %v2320_v2, %v1725_v25  ;;  %v3806_v61 = vsel %vm5338_vm7, %v3804_v62, %v3805_v34  ;;  %v3548_v2 = vpack.c.b16 %v3517_v23, %v3516_v19  ;;  %v3914_v11 = vunpack.c.l.b16 %v3803_v20 }
 0x169   : > { %v1439_v4 = vadd.f32 %v1381_v28, %v1029_v9  ;;  %v5836_v9 = vld [vmem:[%s5152_s29 + $0x2c] sm:$0x1]  ;;  %v3915_v8 = vunpack.c.l.b16 %v3806_v61  ;;  %v3171_v56 = vor.u32 %v3170_v53, %v5827_v47  ;;  %v2577_v62 = vunpack.c.l.b16 %v2471_v27 }
 0x16a   : > { %v2578_v34 = vunpack.c.l.b16 %v2474_v50  ;;  %v3174_v16 = vshll.u32 %v5836_v9, 16  ;;  %v3179_v53 = vshrl.u32 %v4825_v38, 16  ;;  %v3182_v61 = vshll.u32 %v4825_v38, 16 }
 0x16b   : > { %v3946_v19 = vpack.c.b16 %v3915_v8, %v3914_v11  ;;  %v3188_v27 = vshll.u32 %v5844_v7, 16  ;;  %v3192_v50 = vshrl.u32 %v5844_v7, 16  ;;  %v5035_v11 = vld [vmem:[%s5152_s29 + $0x28] sm:$0xf]  ;;  %v3812_v60 = vrot.slane %v5836_v9, 5 }
 0x16c   : > { %v2322_v17 = vpop.f32.mrf.mxu0  ;;  %v2608_v23 = vpack.c.b16 %v2578_v34, %v2577_v62  ;;  %v3176_v20 = vrot.slane %v3174_v16, 5  ;;  %v2477_v8 = vrot.slane %v5035_v11, 5  ;;  %v4901_v62 = vrot.slane %v4885_v33, 9  ;;  %v4969_v11 = vld [vmem:[%s5152_s29 + $0x24] sm:$0xff] }
 0x16d   : > { %v1668_v58 = vpop.f32.mrf.mxu3  ;;  %4803 = vmatmul.msk.bf16.vlgmr.msra.gmra.mxu2 %vm709_vm4, %v4968_v48  ;;  %v1033_v24 = vpop.f32.mrf.mxu1  ;;  %v3172_v48 = vrot.slane %v3171_v56, 4  ;;  %v3184_v33 = vrot.slane %v3182_v61, 5  ;;  %v5865_v9 = vrot.slane %v3188_v27, 5 }
 0x16e   : > { %v1726_v25 = vadd.f32 %v1668_v58, %v1439_v4  ;;  %v3162_v4 = vrot.slane %v3161_v5, 4  ;;  %v5036_v5 = vld [vmem:[%s5152_s29 + $0x2c] sm:$0x1] }
 0x16f   : > { %v2480_v56 = vrot.slane %v5036_v5, 5  ;;  %v3177_v16 = vsel %vm5164_vm3, %v3172_v48, %v3176_v20  ;;  %v3810_v20 = vsel %vm5338_vm7, %v4901_v62, %v3809_v37 }
 0x170   : > { %v1384_v35 = vpop.f32.mrf.mxu2  ;;  %v5849_v41 = vadd.f32 %v2322_v17, %v1726_v25  ;;  %v4659_v17 = vld [vmem:[%s5152_s29 + $0x24] sm:$0xe]  ;;  %v1034_v25 = vadd.f32 %v1033_v24, %v5472_v63  ;;  %v3167_v34 = vsel %vm5164_vm3, %v3162_v4, %v5827_v47  ;;  %v2479_v24 = vrot.slane %v2477_v8, 4 }
 0x171   : > { %v1440_v28 = vadd.f32 %v1384_v35, %v1032_v14  ;;  %v3811_v35 = vrot.slane %v3809_v37, 4  ;;  %v4675_v63 = vrot.slane %v4659_v17, 9  ;;  %v3518_v47 = vunpack.c.l.b16 %v3167_v34 }
 0x172   : > { %4868 = vmatmul.msk.bf16.vlgmr.msra.gmra.mxu3 %vm709_vm4, %v3548_v2  ;;  %6534 = vst [vmem:[#allocation3_spill] sm:$0xff] %v5849_v41  ;;  %v3519_v4 = vunpack.c.l.b16 %v3177_v16  ;;  %v5871_v41 = vld [vmem:[%s5152_s29 + $0x38] sm:$0x1] }
 0x173   : > { %v3198_v37 = vshll.u32 %v5871_v41, 16 }
 0x174   : > { %v2325_v3 = vpop.f32.mrf.mxu0  ;;  %v3549_v17 = vpack.c.b16 %v3519_v4, %v3518_v47  ;;  %v5037_v4 = vld [vmem:[%s5152_s29 + $0x34] sm:$0xf] }
 0x175   : > { %v1671_v58 = vpop.f32.mrf.mxu3  ;;  %v1036_v2 = vpop.f32.mrf.mxu1 }
 0x176   : > { %v1727_v14 = vadd.f32 %v1671_v58, %v1440_v28  ;;  %v3181_v28 = vrot.slane %v3179_v53, 4  ;;  %v3194_v58 = vrot.slane %v3192_v50, 4  ;;  %v2481_v50 = vsel %vm5338_vm7, %v2479_v24, %v2480_v56  ;;  %v5890_v24 = vld [vmem:[%s5152_s29 + $0x40] sm:$0xf] }
 0x177   : > { %4917 = vmatmul.msk.bf16.vlgmr.msra.gmra.mxu0 %vm709_vm4, %v3946_v19 }
 0x178   : > { %v1386_v38 = vpop.f32.mrf.mxu2  ;;  %4691 = vmatmul.msk.bf16.gmra.mxu1 %vm709_vm4, %v2608_v23  ;;  %v5868_v5 = vadd.f32 %v2325_v3, %v1727_v14  ;;  %v3813_v23 = vsel %vm5338_vm7, %v3811_v35, %v3812_v60  ;;  %v3185_v53 = vor.u32 %v3184_v33, %v3181_v28  ;;  %v2478_v3 = vsel %vm5338_vm7, %v4675_v63, %v2477_v8 }
 0x179   : > { %v1441_v19 = vadd.f32 %v1386_v38, %v1034_v25  ;;  %v3195_v14 = vor.u32 %v3194_v58, %v5865_v9  ;;  %v1037_v60 = vadd.f32 %v1036_v2, %v5489_v22  ;;  %v3916_v25 = vunpack.c.l.b16 %v3810_v20  ;;  %v4886_v58 = vld [vmem:[%s5152_s29 + $0x30] sm:$0xe] }
 0x17a   : > { %v3917_v34 = vunpack.c.l.b16 %v3813_v23  ;;  %v2579_v35 = vunpack.c.l.b16 %v2478_v3  ;;  %v2580_v8 = vunpack.c.l.b16 %v2481_v50  ;;  %v3186_v28 = vrot.slane %v3185_v53, 4 }
 0x17b   : > { %v3196_v56 = vrot.slane %v3195_v14, 4  ;;  %v3200_v33 = vrot.slane %v3198_v37, 5  ;;  %v3816_v63 = vrot.slane %v5844_v7, 5  ;;  %v2484_v20 = vrot.slane %v5037_v4, 5  ;;  %v4660_v7 = vld [vmem:[%s5152_s29 + $0x30] sm:$0xe] }
 0x17c   : > { %v2327_v48 = vpop.f32.mrf.mxu0  ;;  %v2609_v47 = vpack.c.b16 %v2580_v8, %v2579_v35  ;;  %v4902_v50 = vrot.slane %v4886_v58, 9 }
 0x17d   : > { %v1673_v61 = vpop.f32.mrf.mxu3  ;;  %4804 = vmatmul.msk.bf16.gmra.mxu2 %vm709_vm4, %v4969_v11  ;;  %v1038_v27 = vpop.f32.mrf.mxu1  ;;  %v4828_v11 = vld [vmem:[%s5152_s29 + $0x3c] sm:$0xf]  ;;  %v3201_v3 = vsel %vm5164_vm3, %v3196_v56, %v3200_v33  ;;  %v4970_v33 = vld [vmem:[%s5152_s29 + $0x30] sm:$0xff] }
 0x17e   : > { %v1728_v62 = vadd.f32 %v1673_v61, %v1441_v19  ;;  %v3947_v19 = vpack.c.b16 %v3917_v34, %v3916_v25  ;;  %v3191_v61 = vsel %vm5164_vm3, %v3186_v28, %v5865_v9  ;;  %v3203_v14 = vshrl.u32 %v4828_v11, 16  ;;  %v5038_v34 = vld [vmem:[%s5152_s29 + $0x38] sm:$0x1] }
 0x17f   : > { %v3818_v25 = vrot.slane %v3816_v63, 4  ;;  %v3819_v9 = vrot.slane %v5871_v41, 5  ;;  %v3520_v8 = vunpack.c.l.b16 %v3191_v61  ;;  %v2486_v28 = vrot.slane %v2484_v20, 4 }
 0x180   : > { %v1389_v16 = vpop.f32.mrf.mxu2  ;;  %v5892_v22 = vadd.f32 %v2327_v48, %v1728_v62  ;;  %v3206_v48 = vshll.u32 %v4828_v11, 16  ;;  %v3212_v62 = vshll.u32 %v5890_v24, 16  ;;  %v3521_v58 = vunpack.c.l.b16 %v3201_v3 }
 0x181   : > { %v1442_v38 = vadd.f32 %v1389_v16, %v1037_v60  ;;  %v1039_v60 = vadd.f32 %v1038_v27, %v5510_v55  ;;  %v2487_v16 = vrot.slane %v5038_v34, 5  ;;  %v3817_v11 = vsel %vm5338_vm7, %v4902_v50, %v3816_v63 }
 0x182   : > { %4869 = vmatmul.msk.bf16.gmra.mxu3 %vm709_vm4, %v3549_v17  ;;  %v3216_v17 = vshrl.u32 %v5890_v24, 16  ;;  %v3205_v55 = vrot.slane %v3203_v14, 4  ;;  %v3208_v27 = vrot.slane %v3206_v48, 5  ;;  %v5913_v41 = vrot.slane %v3212_v62, 5 }
 0x183   : > { %v2488_v3 = vsel %vm5338_vm7, %v2486_v28, %v2487_v16  ;;  %v3918_v50 = vunpack.c.l.b16 %v3817_v11  ;;  %v4887_v11 = vld [vmem:[%s5152_s29 + $0x3c] sm:$0xe] }
 0x184   : > { %v2330_v2 = vpop.f32.mrf.mxu0  ;;  %v3218_v4 = vrot.slane %v3216_v17, 4  ;;  %v3209_v62 = vor.u32 %v3208_v27, %v3205_v55 }
 0x185   : > { %v1676_v23 = vpop.f32.mrf.mxu3  ;;  %v1041_v53 = vpop.f32.mrf.mxu1 }
 0x186   : > { %v1729_v37 = vadd.f32 %v1676_v23, %v1442_v38  ;;  %v4676_v38 = vrot.slane %v4660_v7, 9  ;;  %v5922_v7 = vld [vmem:[%s5152_s29 + $0x44] sm:$0x1]  ;;  %v3219_v17 = vor.u32 %v3218_v4, %v5913_v41  ;;  %v3210_v28 = vrot.slane %v3209_v62, 4 }
 0x187   : > { %4918 = vmatmul.msk.bf16.gmra.mxu0 %vm709_vm4, %v3947_v19 }
 0x188   : > { %v1391_v35 = vpop.f32.mrf.mxu2  ;;  %4692 = vmatmul.msk.bf16.gmra.mxu1 %vm709_vm4, %v2609_v47  ;;  %v5911_v19 = vadd.f32 %v2330_v2, %v1729_v37  ;;  %v3820_v47 = vsel %vm5338_vm7, %v3818_v25, %v3819_v9  ;;  %v2485_v61 = vsel %vm5338_vm7, %v4676_v38, %v2484_v20  ;;  %v3550_v2 = vpack.c.b16 %v3521_v58, %v3520_v8  ;;  %v5930_v38 = vld [vmem:[%s5152_s29 + $0x4c] sm:$0xf] }
 0x189   : > { %v1443_v56 = vadd.f32 %v1391_v35, %v1039_v60  ;;  %v3919_v48 = vunpack.c.l.b16 %v3820_v47  ;;  %v1042_v20 = vadd.f32 %v1041_v53, %v5533_v26  ;;  %v2581_v60 = vunpack.c.l.b16 %v2485_v61  ;;  %v4831_v35 = vld [vmem:[%s5152_s29 + $0x48] sm:$0xf] }
 0x18a   : > { %v2582_v25 = vunpack.c.l.b16 %v2488_v3  ;;  %v3222_v9 = vshll.u32 %v5922_v7, 16  ;;  %v3823_v26 = vrot.slane %v5890_v24, 5  ;;  %v3227_v27 = vshrl.u32 %v4831_v35, 16 }
 0x18b   : > { %v3948_v8 = vpack.c.b16 %v3919_v48, %v3918_v50  ;;  %v3230_v4 = vshll.u32 %v4831_v35, 16  ;;  %v3236_v47 = vshll.u32 %v5930_v38, 16  ;;  %v3240_v61 = vshrl.u32 %v5930_v38, 16  ;;  %v5040_v48 = vld [vmem:[%s5152_s29 + $0x44] sm:$0x1] }
 0x18c   : > { %v2332_v23 = vpop.f32.mrf.mxu0  ;;  %v3224_v58 = vrot.slane %v3222_v9, 5  ;;  %v2494_v62 = vrot.slane %v5040_v48, 5  ;;  %v3826_v24 = vrot.slane %v5922_v7, 5  ;;  %v3825_v9 = vrot.slane %v3823_v26, 4  ;;  %v5957_v48 = vld [vmem:[%s5152_s29 + $0x50] sm:$0x1] }
 0x18d   : > { %v1678_v63 = vpop.f32.mrf.mxu3  ;;  %4805 = vmatmul.msk.bf16.gmra.mxu2 %vm709_vm4, %v4970_v33  ;;  %v1043_v14 = vpop.f32.mrf.mxu1  ;;  %v2610_v33 = vpack.c.b16 %v2582_v25, %v2581_v60  ;;  %v3215_v60 = vsel %vm5164_vm3, %v3210_v28, %v5913_v41  ;;  %v3232_v35 = vrot.slane %v3230_v4, 5  ;;  %v5951_v7 = vrot.slane %v3236_v47, 5 }
 0x18e   : > { %v1730_v37 = vadd.f32 %v1678_v63, %v1443_v56  ;;  %v3220_v56 = vrot.slane %v3219_v17, 4  ;;  %v3522_v41 = vunpack.c.l.b16 %v3215_v60 }
 0x190   : > { %v1394_v34 = vpop.f32.mrf.mxu2  ;;  %v5935_v53 = vadd.f32 %v2332_v23, %v1730_v37  ;;  %v4661_v23 = vld [vmem:[%s5152_s29 + $0x3c] sm:$0xe]  ;;  %v1044_v37 = vadd.f32 %v1043_v14, %v5551_v43  ;;  %v3225_v25 = vsel %vm5164_vm3, %v3220_v56, %v3224_v58 }
 0x191   : > { %v1444_v16 = vadd.f32 %v1394_v34, %v1042_v20  ;;  %v4903_v20 = vrot.slane %v4887_v11, 9  ;;  %v3242_v11 = vrot.slane %v3240_v61, 4  ;;  %v4677_v43 = vrot.slane %v4661_v23, 9 }
 0x192   : > { %4870 = vmatmul.msk.bf16.gmra.mxu3 %vm709_vm4, %v3550_v2  ;;  %v5039_v2 = vld [vmem:[%s5152_s29 + $0x40] sm:$0xf]  ;;  %v3523_v28 = vunpack.c.l.b16 %v3225_v25 }
 0x193   : > { %v2491_v50 = vrot.slane %v5039_v2, 5  ;;  %v3824_v58 = vsel %vm5338_vm7, %v4903_v20, %v3823_v26  ;;  %v3246_v26 = vshll.u32 %v5957_v48, 16 }
 0x194   : > { %v2335_v55 = vpop.f32.mrf.mxu0  ;;  %v3551_v23 = vpack.c.b16 %v3523_v28, %v3522_v41  ;;  %v5041_v28 = vld [vmem:[%s5152_s29 + $0x4c] sm:$0xf] }
 0x195   : > { %v1681_v3 = vpop.f32.mrf.mxu3  ;;  %v1046_v63 = vpop.f32.mrf.mxu1  ;;  %v2493_v14 = vrot.slane %v2491_v50, 4 }
 0x196   : > { %v1731_v17 = vadd.f32 %v1681_v3, %v1444_v16  ;;  %v3229_v16 = vrot.slane %v3227_v27, 4  ;;  %v4971_v3 = vld [vmem:[%s5152_s29 + $0x3c] sm:$0xff] }
 0x197   : > { %4919 = vmatmul.msk.bf16.gmra.mxu0 %vm709_vm4, %v3948_v8  ;;  %v2495_v61 = vsel %vm5338_vm7, %v2493_v14, %v2494_v62  ;;  %v5976_v14 = vld [vmem:[%s5152_s29 + $0x58] sm:$0xf] }
 0x198   : > { %v1396_v34 = vpop.f32.mrf.mxu2  ;;  %4693 = vmatmul.msk.bf16.gmra.mxu1 %vm709_vm4, %v2610_v33  ;;  %v5954_v2 = vadd.f32 %v2335_v55, %v1731_v17  ;;  %v3827_v33 = vsel %vm5338_vm7, %v3825_v9, %v3826_v24  ;;  %v3233_v27 = vor.u32 %v3232_v35, %v3229_v16  ;;  %v2492_v55 = vsel %vm5338_vm7, %v4677_v43, %v2491_v50 }
 0x199   : > { %v1445_v8 = vadd.f32 %v1396_v34, %v1044_v37  ;;  %v3243_v17 = vor.u32 %v3242_v11, %v5951_v7  ;;  %v1047_v24 = vadd.f32 %v1046_v63, %v5572_v40  ;;  %v3920_v37 = vunpack.c.l.b16 %v3824_v58  ;;  %v4888_v11 = vld [vmem:[%s5152_s29 + $0x48] sm:$0xe] }
 0x19a   : > { %v3921_v60 = vunpack.c.l.b16 %v3827_v33  ;;  %v2583_v9 = vunpack.c.l.b16 %v2492_v55  ;;  %v2584_v50 = vunpack.c.l.b16 %v2495_v61  ;;  %v3234_v16 = vrot.slane %v3233_v27, 4 }
 0x19b   : > { %v3244_v62 = vrot.slane %v3243_v17, 4  ;;  %v3248_v35 = vrot.slane %v3246_v26, 5  ;;  %v3830_v43 = vrot.slane %v5930_v38, 5  ;;  %v2498_v58 = vrot.slane %v5041_v28, 5  ;;  %v4662_v38 = vld [vmem:[%s5152_s29 + $0x48] sm:$0xe] }
 0x19c   : > { %v2337_v56 = vpop.f32.mrf.mxu0  ;;  %v2611_v41 = vpack.c.b16 %v2584_v50, %v2583_v9  ;;  %v4904_v61 = vrot.slane %v4888_v11, 9 }
 0x19d   : > { %v1683_v4 = vpop.f32.mrf.mxu3  ;;  %4806 = vmatmul.msk.bf16.gmra.mxu2 %vm709_vm4, %v4971_v3  ;;  %v1048_v47 = vpop.f32.mrf.mxu1  ;;  %v4834_v3 = vld [vmem:[%s5152_s29 + $0x54] sm:$0xf]  ;;  %v3249_v55 = vsel %vm5164_vm3, %v3244_v62, %v3248_v35  ;;  %v4972_v35 = vld [vmem:[%s5152_s29 + $0x48] sm:$0xff] }
 0x19e   : > { %v1732_v20 = vadd.f32 %v1683_v4, %v1445_v8  ;;  %v3949_v8 = vpack.c.b16 %v3921_v60, %v3920_v37  ;;  %v3239_v4 = vsel %vm5164_vm3, %v3234_v16, %v5951_v7  ;;  %v3251_v17 = vshrl.u32 %v4834_v3, 16  ;;  %v5042_v60 = vld [vmem:[%s5152_s29 + $0x50] sm:$0x1] }
 0x19f   : > { %v3832_v37 = vrot.slane %v3830_v43, 4  ;;  %v3833_v7 = vrot.slane %v5957_v48, 5  ;;  %v3524_v50 = vunpack.c.l.b16 %v3239_v4  ;;  %v2500_v16 = vrot.slane %v2498_v58, 4 }
 0x1a0   : > { %v1399_v25 = vpop.f32.mrf.mxu2  ;;  %v5978_v40 = vadd.f32 %v2337_v56, %v1732_v20  ;;  %v3254_v56 = vshll.u32 %v4834_v3, 16  ;;  %v3260_v20 = vshll.u32 %v5976_v14, 16  ;;  %v3525_v11 = vunpack.c.l.b16 %v3249_v55 }
 0x1a1   : > { %v1446_v34 = vadd.f32 %v1399_v25, %v1047_v24  ;;  %v1049_v24 = vadd.f32 %v1048_v47, %v5587_v10  ;;  %v2501_v25 = vrot.slane %v5042_v60, 5  ;;  %v3831_v3 = vsel %vm5338_vm7, %v4904_v61, %v3830_v43 }
 0x1a2   : > { %4871 = vmatmul.msk.bf16.gmra.mxu3 %vm709_vm4, %v3551_v23  ;;  %v3264_v23 = vshrl.u32 %v5976_v14, 16  ;;  %v3253_v10 = vrot.slane %v3251_v17, 4  ;;  %v3256_v47 = vrot.slane %v3254_v56, 5  ;;  %v5999_v48 = vrot.slane %v3260_v20, 5 }
 0x1a3   : > { %v2502_v55 = vsel %vm5338_vm7, %v2500_v16, %v2501_v25  ;;  %v3922_v61 = vunpack.c.l.b16 %v3831_v3  ;;  %v4889_v3 = vld [vmem:[%s5152_s29 + $0x54] sm:$0xe] }
 0x1a4   : > { %v2340_v63 = vpop.f32.mrf.mxu0  ;;  %v3266_v28 = vrot.slane %v3264_v23, 4  ;;  %v3257_v20 = vor.u32 %v3256_v47, %v3253_v10 }
 0x1a5   : > { %v1686_v33 = vpop.f32.mrf.mxu3  ;;  %v1051_v27 = vpop.f32.mrf.mxu1 }
 0x1a6   : > { %v1733_v26 = vadd.f32 %v1686_v33, %v1446_v34  ;;  %v4678_v34 = vrot.slane %v4662_v38, 9  ;;  %v6008_v38 = vld [vmem:[%s5152_s29 + $0x5c] sm:$0x1]  ;;  %v3267_v23 = vor.u32 %v3266_v28, %v5999_v48  ;;  %v3258_v16 = vrot.slane %v3257_v20, 4 }
 0x1a7   : > { %4920 = vmatmul.msk.bf16.gmra.mxu0 %vm709_vm4, %v3949_v8 }
 0x1a8   : > { %v1401_v9 = vpop.f32.mrf.mxu2  ;;  %4694 = vmatmul.msk.bf16.gmra.mxu1 %vm709_vm4, %v2611_v41  ;;  %v5997_v8 = vadd.f32 %v2340_v63, %v1733_v26  ;;  %v3834_v41 = vsel %vm5338_vm7, %v3832_v37, %v3833_v7  ;;  %v2499_v4 = vsel %vm5338_vm7, %v4678_v34, %v2498_v58  ;;  %v3552_v63 = vpack.c.b16 %v3525_v11, %v3524_v50  ;;  %v6016_v34 = vld [vmem:[%s5152_s29 + $0x64] sm:$0xf] }
 0x1a9   : > { %v1447_v62 = vadd.f32 %v1401_v9, %v1049_v24  ;;  %v3923_v56 = vunpack.c.l.b16 %v3834_v41  ;;  %v1052_v58 = vadd.f32 %v1051_v27, %v5463_v49  ;;  %v2585_v24 = vunpack.c.l.b16 %v2499_v4  ;;  %v4837_v9 = vld [vmem:[%s5152_s29 + $0x60] sm:$0xf] }
 0x1aa   : > { %v2586_v37 = vunpack.c.l.b16 %v2502_v55  ;;  %v3270_v7 = vshll.u32 %v6008_v38, 16  ;;  %v3837_v49 = vrot.slane %v5976_v14, 5  ;;  %v3275_v47 = vshrl.u32 %v4837_v9, 16 }
 0x1ab   : > { %v3950_v50 = vpack.c.b16 %v3923_v56, %v3922_v61  ;;  %v3278_v28 = vshll.u32 %v4837_v9, 16  ;;  %v3284_v41 = vshll.u32 %v6016_v34, 16  ;;  %v3288_v4 = vshrl.u32 %v6016_v34, 16  ;;  %v5044_v56 = vld [vmem:[%s5152_s29 + $0x5c] sm:$0x1] }
 0x1ac   : > { %v2342_v33 = vpop.f32.mrf.mxu0  ;;  %v3272_v11 = vrot.slane %v3270_v7, 5  ;;  %v2508_v20 = vrot.slane %v5044_v56, 5  ;;  %v3840_v14 = vrot.slane %v6008_v38, 5  ;;  %v3839_v7 = vrot.slane %v3837_v49, 4 }
 0x1ad   : > { %v1688_v43 = vpop.f32.mrf.mxu3  ;;  %4807 = vmatmul.msk.bf16.gmra.mxu2 %vm709_vm4, %v4972_v35  ;;  %v1053_v17 = vpop.f32.mrf.mxu1  ;;  %v2612_v35 = vpack.c.b16 %v2586_v37, %v2585_v24  ;;  %v3263_v24 = vsel %vm5164_vm3, %v3258_v16, %v5999_v48  ;;  %v3280_v9 = vrot.slane %v3278_v28, 5  ;;  %v3286_v38 = vrot.slane %v3284_v41, 5  ;;  %v6041_v16 = vld [vmem:[%s5152_s29 + $0x68] sm:$0x1] }
 0x1ae   : > { %v1734_v26 = vadd.f32 %v1688_v43, %v1447_v62  ;;  %v3268_v62 = vrot.slane %v3267_v23, 4  ;;  %v3526_v56 = vunpack.c.l.b16 %v3263_v24 }
 0x1b0   : > { %v1404_v60 = vpop.f32.mrf.mxu2  ;;  %v6021_v27 = vadd.f32 %v2342_v33, %v1734_v26  ;;  %v4663_v33 = vld [vmem:[%s5152_s29 + $0x54] sm:$0xe]  ;;  %v1054_v26 = vadd.f32 %v1053_v17, %v5482_v0  ;;  %v3273_v37 = vsel %vm5164_vm3, %v3268_v62, %v3272_v11 }
 0x1b1   : > { %v1448_v25 = vadd.f32 %v1404_v60, %v1052_v58  ;;  %v4905_v58 = vrot.slane %v4889_v3, 9  ;;  %v3290_v3 = vrot.slane %v3288_v4, 4  ;;  %v3527_v48 = vunpack.c.l.b16 %v3273_v37 }
 0x1b2   : > { %4872 = vmatmul.msk.bf16.gmra.mxu3 %vm709_vm4, %v3552_v63  ;;  %6535 = vst [vmem:[#allocation4_spill] sm:$0xff] %v6021_v27  ;;  %v5043_v63 = vld [vmem:[%s5152_s29 + $0x58] sm:$0xf] }
 0x1b3   : > { %v2505_v61 = vrot.slane %v5043_v63, 5  ;;  %v4679_v63 = vrot.slane %v4663_v33, 9  ;;  %v3838_v62 = vsel %vm5338_vm7, %v4905_v58, %v3837_v49  ;;  %v3291_v4 = vor.u32 %v3290_v3, %v3286_v38 }
 0x1b4   : > { %v2345_v10 = vpop.f32.mrf.mxu0  ;;  %v3553_v58 = vpack.c.b16 %v3527_v48, %v3526_v56  ;;  %v3924_v33 = vunpack.c.l.b16 %v3838_v62 }
 0x1b5   : > { %v1691_v55 = vpop.f32.mrf.mxu3  ;;  %v1056_v43 = vpop.f32.mrf.mxu1  ;;  %v2507_v0 = vrot.slane %v2505_v61, 4 }
 0x1b6   : > { %v1735_v23 = vadd.f32 %v1691_v55, %v1448_v25  ;;  %v3277_v25 = vrot.slane %v3275_v47, 4 }
 0x1b7   : > { %4921 = vmatmul.msk.bf16.gmra.mxu0 %vm709_vm4, %v3950_v50  ;;  %v4973_v50 = vld [vmem:[%s5152_s29 + $0x54] sm:$0xff]  ;;  %v2509_v41 = vsel %vm5338_vm7, %v2507_v0, %v2508_v20  ;;  %v3844_v0 = vrot.slane %v6016_v34, 5  ;;  %v5046_v34 = vld [vmem:[%s5152_s29 + $0x68] sm:$0x1] }
 0x1b8   : > { %v1406_v60 = vpop.f32.mrf.mxu2  ;;  %4695 = vmatmul.msk.bf16.gmra.mxu1 %vm709_vm4, %v2612_v35  ;;  %v6038_v17 = vadd.f32 %v2345_v10, %v1735_v23  ;;  %v3841_v35 = vsel %vm5338_vm7, %v3839_v7, %v3840_v14  ;;  %v3281_v11 = vor.u32 %v3280_v9, %v3277_v25  ;;  %v2506_v10 = vsel %vm5338_vm7, %v4679_v63, %v2505_v61  ;;  %v4840_v9 = vld [vmem:[%s5152_s29 + $0x6c] sm:$0xf]  ;;  %v4890_v63 = vld [vmem:[%s5152_s29 + $0x60] sm:$0xe] }
 0x1b9   : > { %v1449_v55 = vadd.f32 %v1406_v60, %v1054_v26  ;;  %v3294_v23 = vshll.u32 %v6041_v16, 16  ;;  %v1057_v14 = vadd.f32 %v1056_v43, %v5503_v39  ;;  %v3925_v26 = vunpack.c.l.b16 %v3841_v35 }
 0x1ba   : > { %v2587_v37 = vunpack.c.l.b16 %v2506_v10  ;;  %v2588_v7 = vunpack.c.l.b16 %v2509_v41  ;;  %v3282_v61 = vrot.slane %v3281_v11, 4  ;;  %v3292_v25 = vrot.slane %v3291_v4, 4  ;;  %v5045_v11 = vld [vmem:[%s5152_s29 + $0x64] sm:$0xf] }
 0x1bb   : > { %v3296_v20 = vrot.slane %v3294_v23, 5  ;;  %v3951_v3 = vpack.c.b16 %v3925_v26, %v3924_v33  ;;  %v3299_v10 = vshrl.u32 %v4840_v9, 16  ;;  %v3302_v4 = vshll.u32 %v4840_v9, 16 }
 0x1bc   : > { %v2347_v27 = vpop.f32.mrf.mxu0  ;;  %v2613_v43 = vpack.c.b16 %v2588_v7, %v2587_v37  ;;  %v3287_v62 = vsel %vm5164_vm3, %v3282_v61, %v3286_v38  ;;  %v3846_v37 = vrot.slane %v3844_v0, 4  ;;  %v3847_v7 = vrot.slane %v6041_v16, 5  ;;  %v4974_v61 = vld [vmem:[%s5152_s29 + $0x60] sm:$0xff] }
 0x1bd   : > { %v1693_v47 = vpop.f32.mrf.mxu3  ;;  %4808 = vmatmul.msk.bf16.gmra.mxu2 %vm709_vm4, %v4973_v50  ;;  %v1058_v28 = vpop.f32.mrf.mxu1  ;;  %v3297_v35 = vsel %vm5164_vm3, %v3292_v25, %v3296_v20  ;;  %v3528_v26 = vunpack.c.l.b16 %v3287_v62 }
 0x1be   : > { %v1736_v49 = vadd.f32 %v1693_v47, %v1449_v55  ;;  %v6057_v55 = vld [vmem:[%s5152_s29 + $0x70] sm:$0xf]  ;;  %v2512_v47 = vrot.slane %v5045_v11, 5  ;;  %v1059_v38 = vadd.f32 %v1058_v28, %v5522_v6  ;;  %v6082_v28 = vld [vmem:[%s5152_s29 + $0x74] sm:$0x1]  ;;  %v3848_v16 = vsel %vm5338_vm7, %v3846_v37, %v3847_v7 }
 0x1bf   : > { %v3308_v23 = vshll.u32 %v6057_v55, 16 }
 0x1c0   : > { %v1409_v24 = vpop.f32.mrf.mxu2  ;;  %v6059_v50 = vadd.f32 %v2347_v27, %v1736_v49  ;;  %v4664_v27 = vld [vmem:[%s5152_s29 + $0x60] sm:$0xe]  ;;  %v3312_v49 = vshrl.u32 %v6057_v55, 16  ;;  %v2514_v20 = vrot.slane %v2512_v47, 4 }
 0x1c1   : > { %v1450_v60 = vadd.f32 %v1409_v24, %v1057_v14  ;;  %v4906_v14 = vrot.slane %v4890_v63, 9  ;;  %v3529_v24 = vunpack.c.l.b16 %v3297_v35  ;;  %v4680_v25 = vrot.slane %v4664_v27, 9 }
 0x1c2   : > { %4873 = vmatmul.msk.bf16.gmra.mxu3 %vm709_vm4, %v3553_v58  ;;  %v2515_v58 = vrot.slane %v5046_v34, 5  ;;  %v6079_v11 = vrot.slane %v3308_v23, 5  ;;  %v3314_v6 = vrot.slane %v3312_v49, 4  ;;  %v3318_v23 = vshll.u32 %v6082_v28, 16 }
 0x1c4   : > { %v2350_v39 = vpop.f32.mrf.mxu0  ;;  %v3320_v7 = vrot.slane %v3318_v23, 5 }
 0x1c5   : > { %v1696_v56 = vpop.f32.mrf.mxu3  ;;  %v1061_v48 = vpop.f32.mrf.mxu1 }
 0x1c6   : > { %v1737_v41 = vadd.f32 %v1696_v56, %v1450_v60  ;;  %v3301_v56 = vrot.slane %v3299_v10, 4  ;;  %v2513_v10 = vsel %vm5338_vm7, %v4680_v25, %v2512_v47  ;;  %v1062_v49 = vadd.f32 %v1061_v48, %v5541_v45  ;;  %v4843_v47 = vld [vmem:[%s5152_s29 + $0x78] sm:$0xf] }
 0x1c7   : > { %4922 = vmatmul.msk.bf16.gmra.mxu0 %vm709_vm4, %v3951_v3  ;;  %v3304_v3 = vrot.slane %v3302_v4, 5  ;;  %v3851_v25 = vrot.slane %v6057_v55, 5 }
 0x1c8   : > { %v1411_v33 = vpop.f32.mrf.mxu2  ;;  %4696 = vmatmul.msk.bf16.gmra.mxu1 %vm709_vm4, %v2613_v43  ;;  %v6077_v9 = vadd.f32 %v2350_v39, %v1737_v41  ;;  %v3845_v43 = vsel %vm5338_vm7, %v4906_v14, %v3844_v0  ;;  %v3554_v39 = vpack.c.b16 %v3529_v24, %v3528_v26  ;;  %v2516_v41 = vsel %vm5338_vm7, %v2514_v20, %v2515_v58 }
 0x1c9   : > { %v1451_v60 = vadd.f32 %v1411_v33, %v1059_v38  ;;  %v3305_v4 = vor.u32 %v3304_v3, %v3301_v56  ;;  %v3315_v0 = vor.u32 %v3314_v6, %v6079_v11  ;;  %v3926_v34 = vunpack.c.l.b16 %v3845_v43  ;;  %v6103_v56 = vld [vmem:[%s5152_s29 + $0x7c] sm:$0xf] }
 0x1ca   : > { %v3927_v38 = vunpack.c.l.b16 %v3848_v16  ;;  %v2589_v33 = vunpack.c.l.b16 %v2513_v10  ;;  %v2590_v26 = vunpack.c.l.b16 %v2516_v41  ;;  %v3323_v3 = vshrl.u32 %v4843_v47, 16  ;;  %v5047_v10 = vld [vmem:[%s5152_s29 + $0x70] sm:$0xf] }
 0x1cb   : > { %v3306_v58 = vrot.slane %v3305_v4, 4  ;;  %v3316_v37 = vrot.slane %v3315_v0, 4  ;;  %v3326_v6 = vshll.u32 %v4843_v47, 16  ;;  %v2519_v41 = vrot.slane %v5047_v10, 5 }
 0x1cc   : > { %v2352_v63 = vpop.f32.mrf.mxu0  ;;  %v2614_v20 = vpack.c.b16 %v2590_v26, %v2589_v33  ;;  %v3853_v23 = vrot.slane %v3851_v25, 4 }
 0x1cd   : > { %v1698_v62 = vpop.f32.mrf.mxu3  ;;  %4809 = vmatmul.msk.bf16.gmra.mxu2 %vm709_vm4, %v4974_v61  ;;  %v1063_v35 = vpop.f32.mrf.mxu1  ;;  %v3952_v61 = vpack.c.b16 %v3927_v38, %v3926_v34  ;;  %v3311_v55 = vsel %vm5164_vm3, %v3306_v58, %v6079_v11  ;;  %v3336_v34 = vshrl.u32 %v6103_v56, 16  ;;  %v3325_v11 = vrot.slane %v3323_v3, 4  ;;  %v6127_v3 = vld [vmem:[%s5152_s29 + $0x80] sm:$0x1] }
 0x1ce   : > { %v1738_v27 = vadd.f32 %v1698_v62, %v1451_v60  ;;  %v4891_v60 = vld [vmem:[%s5152_s29 + $0x6c] sm:$0xe]  ;;  %v1064_v0 = vadd.f32 %v1063_v35, %v5564_v12  ;;  %v3328_v33 = vrot.slane %v3326_v6, 5  ;;  %v2521_v47 = vrot.slane %v2519_v41, 4 }
 0x1cf   : > { %v4907_v62 = vrot.slane %v4891_v60, 9  ;;  %v3530_v12 = vunpack.c.l.b16 %v3311_v55 }
 0x1d0   : > { %v1414_v14 = vpop.f32.mrf.mxu2  ;;  %v6100_v45 = vadd.f32 %v2352_v63, %v1738_v27  ;;  %v3321_v63 = vsel %vm5164_vm3, %v3316_v37, %v3320_v7  ;;  %v3854_v27 = vrot.slane %v6082_v28, 5  ;;  %v5048_v28 = vld [vmem:[%s5152_s29 + $0x74] sm:$0x1]  ;;  %v3329_v6 = vor.u32 %v3328_v33, %v3325_v11  ;;  %v4892_v33 = vld [vmem:[%s5152_s29 + $0x78] sm:$0xe] }
 0x1d1   : > { %v1452_v24 = vadd.f32 %v1414_v14, %v1062_v49  ;;  %v3332_v49 = vshll.u32 %v6103_v56, 16  ;;  %v2522_v58 = vrot.slane %v5048_v28, 5  ;;  %v3531_v35 = vunpack.c.l.b16 %v3321_v63  ;;  %v6141_v28 = vld [vmem:[%s5152_s29 + $0x88] sm:$0xf] }
 0x1d2   : > { %4874 = vmatmul.msk.bf16.gmra.mxu3 %vm709_vm4, %v3554_v39  ;;  %v4665_v39 = vld [vmem:[%s5152_s29 + $0x6c] sm:$0xe]  ;;  %v3852_v7 = vsel %vm5338_vm7, %v4907_v62, %v3851_v25  ;;  %v3855_v60 = vsel %vm5338_vm7, %v3853_v23, %v3854_v27  ;;  %v3342_v23 = vshll.u32 %v6127_v3, 16  ;;  %v3330_v11 = vrot.slane %v3329_v6, 4 }
 0x1d3   : > { %v4681_v14 = vrot.slane %v4665_v39, 9  ;;  %v2523_v25 = vsel %vm5338_vm7, %v2521_v47, %v2522_v58  ;;  %v3928_v55 = vunpack.c.l.b16 %v3852_v7  ;;  %v3929_v63 = vunpack.c.l.b16 %v3855_v60 }
 0x1d4   : > { %v2355_v48 = vpop.f32.mrf.mxu0 }
 0x1d5   : > { %v1701_v43 = vpop.f32.mrf.mxu3  ;;  %v1066_v16 = vpop.f32.mrf.mxu1  ;;  %v2520_v10 = vsel %vm5338_vm7, %v4681_v14, %v2519_v41  ;;  %v4846_v41 = vld [vmem:[%s5152_s29 + $0x84] sm:$0xf]  ;;  %v3953_v14 = vpack.c.b16 %v3929_v63, %v3928_v55 }
 0x1d6   : > { %v1739_v4 = vadd.f32 %v1701_v43, %v1452_v24  ;;  %v4975_v24 = vld [vmem:[%s5152_s29 + $0x6c] sm:$0xff]  ;;  %v1067_v27 = vadd.f32 %v1066_v16, %v5583_v59  ;;  %v3344_v59 = vrot.slane %v3342_v23, 5  ;;  %v4908_v16 = vrot.slane %v4892_v33, 9  ;;  %v4976_v33 = vld [vmem:[%s5152_s29 + $0x78] sm:$0xff] }
 0x1d7   : > { %4923 = vmatmul.msk.bf16.gmra.mxu0 %vm709_vm4, %v3952_v61  ;;  %v3334_v61 = vrot.slane %v3332_v49, 5  ;;  %v3347_v60 = vshrl.u32 %v4846_v41, 16 }
 0x1d8   : > { %v1416_v38 = vpop.f32.mrf.mxu2  ;;  %4697 = vmatmul.msk.bf16.gmra.mxu1 %vm709_vm4, %v2614_v20  ;;  %v6120_v37 = vadd.f32 %v2355_v48, %v1739_v4  ;;  %v3338_v20 = vrot.slane %v3336_v34, 4  ;;  %v3555_v4 = vpack.c.b16 %v3531_v35, %v3530_v12  ;;  %v2591_v34 = vunpack.c.l.b16 %v2520_v10 }
 0x1d9   : > { %v1453_v26 = vadd.f32 %v1416_v38, %v1064_v0  ;;  %v2592_v38 = vunpack.c.l.b16 %v2523_v25  ;;  %v3335_v7 = vsel %vm5164_vm3, %v3330_v11, %v3334_v61  ;;  %v3861_v10 = vrot.slane %v6127_v3, 5  ;;  %v4666_v25 = vld [vmem:[%s5152_s29 + $0x78] sm:$0xe] }
 0x1da   : > { %v3339_v0 = vor.u32 %v3338_v20, %v3334_v61  ;;  %v3350_v20 = vshll.u32 %v4846_v41, 16  ;;  %v5050_v41 = vld [vmem:[%s5152_s29 + $0x80] sm:$0x1] }
 0x1db   : > { %v2615_v35 = vpack.c.b16 %v2592_v38, %v2591_v34  ;;  %v3349_v34 = vrot.slane %v3347_v60, 4 }
 0x1dc   : > { %v2357_v43 = vpop.f32.mrf.mxu0  ;;  %v3340_v47 = vrot.slane %v3339_v0, 4  ;;  %v3532_v0 = vunpack.c.l.b16 %v3335_v7  ;;  %v3352_v38 = vrot.slane %v3350_v20, 5  ;;  %v4848_v7 = vld [vmem:[%s5152_s29 + $0x8c] sm:$0x1] }
 0x1dd   : > { %v1703_v39 = vpop.f32.mrf.mxu3  ;;  %4810 = vmatmul.msk.bf16.gmra.mxu2 %vm709_vm4, %v4975_v24  ;;  %v1068_v48 = vpop.f32.mrf.mxu1 }
 0x1de   : > { %v1740_v62 = vadd.f32 %v1703_v39, %v1453_v26  ;;  %v3858_v26 = vrot.slane %v6103_v56, 5  ;;  %v5049_v56 = vld [vmem:[%s5152_s29 + $0x7c] sm:$0xf]  ;;  %v1069_v61 = vadd.f32 %v1068_v48, %v5600_v32 }
 0x1e0   : > { %v1419_v49 = vpop.f32.mrf.mxu2  ;;  %v6143_v58 = vadd.f32 %v2357_v43, %v1740_v62  ;;  %v3860_v63 = vrot.slane %v3858_v26, 4  ;;  %v3356_v43 = vshll.u32 %v6141_v28, 16  ;;  %v3360_v62 = vshrl.u32 %v6141_v28, 16 }
 0x1e1   : > { %v1454_v24 = vadd.f32 %v1419_v49, %v1067_v27  ;;  %v3345_v27 = vsel %vm5164_vm3, %v3340_v47, %v3344_v59  ;;  %v3859_v23 = vsel %vm5338_vm7, %v4908_v16, %v3858_v26  ;;  %v4682_v49 = vrot.slane %v4666_v25, 9 }
 0x1e2   : > { %4875 = vmatmul.msk.bf16.gmra.mxu3 %vm709_vm4, %v3555_v4  ;;  %v2526_v4 = vrot.slane %v5049_v56, 5  ;;  %v3533_v48 = vunpack.c.l.b16 %v3345_v27  ;;  %v3862_v47 = vsel %vm5338_vm7, %v3860_v63, %v3861_v10  ;;  %v6165_v59 = vrot.slane %v3356_v43, 5 }
 0x1e3   : > { %v3930_v16 = vunpack.c.l.b16 %v3859_v23  ;;  %v3931_v20 = vunpack.c.l.b16 %v3862_v47  ;;  %v3353_v25 = vor.u32 %v3352_v38, %v3349_v34  ;;  %v3366_v43 = vshll.u32 %v4848_v7, 16  ;;  %v6179_v47 = vld [vmem:[%s5152_s29 + $0x94] sm:$0xf] }
 0x1e4   : > { %v2360_v12 = vpop.f32.mrf.mxu0 }
 0x1e5   : > { %v1706_v6 = vpop.f32.mrf.mxu3  ;;  %v2683_v39 = vpop.f32.mrf.mxu1  ;;  %v3368_v38 = vrot.slane %v3366_v43, 5 }
 0x1e6   : > { %v1741_v55 = vadd.f32 %v1706_v6, %v1454_v24  ;;  %v2528_v24 = vrot.slane %v2526_v4, 4  ;;  %v2763_v27 = vadd.f32 %v2683_v39, %v5617_v46 }
 0x1e7   : > { %4924 = vmatmul.msk.bf16.gmra.mxu0 %vm709_vm4, %v3953_v14  ;;  %v2529_v14 = vrot.slane %v5050_v41, 5  ;;  %v4849_v41 = vld [vmem:[%s5152_s29 + $0x90] sm:$0xf] }
 0x1e8   : > { %v1421_v3 = vpop.f32.mrf.mxu2  ;;  %4698 = vmatmul.msk.bf16.gmra.mxu1 %vm709_vm4, %v2615_v35  ;;  %v6161_v32 = vadd.f32 %v2360_v12, %v1741_v55  ;;  %v3362_v35 = vrot.slane %v3360_v62, 4  ;;  %v2527_v12 = vsel %vm5338_vm7, %v4682_v49, %v2526_v4  ;;  %v3556_v55 = vpack.c.b16 %v3533_v48, %v3532_v0  ;;  %v4893_v62 = vld [vmem:[%s5152_s29 + $0x84] sm:$0xe] }
 0x1e9   : > { %v1455_v11 = vadd.f32 %v1421_v3, %v1069_v61  ;;  %v2530_v10 = vsel %vm5338_vm7, %v2528_v24, %v2529_v14  ;;  %v3865_v61 = vrot.slane %v6141_v28, 5  ;;  %v2593_v23 = vunpack.c.l.b16 %v2527_v12  ;;  %v5051_v12 = vld [vmem:[%s5152_s29 + $0x88] sm:$0xf] }
 0x1ea   : > { %v3363_v63 = vor.u32 %v3362_v35, %v6165_v59  ;;  %v3954_v4 = vpack.c.b16 %v3931_v20, %v3930_v16  ;;  %v3354_v49 = vrot.slane %v3353_v25, 4  ;;  %v3868_v28 = vrot.slane %v4848_v7, 5  ;;  %v6190_v7 = vld [vmem:[%s6527_s2] ss:$0 sm:$0xff] }
 0x1eb   : > { %v3867_v24 = vrot.slane %v3865_v61, 4  ;;  %v3371_v14 = vshrl.u32 %v4849_v41, 16  ;;  %v3374_v35 = vshll.u32 %v4849_v41, 16  ;;  %v3380_v16 = vshll.u32 %v6179_v47, 16 }
 0x1ec   : > { %v2362_v26 = vpop.f32.mrf.mxu0  ;;  %v3364_v34 = vrot.slane %v3363_v63, 4  ;;  %v3384_v25 = vshrl.u32 %v6179_v47, 16 }
 0x1ed   : > { %v1708_v60 = vpop.f32.mrf.mxu3  ;;  %4811 = vmatmul.msk.bf16.gmra.mxu2 %vm709_vm4, %v4976_v33  ;;  %v2685_v6 = vpop.f32.mrf.mxu1  ;;  %v2594_v33 = vunpack.c.l.b16 %v2530_v10  ;;  %v2533_v10 = vrot.slane %v5051_v12, 5  ;;  %v6206_v41 = vrot.slane %v3380_v16, 5 }
 0x1ee   : > { %v1742_v56 = vadd.f32 %v1708_v60, %v1455_v11  ;;  %v4909_v11 = vrot.slane %v4893_v62, 9  ;;  %v3369_v63 = vsel %vm5164_vm3, %v3364_v34, %v3368_v38  ;;  %v3869_v62 = vsel %vm5338_vm7, %v3867_v24, %v3868_v28  ;;  %v5052_v34 = vld [vmem:[%s5152_s29 + $0x8c] sm:$0x1] }
 0x1ef   : > { %v2616_v48 = vpack.c.b16 %v2594_v33, %v2593_v23  ;;  %v2764_v23 = vadd.f32 %v2685_v6, %v5630_v42  ;;  %v3376_v33 = vrot.slane %v3374_v35, 5  ;;  %v3386_v38 = vrot.slane %v3384_v25, 4  ;;  %v6217_v42 = vld [vmem:[%s5152_s29 + $0x98] sm:$0x1] }
 0x1f0   : > { %v2970_v3 = vpop.f32.mrf.mxu2  ;;  %v6182_v46 = vadd.f32 %v2362_v26, %v1742_v56  ;;  %v3359_v26 = vsel %vm5164_vm3, %v3354_v49, %v6165_v59  ;;  %v4667_v56 = vld [vmem:[%s5152_s29 + $0x84] sm:$0xe]  ;;  %v3866_v43 = vsel %vm5338_vm7, %v4909_v11, %v3865_v61  ;;  %v2536_v61 = vrot.slane %v5052_v34, 5  ;;  %v4852_v34 = vld [vmem:[%s5152_s29 + $0x9c] sm:$0xf] }
 0x1f1   : > { %v3050_v0 = vadd.f32 %v2970_v3, %v2763_v27  ;;  %v3373_v27 = vrot.slane %v3371_v14, 4  ;;  %v4683_v49 = vrot.slane %v4667_v56, 9  ;;  %v3534_v28 = vunpack.c.l.b16 %v3359_v26 }
 0x1f2   : > { %4876 = vmatmul.msk.bf16.gmra.mxu3 %vm709_vm4, %v3556_v55  ;;  %v3535_v14 = vunpack.c.l.b16 %v3369_v63  ;;  %v3933_v35 = vunpack.c.l.b16 %v3869_v62  ;;  %v3387_v26 = vor.u32 %v3386_v38, %v6206_v41 }
 0x1f3   : > { %v2534_v12 = vsel %vm5338_vm7, %v4683_v49, %v2533_v10 }
 0x1f4   : > { %v4022_v39 = vpop.f32.mrf.mxu0  ;;  %v3557_v63 = vpack.c.b16 %v3535_v14, %v3534_v28 }
 0x1f5   : > { %v3624_v60 = vpop.f32.mrf.mxu3  ;;  %v2688_v20 = vpop.f32.mrf.mxu1 }
 0x1f6   : > { %v3704_v55 = vadd.f32 %v3624_v60, %v3050_v0  ;;  %v2535_v0 = vrot.slane %v2533_v10, 4  ;;  %v6230_v10 = vld [vmem:[%s5152_s29 + $0xa0] sm:$0xf] }
 0x1f7   : > { %4925 = vmatmul.msk.bf16.gmra.mxu0 %vm709_vm4, %v3954_v4  ;;  %v4977_v4 = vld [vmem:[%s5152_s29 + $0x84] sm:$0xff]  ;;  %v3404_v28 = vshll.u32 %v6230_v10, 16  ;;  %v3408_v14 = vshrl.u32 %v6230_v10, 16 }
 0x1f8   : > { %v4102_v3 = vadd.f32 %v4022_v39, %v3704_v55  ;;  %v2972_v59 = vpop.f32.mrf.mxu2  ;;  %4699 = vmatmul.msk.bf16.gmra.mxu1 %vm709_vm4, %v2616_v48  ;;  %v3932_v48 = vunpack.c.l.b16 %v3866_v43  ;;  %v2537_v25 = vsel %vm5338_vm7, %v2535_v0, %v2536_v61  ;;  %v3377_v55 = vor.u32 %v3376_v33, %v3373_v27 }
 0x1f9   : > { %v3051_v24 = vadd.f32 %v2972_v59, %v2764_v23  ;;  %v3390_v43 = vshll.u32 %v6217_v42, 16  ;;  %v2595_v59 = vunpack.c.l.b16 %v2534_v12  ;;  %v3388_v27 = vrot.slane %v3387_v26, 4 }
 0x1fa   : > { %v4138_v11 = vadd.f32 %v6190_v7, %v4102_v3  ;;  %v2765_v3 = vadd.f32 %v2688_v20, %v5643_v15  ;;  %v3955_v49 = vpack.c.b16 %v3933_v35, %v3932_v48  ;;  %v3378_v0 = vrot.slane %v3377_v55, 4  ;;  %v5053_v55 = vld [vmem:[%s5152_s29 + $0x94] sm:$0xf] }
 0x1fb   : > { %v3392_v38 = vrot.slane %v3390_v43, 5  ;;  %v3872_v15 = vrot.slane %v6179_v47, 5  ;;  %v3395_v20 = vshrl.u32 %v4852_v34, 16  ;;  %v2540_v26 = vrot.slane %v5053_v55, 5 }
 0x1fc   : > { %v4170_v6 = vmax.f32 %v4138_v11, 0.0  ;;  %v4024_v39 = vpop.f32.mrf.mxu0  ;;  %v4894_v11 = vld [vmem:[%s5152_s29 + $0x90] sm:$0xe] }
 0x1fd   : > { %v3626_v16 = vpop.f32.mrf.mxu3  ;;  %4812 = vmatmul.msk.bf16.gmra.mxu2 %vm709_vm4, %v4977_v4  ;;  %v2690_v60 = vpop.f32.mrf.mxu1  ;;  %v2596_v4 = vunpack.c.l.b16 %v2537_v25  ;;  %v4910_v12 = vrot.slane %v4894_v11, 9  ;;  %v3875_v25 = vrot.slane %v6217_v42, 5  ;;  %v3874_v43 = vrot.slane %v3872_v15, 4  ;;  %v5054_v11 = vld [vmem:[%s5152_s29 + $0x98] sm:$0x1] }
 0x1fe   : > { %4202 = vst [vmem:[%s6214_s19] sm:$0xff] %v4170_v6  ;;  %v3705_v56 = vadd.f32 %v3626_v16, %v3051_v24  ;;  %v3398_v24 = vshll.u32 %v4852_v34, 16  ;;  %v2766_v34 = vadd.f32 %v2690_v60, %v5656_v13 }
 0x1ff   : > { %v2617_v48 = vpack.c.b16 %v2596_v4, %v2595_v59  ;;  %v3410_v59 = vrot.slane %v3408_v14, 4  ;;  %v3876_v13 = vsel %vm5338_vm7, %v3874_v43, %v3875_v25 }
 0x200   : > { %v4103_v62 = vadd.f32 %v4024_v39, %v3705_v56  ;;  %v2975_v23 = vpop.f32.mrf.mxu2  ;;  %v3383_v56 = vsel %vm5164_vm3, %v3378_v0, %v6206_v41  ;;  %v3400_v42 = vrot.slane %v3398_v24, 5  ;;  %v6253_v41 = vld [vmem:[%s5152_s29 + $0xa4] sm:$0x1]  ;;  %v4978_v0 = vld [vmem:[%s5152_s29 + $0x90] sm:$0xff]  ;;  %v3935_v43 = vunpack.c.l.b16 %v3876_v13 }
 0x201   : > { %v3052_v61 = vadd.f32 %v2975_v23, %v2765_v3  ;;  %v3397_v3 = vrot.slane %v3395_v20, 4  ;;  %v6248_v23 = vrot.slane %v3404_v28, 5  ;;  %v3873_v28 = vsel %vm5338_vm7, %v4910_v12, %v3872_v15 }
 0x202   : > { %v4139_v33 = vadd.f32 %v6190_v7, %v4103_v62  ;;  %4877 = vmatmul.msk.bf16.gmra.mxu3 %vm709_vm4, %v3557_v63  ;;  %v3393_v63 = vsel %vm5164_vm3, %v3388_v27, %v3392_v38  ;;  %v4668_v62 = vld [vmem:[%s5152_s29 + $0x90] sm:$0xe]  ;;  %v3536_v27 = vunpack.c.l.b16 %v3383_v56  ;;  %v2542_v38 = vrot.slane %v2540_v26, 4 }
 0x203   : > { %v3537_v24 = vunpack.c.l.b16 %v3393_v63  ;;  %v3401_v60 = vor.u32 %v3400_v42, %v3397_v3  ;;  %v3411_v14 = vor.u32 %v3410_v59, %v6248_v23  ;;  %v3934_v63 = vunpack.c.l.b16 %v3873_v28 }
 0x204   : > { %v4171_v6 = vmax.f32 %v4139_v33, 0.0  ;;  %v4027_v39 = vpop.f32.mrf.mxu0  ;;  %v3879_v59 = vrot.slane %v6230_v10, 5 }
 0x205   : > { %v3629_v35 = vpop.f32.mrf.mxu3  ;;  %v2693_v16 = vpop.f32.mrf.mxu1  ;;  %v3558_v25 = vpack.c.b16 %v3537_v24, %v3536_v27  ;;  %v3412_v3 = vrot.slane %v3411_v14, 4  ;;  %v3956_v27 = vpack.c.b16 %v3935_v43, %v3934_v63 }
 0x206   : > { %4203 = vst [vmem:[%s6214_s19 + $0x8] sm:$0xff] %v4171_v6  ;;  %v3706_v47 = vadd.f32 %v3629_v35, %v3052_v61  ;;  %v4684_v61 = vrot.slane %v4668_v62, 9  ;;  %v2543_v6 = vrot.slane %v5054_v11, 5  ;;  %v3402_v62 = vrot.slane %v3401_v60, 4 }
 0x207   : > { %4926 = vmatmul.msk.bf16.gmra.mxu0 %vm709_vm4, %v3955_v49  ;;  %v3882_v60 = vrot.slane %v6253_v41, 5 }
 0x208   : > { %v4104_v4 = vadd.f32 %v4027_v39, %v3706_v47  ;;  %v2977_v33 = vpop.f32.mrf.mxu2  ;;  %4700 = vmatmul.msk.bf16.gmra.mxu1 %vm709_vm4, %v2617_v48  ;;  %v3414_v39 = vshll.u32 %v6253_v41, 16  ;;  %v2541_v56 = vsel %vm5338_vm7, %v4684_v61, %v2540_v26  ;;  %v2544_v15 = vsel %vm5338_vm7, %v2542_v38, %v2543_v6  ;;  %v4895_v61 = vld [vmem:[%s5152_s29 + $0x9c] sm:$0xe]  ;;  %v4855_v38 = vld [vmem:[%s5152_s29 + $0xa8] sm:$0xf] }
 0x209   : > { %v3053_v20 = vadd.f32 %v2977_v33, %v2766_v34  ;;  %v2767_v34 = vadd.f32 %v2693_v16, %v5669_v57  ;;  %v2597_v33 = vunpack.c.l.b16 %v2541_v56  ;;  %v3407_v10 = vsel %vm5164_vm3, %v3402_v62, %v6248_v23 }
 0x20a   : > { %v4140_v49 = vadd.f32 %v6190_v7, %v4104_v4  ;;  %v3416_v42 = vrot.slane %v3414_v39, 5  ;;  %v4911_v16 = vrot.slane %v4895_v61, 9  ;;  %v3419_v14 = vshrl.u32 %v4855_v38, 16  ;;  %v5056_v61 = vld [vmem:[%s5152_s29 + $0xa4] sm:$0x1] }
 0x20b   : > { %v3422_v56 = vshll.u32 %v4855_v38, 16  ;;  %v3538_v63 = vunpack.c.l.b16 %v3407_v10  ;;  %v2550_v38 = vrot.slane %v5056_v61, 5 }
 0x20c   : > { %v4172_v48 = vmax.f32 %v4140_v49, 0.0  ;;  %v4029_v35 = vpop.f32.mrf.mxu0  ;;  %v3417_v57 = vsel %vm5164_vm3, %v3412_v3, %v3416_v42  ;;  %v3881_v49 = vrot.slane %v3879_v59, 4  ;;  %v3880_v41 = vsel %vm5338_vm7, %v4911_v16, %v3879_v59 }
 0x20d   : > { %v3631_v55 = vpop.f32.mrf.mxu3  ;;  %4813 = vmatmul.msk.bf16.gmra.mxu2 %vm709_vm4, %v4978_v0  ;;  %v2695_v47 = vpop.f32.mrf.mxu1  ;;  %v2598_v0 = vunpack.c.l.b16 %v2544_v15  ;;  %v4669_v15 = vld [vmem:[%s5152_s29 + $0x9c] sm:$0xe]  ;;  %v3539_v43 = vunpack.c.l.b16 %v3417_v57  ;;  %v3936_v16 = vunpack.c.l.b16 %v3880_v41 }
 0x20e   : > { %4204 = vst [vmem:[%s6214_s19 + $0x10] sm:$0xff] %v4172_v48  ;;  %v3707_v12 = vadd.f32 %v3631_v55, %v3053_v20  ;;  %v6282_v20 = vld [vmem:[%s5152_s29 + $0xac] sm:$0xf]  ;;  %v2768_v3 = vadd.f32 %v2695_v47, %v5682_v54  ;;  %v6303_v47 = vld [vmem:[%s5152_s29 + $0xb0] sm:$0x1] }
 0x20f   : > { %v2618_v13 = vpack.c.b16 %v2598_v0, %v2597_v33  ;;  %v4685_v33 = vrot.slane %v4669_v15, 9 }
 0x210   : > { %v4105_v4 = vadd.f32 %v4029_v35, %v3707_v12  ;;  %v2980_v26 = vpop.f32.mrf.mxu2  ;;  %v5055_v35 = vld [vmem:[%s5152_s29 + $0xa0] sm:$0xf]  ;;  %v3428_v12 = vshll.u32 %v6282_v20, 16 }
 0x211   : > { %v3054_v6 = vadd.f32 %v2980_v26, %v2767_v34  ;;  %v2547_v55 = vrot.slane %v5055_v35, 5  ;;  %v3421_v34 = vrot.slane %v3419_v14, 4  ;;  %v4979_v26 = vld [vmem:[%s5152_s29 + $0x9c] sm:$0xff]  ;;  %v3559_v35 = vpack.c.b16 %v3539_v43, %v3538_v63 }
 0x212   : > { %v4141_v11 = vadd.f32 %v6190_v7, %v4105_v4  ;;  %4878 = vmatmul.msk.bf16.gmra.mxu3 %vm709_vm4, %v3558_v25  ;;  %v3432_v25 = vshrl.u32 %v6282_v20, 16  ;;  %v3883_v4 = vsel %vm5338_vm7, %v3881_v49, %v3882_v60 }
 0x213   : > { %v2549_v0 = vrot.slane %v2547_v55, 4 }
 0x214   : > { %v4173_v24 = vmax.f32 %v4141_v11, 0.0  ;;  %v4032_v28 = vpop.f32.mrf.mxu0  ;;  %v3424_v11 = vrot.slane %v3422_v56, 5  ;;  %v3434_v54 = vrot.slane %v3432_v25, 4 }
 0x215   : > { %v3634_v39 = vpop.f32.mrf.mxu3  ;;  %v2698_v48 = vpop.f32.mrf.mxu1  ;;  %v2551_v60 = vsel %vm5338_vm7, %v2549_v0, %v2550_v38 }
 0x216   : > { %4205 = vst [vmem:[%s6214_s19 + $0x18] sm:$0xff] %v4173_v24  ;;  %v3708_v23 = vadd.f32 %v3634_v39, %v3054_v6  ;;  %v6300_v6 = vrot.slane %v3428_v12, 5  ;;  %v3937_v24 = vunpack.c.l.b16 %v3883_v4  ;;  %v3425_v14 = vor.u32 %v3424_v11, %v3421_v34 }
 0x217   : > { %4927 = vmatmul.msk.bf16.gmra.mxu0 %vm709_vm4, %v3956_v27  ;;  %v2769_v12 = vadd.f32 %v2698_v48, %v5694_v31 }
 0x218   : > { %v4106_v62 = vadd.f32 %v4032_v28, %v3708_v23  ;;  %v2982_v42 = vpop.f32.mrf.mxu2  ;;  %4701 = vmatmul.msk.bf16.gmra.mxu1 %vm709_vm4, %v2618_v13  ;;  %v2548_v13 = vsel %vm5338_vm7, %v4685_v33, %v2547_v55  ;;  %v3435_v56 = vor.u32 %v3434_v54, %v6300_v6  ;;  %v3438_v23 = vshll.u32 %v6303_v47, 16  ;;  %v6316_v55 = vld [vmem:[%s5152_s29 + $0xb8] sm:$0xf]  ;;  %v4896_v33 = vld [vmem:[%s5152_s29 + $0xa8] sm:$0xe] }
 0x219   : > { %v3055_v27 = vadd.f32 %v2982_v42, %v2768_v3  ;;  %v2599_v41 = vunpack.c.l.b16 %v2548_v13  ;;  %v4858_v3 = vld [vmem:[%s5152_s29 + $0xb4] sm:$0xf]  ;;  %v3957_v42 = vpack.c.b16 %v3937_v24, %v3936_v16  ;;  %v3426_v4 = vrot.slane %v3425_v14, 4  ;;  %v4670_v14 = vld [vmem:[%s5152_s29 + $0xa8] sm:$0xe] }
 0x21a   : > { %v4142_v59 = vadd.f32 %v6190_v7, %v4106_v62  ;;  %v2600_v62 = vunpack.c.l.b16 %v2551_v60  ;;  %v3436_v43 = vrot.slane %v3435_v56, 4  ;;  %v3443_v0 = vshrl.u32 %v4858_v3, 16 }
 0x21b   : > { %v3446_v31 = vshll.u32 %v4858_v3, 16  ;;  %v3452_v48 = vshll.u32 %v6316_v55, 16  ;;  %v3456_v61 = vshrl.u32 %v6316_v55, 16  ;;  %v3431_v24 = vsel %vm5164_vm3, %v3426_v4, %v6300_v6 }
 0x21c   : > { %v4174_v10 = vmax.f32 %v4142_v59, 0.0  ;;  %v4034_v57 = vpop.f32.mrf.mxu0  ;;  %v2619_v59 = vpack.c.b16 %v2600_v62, %v2599_v41  ;;  %v4912_v60 = vrot.slane %v4896_v33, 9  ;;  %v6339_v41 = vld [vmem:[%s5152_s29 + $0xbc] sm:$0x1]  ;;  %v4980_v62 = vld [vmem:[%s5152_s29 + $0xa8] sm:$0xff]  ;;  %v4686_v3 = vrot.slane %v4670_v14, 9 }
 0x21d   : > { %v3636_v49 = vpop.f32.mrf.mxu3  ;;  %4814 = vmatmul.msk.bf16.gmra.mxu2 %vm709_vm4, %v4979_v26  ;;  %v2700_v28 = vpop.f32.mrf.mxu1  ;;  %v3440_v26 = vrot.slane %v3438_v23, 5  ;;  %v3458_v56 = vrot.slane %v3456_v61, 4 }
 0x21e   : > { %4206 = vst [vmem:[%s6214_s19 + $0x20] sm:$0xff] %v4174_v10  ;;  %v3709_v39 = vadd.f32 %v3636_v49, %v3055_v27  ;;  %v3886_v27 = vrot.slane %v6282_v20, 5  ;;  %v3445_v20 = vrot.slane %v3443_v0, 4 }
 0x21f   : > { %v3441_v13 = vsel %vm5164_vm3, %v3436_v43, %v3440_v26  ;;  %v3540_v26 = vunpack.c.l.b16 %v3431_v24 }
 0x220   : > { %v4107_v15 = vadd.f32 %v4034_v57, %v3709_v39  ;;  %v2985_v25 = vpop.f32.mrf.mxu2  ;;  %v5057_v57 = vld [vmem:[%s5152_s29 + $0xac] sm:$0xf]  ;;  %v3448_v39 = vrot.slane %v3446_v31, 5  ;;  %v3888_v6 = vrot.slane %v3886_v27, 4  ;;  %v3541_v33 = vunpack.c.l.b16 %v3441_v13 }
 0x221   : > { %v3056_v63 = vadd.f32 %v2985_v25, %v2769_v12  ;;  %v2554_v16 = vrot.slane %v5057_v57, 5  ;;  %v3889_v25 = vrot.slane %v6303_v47, 5  ;;  %v3462_v47 = vshll.u32 %v6339_v41, 16 }
 0x222   : > { %v4143_v34 = vadd.f32 %v6190_v7, %v4107_v15  ;;  %4879 = vmatmul.msk.bf16.gmra.mxu3 %vm709_vm4, %v3559_v35  ;;  %v6333_v35 = vrot.slane %v3452_v48, 5  ;;  %v2770_v15 = vadd.f32 %v2700_v28, %v5707_v44  ;;  %v3887_v44 = vsel %vm5338_vm7, %v4912_v60, %v3886_v27 }
 0x223   : > { %v2556_v4 = vrot.slane %v2554_v16, 4  ;;  %v3449_v28 = vor.u32 %v3448_v39, %v3445_v20  ;;  %v3890_v61 = vsel %vm5338_vm7, %v3888_v6, %v3889_v25  ;;  %v3560_v57 = vpack.c.b16 %v3541_v33, %v3540_v26 }
 0x224   : > { %v4175_v38 = vmax.f32 %v4143_v34, 0.0  ;;  %v4037_v11 = vpop.f32.mrf.mxu0  ;;  %v3459_v0 = vor.u32 %v3458_v56, %v6333_v35  ;;  %v3939_v24 = vunpack.c.l.b16 %v3890_v61  ;;  %v3464_v14 = vrot.slane %v3462_v47, 5  ;;  %v4671_v47 = vld [vmem:[%s5152_s29 + $0xb4] sm:$0xe] }
 0x225   : > { %v3639_v54 = vpop.f32.mrf.mxu3  ;;  %v2703_v10 = vpop.f32.mrf.mxu1  ;;  %v3450_v13 = vrot.slane %v3449_v28, 4 }
 0x226   : > { %4207 = vst [vmem:[%s6214_s19 + $0x28] sm:$0xff] %v4175_v38  ;;  %v3710_v49 = vadd.f32 %v3639_v54, %v3056_v63  ;;  %v3460_v60 = vrot.slane %v3459_v0, 4  ;;  %v2771_v39 = vadd.f32 %v2703_v10, %v5721_v30  ;;  %v3893_v30 = vrot.slane %v6316_v55, 5  ;;  %v6365_v10 = vld [vmem:[%s5152_s29 + $0xc4] sm:$0xf] }
 0x227   : > { %4928 = vmatmul.msk.bf16.gmra.mxu0 %vm709_vm4, %v3957_v42  ;;  %v5058_v42 = vld [vmem:[%s5152_s29 + $0xb0] sm:$0x1]  ;;  %v3476_v55 = vshll.u32 %v6365_v10, 16 }
 0x228   : > { %v4108_v23 = vadd.f32 %v4037_v11, %v3710_v49  ;;  %v2987_v12 = vpop.f32.mrf.mxu2  ;;  %4702 = vmatmul.msk.bf16.gmra.mxu1 %vm709_vm4, %v2619_v59  ;;  %v2557_v34 = vrot.slane %v5058_v42, 5  ;;  %v2555_v59 = vsel %vm5338_vm7, %v4686_v3, %v2554_v16  ;;  %v3938_v49 = vunpack.c.l.b16 %v3887_v44  ;;  %v4861_v16 = vld [vmem:[%s5152_s29 + $0xc0] sm:$0xf]  ;;  %v5059_v44 = vld [vmem:[%s5152_s29 + $0xb8] sm:$0xf] }
 0x229   : > { %v3057_v43 = vadd.f32 %v2987_v12, %v2770_v15  ;;  %v2561_v28 = vrot.slane %v5059_v44, 5  ;;  %v3470_v0 = vshll.u32 %v4861_v16, 16 }
 0x22a   : > { %v4144_v63 = vadd.f32 %v6190_v7, %v4108_v23  ;;  %v2558_v27 = vsel %vm5338_vm7, %v2556_v4, %v2557_v34  ;;  %v2601_v23 = vunpack.c.l.b16 %v2555_v59  ;;  %v3958_v25 = vpack.c.b16 %v3939_v24, %v3938_v49 }
 0x22b   : > { %v2602_v15 = vunpack.c.l.b16 %v2558_v27  ;;  %v3465_v34 = vsel %vm5164_vm3, %v3460_v60, %v3464_v14  ;;  %v3895_v59 = vrot.slane %v3893_v30, 4  ;;  %v3896_v49 = vrot.slane %v6339_v41, 5 }
 0x22c   : > { %v4176_v31 = vmax.f32 %v4144_v63, 0.0  ;;  %v4039_v48 = vpop.f32.mrf.mxu0  ;;  %v4897_v63 = vld [vmem:[%s5152_s29 + $0xb4] sm:$0xe]  ;;  %v3543_v61 = vunpack.c.l.b16 %v3465_v34  ;;  %v4687_v60 = vrot.slane %v4671_v47, 9  ;;  %v2563_v14 = vrot.slane %v2561_v28, 4 }
 0x22d   : > { %v3641_v38 = vpop.f32.mrf.mxu3  ;;  %4815 = vmatmul.msk.bf16.gmra.mxu2 %vm709_vm4, %v4980_v62  ;;  %v2705_v11 = vpop.f32.mrf.mxu1  ;;  %v3455_v62 = vsel %vm5164_vm3, %v3450_v13, %v6333_v35  ;;  %v2620_v42 = vpack.c.b16 %v2602_v15, %v2601_v23  ;;  %v4981_v13 = vld [vmem:[%s5152_s29 + $0xb4] sm:$0xff] }
 0x22e   : > { %4208 = vst [vmem:[%s6214_s19 + $0x30] sm:$0xff] %v4176_v31  ;;  %v3711_v54 = vadd.f32 %v3641_v38, %v3057_v43  ;;  %v3467_v43 = vshrl.u32 %v4861_v16, 16  ;;  %v3480_v31 = vshrl.u32 %v6365_v10, 16  ;;  %v4913_v38 = vrot.slane %v4897_v63, 9 }
 0x22f   : > { %v3478_v16 = vrot.slane %v3476_v55, 5 }
 0x230   : > { %v4109_v20 = vadd.f32 %v4039_v48, %v3711_v54  ;;  %v2990_v56 = vpop.f32.mrf.mxu2  ;;  %v3542_v48 = vunpack.c.l.b16 %v3455_v62  ;;  %v2772_v54 = vadd.f32 %v2705_v11, %v5734_v51  ;;  %v3469_v24 = vrot.slane %v3467_v43, 4 }
 0x231   : > { %v3058_v6 = vadd.f32 %v2990_v56, %v2771_v39  ;;  %v3472_v56 = vrot.slane %v3470_v0, 5  ;;  %v3894_v41 = vsel %vm5338_vm7, %v4913_v38, %v3893_v30 }
 0x232   : > { %v4145_v12 = vadd.f32 %v6190_v7, %v4109_v20  ;;  %4880 = vmatmul.msk.bf16.gmra.mxu3 %vm709_vm4, %v3560_v57  ;;  %v5060_v20 = vld [vmem:[%s5152_s29 + $0xbc] sm:$0x1]  ;;  %v3561_v43 = vpack.c.b16 %v3543_v61, %v3542_v48  ;;  %v3940_v44 = vunpack.c.l.b16 %v3894_v41 }
 0x233   : > { %v2564_v39 = vrot.slane %v5060_v20, 5  ;;  %v3473_v34 = vor.u32 %v3472_v56, %v3469_v24  ;;  %v3900_v24 = vrot.slane %v6365_v10, 5 }
 0x234   : > { %v4177_v3 = vmax.f32 %v4145_v12, 0.0  ;;  %v4042_v4 = vpop.f32.mrf.mxu0  ;;  %v3482_v12 = vrot.slane %v3480_v31, 4 }
 0x235   : > { %v3644_v26 = vpop.f32.mrf.mxu3  ;;  %v2708_v33 = vpop.f32.mrf.mxu1  ;;  %v3474_v38 = vrot.slane %v3473_v34, 4 }
 0x236   : > { %4209 = vst [vmem:[%s6214_s19 + $0x38] sm:$0xff] %v4177_v3  ;;  %v3712_v35 = vadd.f32 %v3644_v26, %v3058_v6  ;;  %v6383_v6 = vld [vmem:[%s5152_s29 + $0xc8] sm:$0x1]  ;;  %v3483_v26 = vor.u32 %v3482_v12, %v3478_v16  ;;  %v2773_v47 = vadd.f32 %v2708_v33, %v5750_v1 }
 0x237   : > { %4929 = vmatmul.msk.bf16.gmra.mxu0 %vm709_vm4, %v3958_v25  ;;  %v3897_v25 = vsel %vm5338_vm7, %v3895_v59, %v3896_v49  ;;  %v3486_v30 = vshll.u32 %v6383_v6, 16 }
 0x238   : > { %v4110_v27 = vadd.f32 %v4042_v4, %v3712_v35  ;;  %v2992_v57 = vpop.f32.mrf.mxu2  ;;  %4703 = vmatmul.msk.bf16.gmra.mxu1 %vm709_vm4, %v2620_v42  ;;  %v2562_v4 = vsel %vm5338_vm7, %v4687_v60, %v2561_v28  ;;  %v2565_v42 = vsel %vm5338_vm7, %v2563_v14, %v2564_v39  ;;  %v3941_v0 = vunpack.c.l.b16 %v3897_v25  ;;  %v6403_v60 = vld [vmem:[%s5152_s29 + $0xd0] sm:$0xf]  ;;  %v5061_v39 = vld [vmem:[%s5152_s29 + $0xc4] sm:$0xf] }
 0x239   : > { %v3059_v15 = vadd.f32 %v2992_v57, %v2772_v54  ;;  %v2603_v28 = vunpack.c.l.b16 %v2562_v4  ;;  %v2604_v31 = vunpack.c.l.b16 %v2565_v42  ;;  %v3484_v61 = vrot.slane %v3483_v26, 4  ;;  %v4898_v57 = vld [vmem:[%s5152_s29 + $0xc0] sm:$0xe] }
 0x23a   : > { %v4146_v23 = vadd.f32 %v6190_v7, %v4110_v27  ;;  %v3488_v27 = vrot.slane %v3486_v30, 5  ;;  %v3959_v54 = vpack.c.b16 %v3941_v0, %v3940_v44  ;;  %v2568_v56 = vrot.slane %v5061_v39, 5  ;;  %v6536_v42 = vld [vmem:[#allocation2_spill] sm:$0xff] }
 0x23b   : > { %v2621_v33 = vpack.c.b16 %v2604_v31, %v2603_v28  ;;  %v3500_v25 = vshll.u32 %v6403_v60, 16  ;;  %v4982_v26 = vld [vmem:[%s5152_s29 + $0xc0] sm:$0xff] }
 0x23c   : > { %v4178_v51 = vmax.f32 %v4146_v23, 0.0  ;;  %v4044_v11 = vpop.f32.mrf.mxu0  ;;  %v3489_v12 = vsel %vm5164_vm3, %v3484_v61, %v3488_v27  ;;  %v2570_v0 = vrot.slane %v2568_v56, 4 }
 0x23d   : > { %v3646_v62 = vpop.f32.mrf.mxu3  ;;  %4816 = vmatmul.msk.bf16.gmra.mxu2 %vm709_vm4, %v4981_v13  ;;  %v2710_v3 = vpop.f32.mrf.mxu1  ;;  %v4864_v13 = vld [vmem:[%s5152_s29 + $0xcc] sm:$0xf]  ;;  %v3545_v31 = vunpack.c.l.b16 %v3489_v12 }
 0x23e   : > { %4210 = vst [vmem:[%s6214_s19 + $0x40] sm:$0xff] %v4178_v51  ;;  %v3713_v63 = vadd.f32 %v3646_v62, %v3059_v15  ;;  %v3479_v15 = vsel %vm5164_vm3, %v3474_v38, %v3478_v16  ;;  %v4914_v51 = vrot.slane %v4898_v57, 9  ;;  %v3491_v10 = vshrl.u32 %v4864_v13, 16  ;;  %v4866_v57 = vld [vmem:[%s5152_s29 + $0xd4] sm:$0x1] }
 0x23f   : > { %v3494_v41 = vshll.u32 %v4864_v13, 16  ;;  %v3504_v62 = vshrl.u32 %v6403_v60, 16  ;;  %v2774_v34 = vadd.f32 %v2710_v3, %v6536_v42  ;;  %v3902_v16 = vrot.slane %v3900_v24, 4 }
 0x240   : > { %v4111_v35 = vadd.f32 %v4044_v11, %v3713_v63  ;;  %v2995_v55 = vpop.f32.mrf.mxu2  ;;  %v4672_v11 = vld [vmem:[%s5152_s29 + $0xc0] sm:$0xe]  ;;  %v3544_v30 = vunpack.c.l.b16 %v3479_v15  ;;  %v3901_v3 = vsel %vm5338_vm7, %v4914_v51, %v3900_v24  ;;  %v3493_v38 = vrot.slane %v3491_v10, 4 }
 0x241   : > { %v3060_v48 = vadd.f32 %v2995_v55, %v2773_v47  ;;  %v4688_v44 = vrot.slane %v4672_v11, 9  ;;  %v3506_v61 = vrot.slane %v3504_v62, 4  ;;  %v3942_v39 = vunpack.c.l.b16 %v3901_v3 }
 0x242   : > { %v4147_v59 = vadd.f32 %v6190_v7, %v4111_v35  ;;  %4881 = vmatmul.msk.bf16.gmra.mxu3 %vm709_vm4, %v3561_v43  ;;  %v3903_v43 = vrot.slane %v6383_v6, 5  ;;  %v5062_v35 = vld [vmem:[%s5152_s29 + $0xc8] sm:$0x1]  ;;  %v3510_v51 = vshll.u32 %v4866_v57, 16 }
 0x243   : > { %v2571_v47 = vrot.slane %v5062_v35, 5 }
 0x244   : > { %v4179_v49 = vmax.f32 %v4147_v59, 0.0  ;;  %v4047_v1 = vpop.f32.mrf.mxu0  ;;  %v3496_v59 = vrot.slane %v3494_v41, 5 }
 0x245   : > { %v3649_v14 = vpop.f32.mrf.mxu3  ;;  %v2713_v20 = vpop.f32.mrf.mxu1  ;;  %v2572_v24 = vsel %vm5338_vm7, %v2570_v0, %v2571_v47 }
 0x246   : > { %4211 = vst [vmem:[%s6214_s19 + $0x48] sm:$0xff] %v4179_v49  ;;  %v3714_v23 = vadd.f32 %v3649_v14, %v3060_v48  ;;  %v3502_v48 = vrot.slane %v3500_v25, 5  ;;  %v3562_v14 = vpack.c.b16 %v3545_v31, %v3544_v30  ;;  %v3497_v15 = vor.u32 %v3496_v59, %v3493_v38 }
 0x247   : > { %4930 = vmatmul.msk.bf16.gmra.mxu0 %vm709_vm4, %v3959_v54  ;;  %v3904_v54 = vsel %vm5338_vm7, %v3902_v16, %v3903_v43  ;;  %v2775_v10 = vadd.f32 %v2713_v20, %v5786_v52  ;;  %v2606_v62 = vunpack.c.l.b16 %v2572_v24  ;;  %v3512_v16 = vrot.slane %v3510_v51, 5 }
 0x248   : > { %v4112_v4 = vadd.f32 %v4047_v1, %v3714_v23  ;;  %v2997_v63 = vpop.f32.mrf.mxu2  ;;  %4704 = vmatmul.msk.bf16.gmra.mxu1 %vm709_vm4, %v2621_v33  ;;  %v2569_v33 = vsel %vm5338_vm7, %v4688_v44, %v2568_v56  ;;  %v3943_v23 = vunpack.c.l.b16 %v3904_v54  ;;  %v3507_v12 = vor.u32 %v3506_v61, %v3502_v48  ;;  %v4899_v44 = vld [vmem:[%s5152_s29 + $0xcc] sm:$0xe] }
 0x249   : > { %v3061_v28 = vadd.f32 %v2997_v63, %v2774_v34  ;;  %v2605_v25 = vunpack.c.l.b16 %v2569_v33  ;;  %v3498_v34 = vrot.slane %v3497_v15, 4  ;;  %v3907_v52 = vrot.slane %v6403_v60, 5  ;;  %v4983_v61 = vld [vmem:[%s5152_s29 + $0xcc] sm:$0xff] }
 0x24a   : > { %v4148_v55 = vadd.f32 %v6190_v7, %v4112_v4  ;;  %v3960_v42 = vpack.c.b16 %v3943_v23, %v3942_v39  ;;  %v3508_v63 = vrot.slane %v3507_v12, 4  ;;  %v3910_v59 = vrot.slane %v4866_v57, 5 }
 0x24b   : > { %v2622_v30 = vpack.c.b16 %v2606_v62, %v2605_v25  ;;  %v3503_v47 = vsel %vm5164_vm3, %v3498_v34, %v3502_v48  ;;  %v3909_v60 = vrot.slane %v3907_v52, 4 }
 0x24c   : > { %v4180_v6 = vmax.f32 %v4148_v55, 0.0  ;;  %v4049_v27 = vpop.f32.mrf.mxu0  ;;  %v3513_v55 = vsel %vm5164_vm3, %v3508_v63, %v3512_v16  ;;  %v3546_v54 = vunpack.c.l.b16 %v3503_v47 }
 0x24d   : > { %v3651_v49 = vpop.f32.mrf.mxu3  ;;  %4817 = vmatmul.msk.bf16.gmra.mxu2 %vm709_vm4, %v4982_v26  ;;  %v2715_v1 = vpop.f32.mrf.mxu1 }
 0x24e   : > { %4212 = vst [vmem:[%s6214_s19 + $0x50] sm:$0xff] %v4180_v6  ;;  %v3715_v13 = vadd.f32 %v3651_v49, %v3061_v28  ;;  %v4915_v28 = vrot.slane %v4899_v44, 9  ;;  %v2776_v3 = vadd.f32 %v2715_v1, %v5806_v21  ;;  %v3547_v49 = vunpack.c.l.b16 %v3513_v55 }
 0x24f   : > { %v3911_v21 = vsel %vm5338_vm7, %v3909_v60, %v3910_v59 }
 0x250   : > { %v4113_v11 = vadd.f32 %v4049_v27, %v3715_v13  ;;  %v3000_v41 = vpop.f32.mrf.mxu2  ;;  %v3908_v36 = vsel %vm5338_vm7, %v4915_v28, %v3907_v52  ;;  %v3563_v13 = vpack.c.b16 %v3547_v49, %v3546_v54  ;;  %v3945_v39 = vunpack.c.l.b16 %v3911_v21 }
 0x251   : > { %v3062_v4 = vadd.f32 %v3000_v41, %v2775_v10 }
 0x252   : > { %v4149_v56 = vadd.f32 %v6190_v7, %v4113_v11  ;;  %4882 = vmatmul.msk.bf16.gmra.mxu3 %vm709_vm4, %v3562_v14  ;;  %v3944_v14 = vunpack.c.l.b16 %v3908_v36 }
 0x254   : > { %v4181_v43 = vmax.f32 %v4149_v56, 0.0  ;;  %v4052_v26 = vpop.f32.mrf.mxu0  ;;  %v3961_v11 = vpack.c.b16 %v3945_v39, %v3944_v14 }
 0x255   : > { %v3654_v20 = vpop.f32.mrf.mxu3  ;;  %v2718_v0 = vpop.f32.mrf.mxu1 }
 0x256   : > { %4213 = vst [vmem:[%s6214_s19 + $0x58] sm:$0xff] %v4181_v43  ;;  %v3716_v35 = vadd.f32 %v3654_v20, %v3062_v4  ;;  %v2777_v15 = vadd.f32 %v2718_v0, %v5825_v29 }
 0x257   : > { %4931 = vmatmul.msk.bf16.gmra.mxu0 %vm709_vm4, %v3960_v42  ;;  %v6537_v42 = vld [vmem:[#allocation3_spill] sm:$0xff] }
 0x258   : > { %v4114_v31 = vadd.f32 %v4052_v26, %v3716_v35  ;;  %v3002_v38 = vpop.f32.mrf.mxu2  ;;  %4705 = vmatmul.msk.bf16.gmra.mxu1 %vm709_vm4, %v2622_v30 }
 0x259   : > { %v3063_v27 = vadd.f32 %v3002_v38, %v2776_v3 }
 0x25a   : > { %v4150_v6 = vadd.f32 %v6190_v7, %v4114_v31 }
 0x25c   : > { %v4182_v48 = vmax.f32 %v4150_v6, 0.0  ;;  %v4054_v33 = vpop.f32.mrf.mxu0 }
 0x25d   : > { %v3656_v1 = vpop.f32.mrf.mxu3  ;;  %4818 = vmatmul.msk.bf16.gmra.mxu2 %vm709_vm4, %v4983_v61  ;;  %v2720_v24 = vpop.f32.mrf.mxu1 }
 0x25e   : > { %4214 = vst [vmem:[%s6214_s19 + $0x60] sm:$0xff] %v4182_v48  ;;  %v3717_v57 = vadd.f32 %v3656_v1, %v3063_v27  ;;  %v2778_v34 = vadd.f32 %v2720_v24, %v6537_v42 }
 0x260   : > { %v4115_v23 = vadd.f32 %v4054_v33, %v3717_v57  ;;  %v3005_v12 = vpop.f32.mrf.mxu2 }
 0x261   : > { %v3064_v18 = vadd.f32 %v3005_v12, %v2777_v15 }
 0x262   : > { %v4151_v51 = vadd.f32 %v6190_v7, %v4115_v23  ;;  %4883 = vmatmul.msk.bf16.gmra.mxu3 %vm709_vm4, %v3563_v13 }
 0x264   : > { %v4183_v10 = vmax.f32 %v4151_v51, 0.0  ;;  %v4057_v41 = vpop.f32.mrf.mxu0 }
 0x265   : > { %v3659_v25 = vpop.f32.mrf.mxu3  ;;  %v2723_v62 = vpop.f32.mrf.mxu1 }
 0x266   : > { %4215 = vst [vmem:[%s6214_s19 + $0x68] sm:$0xff] %v4183_v10  ;;  %v3718_v56 = vadd.f32 %v3659_v25, %v3064_v18  ;;  %v2779_v0 = vadd.f32 %v2723_v62, %v5868_v5 }
 0x267   : > { %4932 = vmatmul.msk.bf16.gmra.mxu0 %vm709_vm4, %v3961_v11 }
 0x268   : > { %v4116_v4 = vadd.f32 %v4057_v41, %v3718_v56  ;;  %v3007_v29 = vpop.f32.mrf.mxu2 }
 0x269   : > { %v3065_v16 = vadd.f32 %v3007_v29, %v2778_v34 }
 0x26a   : > { %v4152_v63 = vadd.f32 %v6190_v7, %v4116_v4 }
 0x26c   : > { %v4184_v43 = vmax.f32 %v4152_v63, 0.0  ;;  %v4059_v26 = vpop.f32.mrf.mxu0 }
 0x26d   : > { %v3661_v30 = vpop.f32.mrf.mxu3  ;;  %v2725_v44 = vpop.f32.mrf.mxu1 }
 0x26e   : > { %4216 = vst [vmem:[%s6214_s19 + $0x70] sm:$0xff] %v4184_v43  ;;  %v3719_v52 = vadd.f32 %v3661_v30, %v3065_v16  ;;  %v2780_v61 = vadd.f32 %v2725_v44, %v5892_v22 }
 0x270   : > { %v4117_v20 = vadd.f32 %v4059_v26, %v3719_v52  ;;  %v3010_v35 = vpop.f32.mrf.mxu2 }
 0x271   : > { %v3066_v55 = vadd.f32 %v3010_v35, %v2779_v0  ;;  %v6480_v0 = vld [vmem:[%s6527_s2] ss:$0 sm:$0xff] }
 0x272   : > { %v4153_v47 = vadd.f32 %v6190_v7, %v4117_v20 }
 0x274   : > { %v4185_v28 = vmax.f32 %v4153_v47, 0.0  ;;  %v4062_v31 = vpop.f32.mrf.mxu0 }
 0x275   : > { %v3664_v3 = vpop.f32.mrf.mxu3  ;;  %v2728_v38 = vpop.f32.mrf.mxu1 }
 0x276   : > { %4217 = vst [vmem:[%s6214_s19 + $0x78] sm:$0xff] %v4185_v28  ;;  %v3720_v60 = vadd.f32 %v3664_v3, %v3066_v55  ;;  %v2781_v1 = vadd.f32 %v2728_v38, %v5911_v19 }
 0x278   : > { %v4118_v59 = vadd.f32 %v4062_v31, %v3720_v60  ;;  %v3012_v6 = vpop.f32.mrf.mxu2 }
 0x279   : > { %v3067_v54 = vadd.f32 %v3012_v6, %v2780_v61 }
 0x27a   : > { %v4154_v27 = vadd.f32 %v6190_v7, %v4118_v59 }
 0x27c   : > { %v4186_v5 = vmax.f32 %v4154_v27, 0.0  ;;  %v4064_v49 = vpop.f32.mrf.mxu0 }
 0x27d   : > { %v3666_v48 = vpop.f32.mrf.mxu3  ;;  %v2730_v33 = vpop.f32.mrf.mxu1 }
 0x27e   : > { %4218 = vst [vmem:[%s6214_s19 + $0x80] sm:$0xff] %v4186_v5  ;;  %v3721_v36 = vadd.f32 %v3666_v48, %v3067_v54  ;;  %v2782_v51 = vadd.f32 %v2730_v33, %v5935_v53  ;;  %v6538_v48 = vld [vmem:[#allocation4_spill] sm:$0xff] }
 0x280   : > { %v4119_v21 = vadd.f32 %v4064_v49, %v3721_v36  ;;  %v3015_v24 = vpop.f32.mrf.mxu2 }
 0x281   : > { %v3068_v13 = vadd.f32 %v3015_v24, %v2781_v1 }
 0x282   : > { %v4155_v57 = vadd.f32 %v6190_v7, %v4119_v21 }
 0x284   : > { %v4187_v22 = vmax.f32 %v4155_v57, 0.0  ;;  %v4067_v14 = vpop.f32.mrf.mxu0 }
 0x285   : > { %v3669_v39 = vpop.f32.mrf.mxu3  ;;  %v2733_v23 = vpop.f32.mrf.mxu1 }
 0x286   : > { %4219 = vst [vmem:[%s6214_s19 + $0x88] sm:$0xff] %v4187_v22  ;;  %v3722_v15 = vadd.f32 %v3669_v39, %v3068_v13  ;;  %v2783_v42 = vadd.f32 %v2733_v23, %v5954_v2 }
 0x288   : > { %v4120_v12 = vadd.f32 %v4067_v14, %v3722_v15  ;;  %v3017_v18 = vpop.f32.mrf.mxu2 }
 0x289   : > { %v3069_v10 = vadd.f32 %v3017_v18, %v2782_v51 }
 0x28a   : > { %v4156_v11 = vadd.f32 %v6190_v7, %v4120_v12 }
 0x28c   : > { %v4188_v19 = vmax.f32 %v4156_v11, 0.0  ;;  %v4069_v41 = vpop.f32.mrf.mxu0 }
 0x28d   : > { %v3671_v25 = vpop.f32.mrf.mxu3  ;;  %v2735_v62 = vpop.f32.mrf.mxu1 }
 0x28e   : > { %4220 = vst [vmem:[%s6214_s19 + $0x90] sm:$0xff] %v4188_v19  ;;  %v3723_v56 = vadd.f32 %v3671_v25, %v3069_v10  ;;  %v2784_v52 = vadd.f32 %v2735_v62, %v5978_v40 }
 0x290   : > { %v4121_v4 = vadd.f32 %v4069_v41, %v3723_v56  ;;  %v3020_v34 = vpop.f32.mrf.mxu2 }
 0x291   : > { %v3070_v63 = vadd.f32 %v3020_v34, %v2783_v42 }
 0x292   : > { %v4157_v29 = vadd.f32 %v6190_v7, %v4121_v4 }
 0x294   : > { %v4189_v16 = vmax.f32 %v4157_v29, 0.0  ;;  %v4072_v53 = vpop.f32.mrf.mxu0 }
 0x295   : > { %v3674_v43 = vpop.f32.mrf.mxu3  ;;  %v2738_v26 = vpop.f32.mrf.mxu1 }
 0x296   : > { %4221 = vst [vmem:[%s6214_s19 + $0x98] sm:$0xff] %v4189_v16  ;;  %v3724_v30 = vadd.f32 %v3674_v43, %v3070_v63  ;;  %v2785_v38 = vadd.f32 %v2738_v26, %v5997_v8 }
 0x298   : > { %v4122_v44 = vadd.f32 %v4072_v53, %v3724_v30  ;;  %v3022_v20 = vpop.f32.mrf.mxu2 }
 0x299   : > { %v3071_v7 = vadd.f32 %v3022_v20, %v2784_v52 }
 0x29a   : > { %v4158_v2 = vadd.f32 %v6480_v0, %v4122_v44 }
 0x29c   : > { %v4190_v35 = vmax.f32 %v4158_v2, 0.0  ;;  %v4074_v47 = vpop.f32.mrf.mxu0 }
 0x29d   : > { %v3676_v55 = vpop.f32.mrf.mxu3  ;;  %v2740_v28 = vpop.f32.mrf.mxu1 }
 0x29e   : > { %4222 = vst [vmem:[%s6214_s19 + $0xa0] sm:$0xff] %v4190_v35  ;;  %v3725_v31 = vadd.f32 %v3676_v55, %v3071_v7  ;;  %v2786_v33 = vadd.f32 %v2740_v28, %v6538_v48 }
 0x2a0   : > { %v4123_v3 = vadd.f32 %v4074_v47, %v3725_v31  ;;  %v3025_v40 = vpop.f32.mrf.mxu2 }
 0x2a1   : > { %v3072_v59 = vadd.f32 %v3025_v40, %v2785_v38 }
 0x2a2   : > { %v4159_v60 = vadd.f32 %v6480_v0, %v4123_v3 }
 0x2a4   : > { %v4191_v61 = vmax.f32 %v4159_v60, 0.0  ;;  %v4077_v6 = vpop.f32.mrf.mxu0 }
 0x2a5   : > { %v3679_v27 = vpop.f32.mrf.mxu3  ;;  %v2743_v54 = vpop.f32.mrf.mxu1 }
 0x2a6   : > { %4223 = vst [vmem:[%s6214_s19 + $0xa8] sm:$0xff] %v4191_v61  ;;  %v3726_v5 = vadd.f32 %v3679_v27, %v3072_v59  ;;  %v2787_v39 = vadd.f32 %v2743_v54, %v6038_v17 }
 0x2a8   : > { %v4124_v49 = vadd.f32 %v4077_v6, %v3726_v5  ;;  %v3027_v36 = vpop.f32.mrf.mxu2 }
 0x2a9   : > { %v3073_v1 = vadd.f32 %v3027_v36, %v2786_v33 }
 0x2aa   : > { %v4160_v21 = vadd.f32 %v6480_v0, %v4124_v49 }
 0x2ac   : > { %v4192_v8 = vmax.f32 %v4160_v21, 0.0  ;;  %v4079_v24 = vpop.f32.mrf.mxu0 }
 0x2ad   : > { %v3681_v57 = vpop.f32.mrf.mxu3  ;;  %v2745_v13 = vpop.f32.mrf.mxu1 }
 0x2ae   : > { %4224 = vst [vmem:[%s6214_s19 + $0xb0] sm:$0xff] %v4192_v8  ;;  %v3727_v22 = vadd.f32 %v3681_v57, %v3073_v1  ;;  %v2788_v25 = vadd.f32 %v2745_v13, %v6059_v50 }
 0x2b0   : > { %v4125_v14 = vadd.f32 %v4079_v24, %v3727_v22  ;;  %v3030_v23 = vpop.f32.mrf.mxu2 }
 0x2b1   : > { %v3074_v12 = vadd.f32 %v3030_v23, %v2787_v39 }
 0x2b2   : > { %v4161_v15 = vadd.f32 %v6480_v0, %v4125_v14 }
 0x2b4   : > { %v4193_v51 = vmax.f32 %v4161_v15, 0.0  ;;  %v4082_v18 = vpop.f32.mrf.mxu0 }
 0x2b5   : > { %v3684_v11 = vpop.f32.mrf.mxu3  ;;  %v2748_v10 = vpop.f32.mrf.mxu1 }
 0x2b6   : > { %4225 = vst [vmem:[%s6214_s19 + $0xb8] sm:$0xff] %v4193_v51  ;;  %v3728_v19 = vadd.f32 %v3684_v11, %v3074_v12  ;;  %v2789_v53 = vadd.f32 %v2748_v10, %v6077_v9 }
 0x2b8   : > { %v4126_v41 = vadd.f32 %v4082_v18, %v3728_v19  ;;  %v3032_v62 = vpop.f32.mrf.mxu2 }
 0x2b9   : > { %v3075_v4 = vadd.f32 %v3032_v62, %v2788_v25 }
 0x2ba   : > { %v4162_v56 = vadd.f32 %v6480_v0, %v4126_v41 }
 0x2bc   : > { %v4194_v17 = vmax.f32 %v4162_v56, 0.0  ;;  %v4084_v42 = vpop.f32.mrf.mxu0 }
 0x2bd   : > { %v3686_v34 = vpop.f32.mrf.mxu3  ;;  %v2750_v29 = vpop.f32.mrf.mxu1 }
 0x2be   : > { %4226 = vst [vmem:[%s6214_s19 + $0xc0] sm:$0xff] %v4194_v17  ;;  %v3729_v63 = vadd.f32 %v3686_v34, %v3075_v4  ;;  %v2790_v35 = vadd.f32 %v2750_v29, %v6100_v45 }
 0x2c0   : > { %v4127_v16 = vadd.f32 %v4084_v42, %v3729_v63  ;;  %v3035_v43 = vpop.f32.mrf.mxu2 }
 0x2c1   : > { %v3076_v30 = vadd.f32 %v3035_v43, %v2789_v53 }
 0x2c2   : > { %v4163_v26 = vadd.f32 %v6480_v0, %v4127_v16 }
 0x2c4   : > { %v4195_v50 = vmax.f32 %v4163_v26, 0.0  ;;  %v4087_v44 = vpop.f32.mrf.mxu0 }
 0x2c5   : > { %v3689_v52 = vpop.f32.mrf.mxu3  ;;  %v2753_v2 = vpop.f32.mrf.mxu1 }
 0x2c6   : > { %4227 = vst [vmem:[%s6214_s19 + $0xc8] sm:$0xff] %v4195_v50  ;;  %v3730_v20 = vadd.f32 %v3689_v52, %v3076_v30  ;;  %v2791_v60 = vadd.f32 %v2753_v2, %v6120_v37 }
 0x2c8   : > { %v4128_v7 = vadd.f32 %v4087_v44, %v3730_v20  ;;  %v3037_v47 = vpop.f32.mrf.mxu2 }
 0x2c9   : > { %v3077_v28 = vadd.f32 %v3037_v47, %v2790_v35 }
 0x2ca   : > { %v4164_v55 = vadd.f32 %v6480_v0, %v4128_v7 }
 0x2cc   : > { %v4196_v9 = vmax.f32 %v4164_v55, 0.0  ;;  %v4089_v31 = vpop.f32.mrf.mxu0 }
 0x2cd   : > { %v3691_v3 = vpop.f32.mrf.mxu3  ;;  %v2755_v61 = vpop.f32.mrf.mxu1 }
 0x2ce   : > { %4228 = vst [vmem:[%s6214_s19 + $0xd0] sm:$0xff] %v4196_v9  ;;  %v3731_v38 = vadd.f32 %v3691_v3, %v3077_v28  ;;  %v2792_v33 = vadd.f32 %v2755_v61, %v6143_v58 }
 0x2d0   : > { %v4129_v40 = vadd.f32 %v4089_v31, %v3731_v38  ;;  %v3040_v59 = vpop.f32.mrf.mxu2 }
 0x2d1   : > { %v3078_v27 = vadd.f32 %v3040_v59, %v2791_v60 }
 0x2d2   : > { %v4165_v6 = vadd.f32 %v6480_v0, %v4129_v40 }
 0x2d4   : > { %v4197_v45 = vmax.f32 %v4165_v6, 0.0  ;;  %v4092_v54 = vpop.f32.mrf.mxu0 }
 0x2d5   : > { %v3694_v5 = vpop.f32.mrf.mxu3  ;;  %v2758_v37 = vpop.f32.mrf.mxu1 }
 0x2d6   : > { %4229 = vst [vmem:[%s6214_s19 + $0xd8] sm:$0xff] %v4197_v45  ;;  %v3732_v49 = vadd.f32 %v3694_v5, %v3078_v27  ;;  %v2793_v14 = vadd.f32 %v2758_v37, %v6161_v32 }
 0x2d8   : > { %v4130_v48 = vadd.f32 %v4092_v54, %v3732_v49  ;;  %v3042_v36 = vpop.f32.mrf.mxu2 }
 0x2d9   : > { %v3079_v1 = vadd.f32 %v3042_v36, %v2792_v33 }
 0x2da   : > { %v4166_v21 = vadd.f32 %v6480_v0, %v4130_v48 }
 0x2dc   : > { %v4198_v8 = vmax.f32 %v4166_v21, 0.0  ;;  %v4094_v24 = vpop.f32.mrf.mxu0 }
 0x2dd   : > { %v3696_v57 = vpop.f32.mrf.mxu3  ;;  %v2760_v12 = vpop.f32.mrf.mxu1 }
 0x2de   : > { %4230 = vst [vmem:[%s6214_s19 + $0xe0] sm:$0xff] %v4198_v8  ;;  %v3733_v13 = vadd.f32 %v3696_v57, %v3079_v1  ;;  %v2794_v19 = vadd.f32 %v2760_v12, %v6182_v46 }
 0x2e0   : > { %v4131_v22 = vadd.f32 %v4094_v24, %v3733_v13  ;;  %v3045_v39 = vpop.f32.mrf.mxu2 }
 0x2e1   : > { %v3080_v15 = vadd.f32 %v3045_v39, %v2793_v14 }
 0x2e2   : > { %v4167_v23 = vadd.f32 %v6480_v0, %v4131_v22 }
 0x2e4   : > { %v4199_v58 = vmax.f32 %v4167_v23, 0.0  ;;  %v4097_v51 = vpop.f32.mrf.mxu0 }
 0x2e5   : > { %v3699_v18 = vpop.f32.mrf.mxu3 }
 0x2e6   : > { %4231 = vst [vmem:[%s6214_s19 + $0xe8] sm:$0xff] %v4199_v58  ;;  %v3734_v11 = vadd.f32 %v3699_v18, %v3080_v15 }
 0x2e8   : > { %v4132_v10 = vadd.f32 %v4097_v51, %v3734_v11  ;;  %v3047_v41 = vpop.f32.mrf.mxu2 }
 0x2e9   : > { %v3081_v62 = vadd.f32 %v3047_v41, %v2794_v19 }
 0x2ea   : > { %v4168_v25 = vadd.f32 %v6480_v0, %v4132_v10 }
 0x2ec   : > { %v4200_v32 = vmax.f32 %v4168_v25, 0.0  ;;  %v4099_v17 = vpop.f32.mrf.mxu0 }
 0x2ed   : > { %v3701_v56 = vpop.f32.mrf.mxu3 }
 0x2ee   : > { %4232 = vst [vmem:[%s6214_s19 + $0xf0] sm:$0xff] %v4200_v32  ;;  %v3735_v4 = vadd.f32 %v3701_v56, %v3081_v62 }
 0x2f0   : > { %v4133_v42 = vadd.f32 %v4099_v17, %v3735_v4 }
 0x2f2   : > { %v4169_v34 = vadd.f32 %v6480_v0, %v4133_v42 }
 0x2f4   : > { %v4201_v29 = vmax.f32 %v4169_v34, 0.0 }
 0x2f6   : > { %4233 = vst [vmem:[%s6214_s19 + $0xf8] sm:$0xff] %v4201_v29 }
 0x2f7 PF: > { %s13_s14 = sadd.s32 1, %s5086_s14   ;;  %s6539_s12 = smov %s5082_s13 }
 0x2f8   : > { %p10_p5 = scmp.ge.s32.totalorder %s13_s14, 4   ;;  %s6540_s13 = smov %s6542_s15 }
 0x2fa   :  { %12 = sbr.rel (!%p10_p5) target bundleno = 2 (0x2), region = 78 }

</bundles_post_ra>
